<compile_context>
chip_gen: v5e
topology: v5e:2x2
jax: 0.10.0
libtpu: 0.0.40
codegen_flags: <defaults>
</compile_context>

<pallas_src>
import functools

import jax
import jax.numpy as jnp
from jax.experimental import pallas as pl
from jax.experimental.pallas import tpu as pltpu


def _zeros_index_map(ndim):
    return lambda: (0,) * ndim


def _round_up(x, m):
    return ((x + m - 1) // m) * m


# ----------------------------------------------------------------------------
# Fused kernel.  PyTorch GRU gate order (r, z, n):
#   r = sigmoid(x W_ir + b_ir + h W_hr + b_hr)
#   z = sigmoid(x W_iz + b_iz + h W_hz + b_hz)
#   n = tanh   (x W_in + b_in + r * (h W_hn + b_hn))
#   h' = (1 - z) * n + z * h
# b_ir+b_hr / b_iz+b_hz / b_in are folded into the input projection; only
# b_hn stays separate (it sits inside the r * (...) term).
# ----------------------------------------------------------------------------
def fused_gru_kernel(x_ref, w_ref, b_ref, o_ref, *, B, T, H, num_layers,
                     gru_meta, head_meta, b_out_meta, outw):
    f32, bf16 = jnp.float32, jnp.bfloat16
    N = B * T

    def wslab(meta):                     # static slice of the packed bf16 slab
        r0, rows, cols = meta
        return w_ref[r0:r0 + rows, 0:cols]

    def brow(meta):                      # static slice of the packed f32 biases
        i, width = meta
        return b_ref[i:i + 1, 0:width]

    # Time-major, lane-padded (T*B, 128) feature slab (prepared in wrapper).
    xin = x_ref[...].reshape(N, x_ref.shape[-1])

    # ---------------- GRU stack (wavefront over layers) ----------------------
    # Layer-0 input projection hoisted out of the recurrence: one fused
    # (N, Din_pad) @ (Din_pad, 3H) matmul for all T steps.
    wi0_m, _, bf0_m, _ = gru_meta[0]
    gi0 = jnp.dot(xin.astype(bf16), wslab(wi0_m),
                  preferred_element_type=f32) + brow(bf0_m)            # (N, 3H)

    w_h = [wslab(gru_meta[l][1]) for l in range(num_layers)]
    w_i = [None] + [wslab(gru_meta[l][0]) for l in range(1, num_layers)]
    b_f = [None] + [brow(gru_meta[l][2]) for l in range(1, num_layers)]
    b_hn = [brow(gru_meta[l][3]) for l in range(num_layers)]

    hs = [jnp.zeros((B, H), f32) for _ in range(num_layers)]
    outs = []
    # Fully unrolled; layer l+1 step t is independent of layer l step t+1, so
    # the scheduler overlaps them across the unrolled basic block.
    for t in range(T):
        gx = gi0[t * B:(t + 1) * B]                                    # (B, 3H)
        for l in range(num_layers):
            h_prev = hs[l]
            gh = jnp.dot(h_prev.astype(bf16), w_h[l],
                         preferred_element_type=f32)    # one MXU push, 96 lanes
            rz = jax.nn.sigmoid(gx[:, 0:2 * H] + gh[:, 0:2 * H])  # 1 EUP call
            r, z = rz[:, 0:H], rz[:, H:2 * H]
            n = jnp.tanh(gx[:, 2 * H:3 * H]
                         + r * (gh[:, 2 * H:3 * H] + b_hn[l]))
            h_new = (1.0 - z) * n + z * h_prev           # recurrent state in f32
            hs[l] = h_new
            if l + 1 < num_layers:
                gx = jnp.dot(h_new.astype(bf16), w_i[l + 1],
                             preferred_element_type=f32) + b_f[l + 1]
        outs.append(hs[-1])

    xf = jnp.concatenate(outs, axis=0)              # (N, H), time-major, in regs

    # ------------------------------ MLP heads --------------------------------
    # Finals were pre-padded into disjoint column ranges of one OUTW-wide slab,
    # so the three heads simply sum into a single lane-dense result.
    acc = jnp.zeros((N, outw), f32)
    for hidden_layers, wfin_m in head_meta:
        hcur = xf
        for wm, bm in hidden_layers:
            hcur = jnp.maximum(
                jnp.dot(hcur.astype(bf16), wslab(wm),
                        preferred_element_type=f32) + brow(bm), 0.0)
        acc = acc + jnp.dot(hcur.astype(bf16), wslab(wfin_m),
                            preferred_element_type=f32)
    o_ref[...] = (acc + brow(b_out_meta)).reshape(T, B, outw)


# ----------------------------------------------------------------------------
# Parameter construction (deterministic, synthetic weights).
# ----------------------------------------------------------------------------
def _linear_stack(key, in_dim, hidden_dims, out_dim):
    dims = [in_dim] + list(hidden_dims) + [out_dim]
    layers = []
    for i in range(len(dims) - 1):
        key, kw, kb = jax.random.split(key, 3)
        w = 0.1 * jax.random.normal(kw, (dims[i], dims[i + 1]), jnp.float32)
        b = 0.1 * jax.random.normal(kb, (1, dims[i + 1]), jnp.float32)
        layers.append((w, b))
    return key, layers


def init_params(key, input_dim, rnn_hidden_dim, num_layers, joint_dim, latent_dim,
                mean_hidden_dims=(288,), log_var_hidden_dims=(288,),
                joint_hidden_dims=(169, 80, 30)):
    rnn = []
    H = rnn_hidden_dim
    din = input_dim
    for _ in range(num_layers):
        key, k1, k2, k3, k4 = jax.random.split(key, 5)
        wih = 0.1 * jax.random.normal(k1, (din, 3 * H), jnp.float32)   # (D_in, 3H)
        whh = 0.1 * jax.random.normal(k2, (H, 3 * H), jnp.float32)     # (H, 3H)
        bih = 0.1 * jax.random.normal(k3, (1, 3 * H), jnp.float32)
        bhh = 0.1 * jax.random.normal(k4, (1, 3 * H), jnp.float32)
        rnn.append((wih, whh, bih, bhh))
        din = H
    key, mean_l = _linear_stack(key, H, mean_hidden_dims, latent_dim)
    key, lv_l = _linear_stack(key, H, log_var_hidden_dims, latent_dim)
    key, joint_l = _linear_stack(key, H, joint_hidden_dims, joint_dim)
    return {"rnn": rnn, "mean": mean_l, "log_var": lv_l, "joint": joint_l,
            "latent_dim": latent_dim, "joint_dim": joint_dim}


def prepare_fused_params(params):
    """One-time prep: fold GRU biases, zero-pad every matmul operand to
    lane-aligned widths (numerically exact), and pack ALL weights / ALL biases
    into two flat arrays (weights bf16, biases f32).  The kernel unpacks them
    with static ref slices -> only 3 input DMAs per forward call."""
    L = params["latent_dim"]
    J = params["joint_dim"]
    H = params["rnn"][0][1].shape[0]
    num_layers = len(params["rnn"])
    Din = params["rnn"][0][0].shape[0]
    din_pad = _round_up(Din, 128)
    out_width = _round_up(2 * L + J, 128)

    w_blocks, b_rows = [], []
    w_row = [0]

    def add_w(mat):
        mat = jnp.asarray(mat, jnp.float32)
        meta = (w_row[0], mat.shape[0], mat.shape[1])
        w_blocks.append(mat)
        w_row[0] += mat.shape[0]
        return meta

    def add_b(vec):
        vec = jnp.asarray(vec, jnp.float32).reshape(-1)
        meta = (len(b_rows), vec.shape[0])
        b_rows.append(vec)
        return meta

    # ----- GRU layers: gate order along 3H axis is already (r, z, n) ---------
    gru_meta = []
    for li, (wih, whh, bih, bhh) in enumerate(params["rnn"]):
        wi = wih
        if li == 0:
            wi = jnp.pad(wih, ((0, din_pad - Din), (0, 0)))   # zero rows: exact
        wi_m = add_w(wi)                                      # (Din_pad|H, 3H)
        wh_m = add_w(whh)                                     # (H, 3H)
        b_fold = jnp.concatenate(
            [bih[:, :2 * H] + bhh[:, :2 * H], bih[:, 2 * H:]], axis=1)
        bf_m = add_b(b_fold)                                  # (3H,)
        bhn_m = add_b(bhh[:, 2 * H:])                         # (H,)
        gru_meta.append((wi_m, wh_m, bf_m, bhn_m))

    # ----- heads: pad hidden widths to 128-multiples, finals into OUTW slab --
    out_dims = (L, L, J)
    head_meta = []
    b_out = jnp.zeros((1, out_width), jnp.float32)
    col = 0
    for name, odim in zip(("mean", "log_var", "joint"), out_dims):
        layers = params[name]
        hidden, (w_fin, b_fin) = layers[:-1], layers[-1]
        in_true, in_pad = H, H
        hmeta = []
        for (w, b) in hidden:
            out_true = w.shape[1]
            out_pad = _round_up(out_true, 128)
            w_p = jnp.zeros((in_pad, out_pad), jnp.float32)
            w_p = w_p.at[:in_true, :out_true].set(w)
            b_p = jnp.zeros((out_pad,), jnp.float32).at[:out_true].set(b[0])
            hmeta.append((add_w(w_p), add_b(b_p)))
            in_true, in_pad = out_true, out_pad
        w_fp = jnp.zeros((in_pad, out_width), jnp.float32)
        w_fp = w_fp.at[:in_true, col:col + odim].set(w_fin)
        wfin_m = add_w(w_fp)
        b_out = b_out.at[:, col:col + odim].set(b_fin)
        head_meta.append((tuple(hmeta), wfin_m))
        col += odim
    b_out_m = add_b(b_out)

    # ----- pack into two lane-dense slabs ------------------------------------
    wmax = max(blk.shape[1] for blk in w_blocks)
    total = sum(blk.shape[0] for blk in w_blocks)
    w_pack = jnp.zeros((total, wmax), jnp.float32)
    r = 0
    for blk in w_blocks:
        w_pack = w_pack.at[r:r + blk.shape[0], :blk.shape[1]].set(blk)
        r += blk.shape[0]
    w_pack = w_pack.astype(jnp.bfloat16)      # MXU-native; zero padding exact

    bmax = _round_up(max(v.shape[0] for v in b_rows), 128)
    b_pack = jnp.zeros((len(b_rows), bmax), jnp.float32)
    for i, v in enumerate(b_rows):
        b_pack = b_pack.at[i, :v.shape[0]].set(v)

    return {"w_pack": w_pack, "b_pack": b_pack,
            "gru_meta": tuple(gru_meta), "head_meta": tuple(head_meta),
            "b_out_meta": b_out_m, "hidden_dim": H, "latent_dim": L,
            "joint_dim": J, "out_width": out_width, "din_pad": din_pad,
            "num_layers": num_layers}


# ----------------------------------------------------------------------------
# Forward pass (matches GRU.forward of the PyTorch module; h0 = zeros).
# ----------------------------------------------------------------------------
def gru_forward(fused_params, z_i_t, z_i_g, j_pre):
    fp = fused_params
    L, J, H = fp["latent_dim"], fp["joint_dim"], fp["hidden_dim"]
    B = j_pre.shape[0]
    z_i_t = z_i_t.reshape(B, -1, L)
    z_i_g = z_i_g.reshape(B, -1, L)
    j_pre = j_pre.reshape(B, -1, J)
    T = j_pre.shape[1]
    OUTW = fp["out_width"]
    DINP = fp["din_pad"]
    Din = 2 * L + J

    # Concat + zero-pad to 128 lanes + time-major transpose, done once in XLA
    # so the kernel's MXU operand is lane-aligned and per-step slices are
    # leading-axis row slices.
    x = jnp.concatenate([z_i_t, z_i_g, j_pre], axis=-1).astype(jnp.float32)
    x_tm = jnp.transpose(x, (1, 0, 2))                        # (T, B, Din)
    x_tm = jnp.pad(x_tm, ((0, 0), (0, 0), (0, DINP - Din)))   # (T, B, DINP)

    kernel = functools.partial(
        fused_gru_kernel, B=B, T=T, H=H, num_layers=fp["num_layers"],
        gru_meta=fp["gru_meta"], head_meta=fp["head_meta"],
        b_out_meta=fp["b_out_meta"], outw=OUTW)

    out_tm = pl.pallas_call(
        kernel,
        out_shape=jax.ShapeDtypeStruct((T, B, OUTW), jnp.float32),
        in_specs=[
            pl.BlockSpec(x_tm.shape, _zeros_index_map(3)),
            pl.BlockSpec(fp["w_pack"].shape, _zeros_index_map(2)),
            pl.BlockSpec(fp["b_pack"].shape, _zeros_index_map(2)),
        ],
        out_specs=pl.BlockSpec((T, B, OUTW), _zeros_index_map(3)),
    )(x_tm, fp["w_pack"], fp["b_pack"])

    out = jnp.transpose(out_tm, (1, 0, 2))                    # (B, T, OUTW)
    mean = out[:, :, 0:L]
    log_var = out[:, :, L:2 * L]
    j_next = out[:, :, 2 * L:2 * L + J]
    return mean, log_var, j_next


# ----------------------------------------------------------------------------
# Pure-JAX f32 reference (same math, no Pallas) for correctness checking.
# ----------------------------------------------------------------------------
def ref_forward(params, z_i_t, z_i_g, j_pre):
    latent_dim = params["latent_dim"]
    joint_dim = params["joint_dim"]
    B = j_pre.shape[0]
    z_i_t = z_i_t.reshape(B, -1, latent_dim)
    z_i_g = z_i_g.reshape(B, -1, latent_dim)
    j_pre = j_pre.reshape(B, -1, joint_dim)
    x = jnp.concatenate([z_i_t, z_i_g, j_pre], axis=2)
    T = x.shape[1]

    inp = x
    for (wih, whh, bih, bhh) in params["rnn"]:
        H = whh.shape[0]
        h = jnp.zeros((B, H), jnp.float32)
        hs = []
        for t in range(T):
            xt = inp[:, t, :]
            gx = xt @ wih + bih
            gh = h @ whh + bhh
            r = jax.nn.sigmoid(gx[:, :H] + gh[:, :H])
            z = jax.nn.sigmoid(gx[:, H:2 * H] + gh[:, H:2 * H])
            n = jnp.tanh(gx[:, 2 * H:] + r * gh[:, 2 * H:])
            h = (1.0 - z) * n + z * h
            hs.append(h)
        inp = jnp.stack(hs, axis=1)

    def ref_mlp(v, layers):
        for i, (w, b) in enumerate(layers):
            v = v @ w + b
            if i < len(layers) - 1:
                v = jnp.maximum(v, 0.0)
        return v

    H = inp.shape[-1]
    xf = inp.reshape(B * T, H)
    mean = ref_mlp(xf, params["mean"]).reshape(B, T, latent_dim)
    log_var = ref_mlp(xf, params["log_var"]).reshape(B, T, latent_dim)
    j_next = ref_mlp(xf, params["joint"]).reshape(B, T, joint_dim)
    return mean, log_var, j_next


if __name__ == "__main__":
    latent_dim = 16
    joint_dim = 6
    rnn_hidden_dim = 32
    num_layers = 2
    B, T = 2, 8
    input_dim = 2 * latent_dim + joint_dim   # 38

    key = jax.random.PRNGKey(0)
    key, kp, k1, k2, k3 = jax.random.split(key, 5)
    params = init_params(kp, input_dim, rnn_hidden_dim, num_layers,
                         joint_dim, latent_dim)
    fused_params = prepare_fused_params(params)

    z_i_t = jax.random.normal(k1, (B, T, latent_dim), jnp.float32)
    z_i_g = jax.random.normal(k2, (B, T, latent_dim), jnp.float32)
    j_pre = jax.random.normal(k3, (B, T, joint_dim), jnp.float32)

    forward = jax.jit(functools.partial(gru_forward, fused_params))
    mean, log_var, j_next = jax.block_until_ready(forward(z_i_t, z_i_g, j_pre))

    r_mean, r_log_var, r_j_next = ref_forward(params, z_i_t, z_i_g, j_pre)

    assert mean.shape == (B, T, latent_dim)
    assert log_var.shape == (B, T, latent_dim)
    assert j_next.shape == (B, T, joint_dim)
    # bf16 MXU operands (f32 accumulation / f32 gate math) -> relaxed tolerance
    # vs. the pure-f32 reference.
    assert jnp.allclose(mean, r_mean, atol=2e-2, rtol=2e-2)
    assert jnp.allclose(log_var, r_log_var, atol=2e-2, rtol=2e-2)
    assert jnp.allclose(j_next, r_j_next, atol=2e-2, rtol=2e-2)

    print("KERNEL_OK")
</pallas_src>

<mosaic_0001>
module attributes {stable_mosaic.version = 11 : i64} {
  func.func @fused_gru_kernel(%arg0: memref<8x2x128xf32, #tpu.memory_space<vmem>>, %arg1: memref<1600x384xbf16, #tpu.memory_space<vmem>>, %arg2: memref<10x384xf32, #tpu.memory_space<vmem>>, %arg3: memref<8x2x128xf32, #tpu.memory_space<vmem>>) attributes {dimension_semantics = [], scalar_prefetch = 0 : i64, scratch_operands = 0 : i64, tpu.core_type = #tpu.core_type<tc>} {
    %c0 = arith.constant 0 : index
    %c0_0 = arith.constant 0 : index
    %c0_1 = arith.constant 0 : index
    %0 = vector.load %arg0[%c0, %c0_0, %c0_1] : memref<8x2x128xf32, #tpu.memory_space<vmem>>, vector<8x2x128xf32>
    %1 = vector.shape_cast %0 : vector<8x2x128xf32> to vector<16x128xf32>
    %2 = arith.truncf %1 : vector<16x128xf32> to vector<16x128xbf16>
    %c0_2 = arith.constant 0 : index
    %c0_3 = arith.constant 0 : index
    %3 = vector.load %arg1[%c0_2, %c0_3] : memref<1600x384xbf16, #tpu.memory_space<vmem>>, vector<128x96xbf16>
    %cst = arith.constant dense<0.000000e+00> : vector<16x96xf32>
    %4 = tpu.matmul %2, %3, %cst {dimension_numbers = #tpu.dot_dimension_numbers<[1], [0], [0], [1], [0, 0, 1, 1], [], []>} : vector<16x128xbf16>, vector<128x96xbf16>, vector<16x96xf32> -> vector<16x96xf32>
    %c0_4 = arith.constant 0 : index
    %c0_5 = arith.constant 0 : index
    %5 = vector.load %arg2[%c0_4, %c0_5] : memref<10x384xf32, #tpu.memory_space<vmem>>, vector<1x96xf32>
    %6 = vector.broadcast %5 : vector<1x96xf32> to vector<16x96xf32>
    %7 = arith.addf %4, %6 : vector<16x96xf32>
    %c128 = arith.constant 128 : index
    %c0_6 = arith.constant 0 : index
    %8 = vector.load %arg1[%c128, %c0_6] : memref<1600x384xbf16, #tpu.memory_space<vmem>>, vector<32x96xbf16>
    %c192 = arith.constant 192 : index
    %c0_7 = arith.constant 0 : index
    %9 = vector.load %arg1[%c192, %c0_7] : memref<1600x384xbf16, #tpu.memory_space<vmem>>, vector<32x96xbf16>
    %c160 = arith.constant 160 : index
    %c0_8 = arith.constant 0 : index
    %10 = vector.load %arg1[%c160, %c0_8] : memref<1600x384xbf16, #tpu.memory_space<vmem>>, vector<32x96xbf16>
    %c2 = arith.constant 2 : index
    %c0_9 = arith.constant 0 : index
    %11 = vector.load %arg2[%c2, %c0_9] : memref<10x384xf32, #tpu.memory_space<vmem>>, vector<1x96xf32>
    %c1 = arith.constant 1 : index
    %c0_10 = arith.constant 0 : index
    %12 = vector.load %arg2[%c1, %c0_10] : memref<10x384xf32, #tpu.memory_space<vmem>>, vector<1x32xf32>
    %c3 = arith.constant 3 : index
    %c0_11 = arith.constant 0 : index
    %13 = vector.load %arg2[%c3, %c0_11] : memref<10x384xf32, #tpu.memory_space<vmem>>, vector<1x32xf32>
    %cst_12 = arith.constant 0.000000e+00 : f32
    %14 = vector.broadcast %cst_12 : f32 to vector<2x32xf32>
    %cst_13 = arith.constant 0.000000e+00 : f32
    %15 = vector.broadcast %cst_13 : f32 to vector<2x32xf32>
    %16 = vector.extract_strided_slice %7 {offsets = [0, 0], sizes = [2, 96], strides = [1, 1]} : vector<16x96xf32> to vector<2x96xf32>
    %17 = arith.truncf %14 : vector<2x32xf32> to vector<2x32xbf16>
    %cst_14 = arith.constant dense<0.000000e+00> : vector<2x96xf32>
    %18 = tpu.matmul %17, %8, %cst_14 {dimension_numbers = #tpu.dot_dimension_numbers<[1], [0], [0], [1], [0, 0, 1, 1], [], []>} : vector<2x32xbf16>, vector<32x96xbf16>, vector<2x96xf32> -> vector<2x96xf32>
    %19 = vector.extract_strided_slice %16 {offsets = [0, 0], sizes = [2, 64], strides = [1, 1]} : vector<2x96xf32> to vector<2x64xf32>
    %20 = vector.extract_strided_slice %18 {offsets = [0, 0], sizes = [2, 64], strides = [1, 1]} : vector<2x96xf32> to vector<2x64xf32>
    %21 = arith.addf %19, %20 : vector<2x64xf32>
    %22 = arith.negf %21 : vector<2x64xf32>
    %23 = math.exp %22 : vector<2x64xf32>
    %cst_15 = arith.constant 1.000000e+00 : f32
    %24 = vector.broadcast %cst_15 : f32 to vector<2x64xf32>
    %25 = arith.addf %24, %23 : vector<2x64xf32>
    %26 = arith.divf %24, %25 : vector<2x64xf32>
    %27 = vector.extract_strided_slice %26 {offsets = [0, 0], sizes = [2, 32], strides = [1, 1]} : vector<2x64xf32> to vector<2x32xf32>
    %28 = vector.extract_strided_slice %26 {offsets = [0, 32], sizes = [2, 32], strides = [1, 1]} : vector<2x64xf32> to vector<2x32xf32>
    %29 = vector.extract_strided_slice %16 {offsets = [0, 64], sizes = [2, 32], strides = [1, 1]} : vector<2x96xf32> to vector<2x32xf32>
    %30 = vector.extract_strided_slice %18 {offsets = [0, 64], sizes = [2, 32], strides = [1, 1]} : vector<2x96xf32> to vector<2x32xf32>
    %31 = vector.broadcast %12 : vector<1x32xf32> to vector<2x32xf32>
    %32 = arith.addf %30, %31 : vector<2x32xf32>
    %33 = arith.mulf %27, %32 : vector<2x32xf32>
    %34 = arith.addf %29, %33 : vector<2x32xf32>
    %35 = math.tanh %34 : vector<2x32xf32>
    %cst_16 = arith.constant 1.000000e+00 : f32
    %36 = vector.broadcast %cst_16 : f32 to vector<2x32xf32>
    %37 = arith.subf %36, %28 : vector<2x32xf32>
    %38 = arith.mulf %37, %35 : vector<2x32xf32>
    %39 = arith.mulf %28, %14 : vector<2x32xf32>
    %40 = arith.addf %38, %39 : vector<2x32xf32>
    %41 = arith.truncf %40 : vector<2x32xf32> to vector<2x32xbf16>
    %cst_17 = arith.constant dense<0.000000e+00> : vector<2x96xf32>
    %42 = tpu.matmul %41, %10, %cst_17 {dimension_numbers = #tpu.dot_dimension_numbers<[1], [0], [0], [1], [0, 0, 1, 1], [], []>} : vector<2x32xbf16>, vector<32x96xbf16>, vector<2x96xf32> -> vector<2x96xf32>
    %43 = vector.broadcast %11 : vector<1x96xf32> to vector<2x96xf32>
    %44 = arith.addf %42, %43 : vector<2x96xf32>
    %45 = arith.truncf %15 : vector<2x32xf32> to vector<2x32xbf16>
    %cst_18 = arith.constant dense<0.000000e+00> : vector<2x96xf32>
    %46 = tpu.matmul %45, %9, %cst_18 {dimension_numbers = #tpu.dot_dimension_numbers<[1], [0], [0], [1], [0, 0, 1, 1], [], []>} : vector<2x32xbf16>, vector<32x96xbf16>, vector<2x96xf32> -> vector<2x96xf32>
    %47 = vector.extract_strided_slice %44 {offsets = [0, 0], sizes = [2, 64], strides = [1, 1]} : vector<2x96xf32> to vector<2x64xf32>
    %48 = vector.extract_strided_slice %46 {offsets = [0, 0], sizes = [2, 64], strides = [1, 1]} : vector<2x96xf32> to vector<2x64xf32>
    %49 = arith.addf %47, %48 : vector<2x64xf32>
    %50 = arith.negf %49 : vector<2x64xf32>
    %51 = math.exp %50 : vector<2x64xf32>
    %cst_19 = arith.constant 1.000000e+00 : f32
    %52 = vector.broadcast %cst_19 : f32 to vector<2x64xf32>
    %53 = arith.addf %52, %51 : vector<2x64xf32>
    %54 = arith.divf %52, %53 : vector<2x64xf32>
    %55 = vector.extract_strided_slice %54 {offsets = [0, 0], sizes = [2, 32], strides = [1, 1]} : vector<2x64xf32> to vector<2x32xf32>
    %56 = vector.extract_strided_slice %54 {offsets = [0, 32], sizes = [2, 32], strides = [1, 1]} : vector<2x64xf32> to vector<2x32xf32>
    %57 = vector.extract_strided_slice %44 {offsets = [0, 64], sizes = [2, 32], strides = [1, 1]} : vector<2x96xf32> to vector<2x32xf32>
    %58 = vector.extract_strided_slice %46 {offsets = [0, 64], sizes = [2, 32], strides = [1, 1]} : vector<2x96xf32> to vector<2x32xf32>
    %59 = vector.broadcast %13 : vector<1x32xf32> to vector<2x32xf32>
    %60 = arith.addf %58, %59 : vector<2x32xf32>
    %61 = arith.mulf %55, %60 : vector<2x32xf32>
    %62 = arith.addf %57, %61 : vector<2x32xf32>
    %63 = math.tanh %62 : vector<2x32xf32>
    %cst_20 = arith.constant 1.000000e+00 : f32
    %64 = vector.broadcast %cst_20 : f32 to vector<2x32xf32>
    %65 = arith.subf %64, %56 : vector<2x32xf32>
    %66 = arith.mulf %65, %63 : vector<2x32xf32>
    %67 = arith.mulf %56, %15 : vector<2x32xf32>
    %68 = arith.addf %66, %67 : vector<2x32xf32>
    %69 = vector.extract_strided_slice %7 {offsets = [2, 0], sizes = [2, 96], strides = [1, 1]} : vector<16x96xf32> to vector<2x96xf32>
    %70 = arith.truncf %40 : vector<2x32xf32> to vector<2x32xbf16>
    %cst_21 = arith.constant dense<0.000000e+00> : vector<2x96xf32>
    %71 = tpu.matmul %70, %8, %cst_21 {dimension_numbers = #tpu.dot_dimension_numbers<[1], [0], [0], [1], [0, 0, 1, 1], [], []>} : vector<2x32xbf16>, vector<32x96xbf16>, vector<2x96xf32> -> vector<2x96xf32>
    %72 = vector.extract_strided_slice %69 {offsets = [0, 0], sizes = [2, 64], strides = [1, 1]} : vector<2x96xf32> to vector<2x64xf32>
    %73 = vector.extract_strided_slice %71 {offsets = [0, 0], sizes = [2, 64], strides = [1, 1]} : vector<2x96xf32> to vector<2x64xf32>
    %74 = arith.addf %72, %73 : vector<2x64xf32>
    %75 = arith.negf %74 : vector<2x64xf32>
    %76 = math.exp %75 : vector<2x64xf32>
    %cst_22 = arith.constant 1.000000e+00 : f32
    %77 = vector.broadcast %cst_22 : f32 to vector<2x64xf32>
    %78 = arith.addf %77, %76 : vector<2x64xf32>
    %79 = arith.divf %77, %78 : vector<2x64xf32>
    %80 = vector.extract_strided_slice %79 {offsets = [0, 0], sizes = [2, 32], strides = [1, 1]} : vector<2x64xf32> to vector<2x32xf32>
    %81 = vector.extract_strided_slice %79 {offsets = [0, 32], sizes = [2, 32], strides = [1, 1]} : vector<2x64xf32> to vector<2x32xf32>
    %82 = vector.extract_strided_slice %69 {offsets = [0, 64], sizes = [2, 32], strides = [1, 1]} : vector<2x96xf32> to vector<2x32xf32>
    %83 = vector.extract_strided_slice %71 {offsets = [0, 64], sizes = [2, 32], strides = [1, 1]} : vector<2x96xf32> to vector<2x32xf32>
    %84 = vector.broadcast %12 : vector<1x32xf32> to vector<2x32xf32>
    %85 = arith.addf %83, %84 : vector<2x32xf32>
    %86 = arith.mulf %80, %85 : vector<2x32xf32>
    %87 = arith.addf %82, %86 : vector<2x32xf32>
    %88 = math.tanh %87 : vector<2x32xf32>
    %cst_23 = arith.constant 1.000000e+00 : f32
    %89 = vector.broadcast %cst_23 : f32 to vector<2x32xf32>
    %90 = arith.subf %89, %81 : vector<2x32xf32>
    %91 = arith.mulf %90, %88 : vector<2x32xf32>
    %92 = arith.mulf %81, %40 : vector<2x32xf32>
    %93 = arith.addf %91, %92 : vector<2x32xf32>
    %94 = arith.truncf %93 : vector<2x32xf32> to vector<2x32xbf16>
    %cst_24 = arith.constant dense<0.000000e+00> : vector<2x96xf32>
    %95 = tpu.matmul %94, %10, %cst_24 {dimension_numbers = #tpu.dot_dimension_numbers<[1], [0], [0], [1], [0, 0, 1, 1], [], []>} : vector<2x32xbf16>, vector<32x96xbf16>, vector<2x96xf32> -> vector<2x96xf32>
    %96 = vector.broadcast %11 : vector<1x96xf32> to vector<2x96xf32>
    %97 = arith.addf %95, %96 : vector<2x96xf32>
    %98 = arith.truncf %68 : vector<2x32xf32> to vector<2x32xbf16>
    %cst_25 = arith.constant dense<0.000000e+00> : vector<2x96xf32>
    %99 = tpu.matmul %98, %9, %cst_25 {dimension_numbers = #tpu.dot_dimension_numbers<[1], [0], [0], [1], [0, 0, 1, 1], [], []>} : vector<2x32xbf16>, vector<32x96xbf16>, vector<2x96xf32> -> vector<2x96xf32>
    %100 = vector.extract_strided_slice %97 {offsets = [0, 0], sizes = [2, 64], strides = [1, 1]} : vector<2x96xf32> to vector<2x64xf32>
    %101 = vector.extract_strided_slice %99 {offsets = [0, 0], sizes = [2, 64], strides = [1, 1]} : vector<2x96xf32> to vector<2x64xf32>
    %102 = arith.addf %100, %101 : vector<2x64xf32>
    %103 = arith.negf %102 : vector<2x64xf32>
    %104 = math.exp %103 : vector<2x64xf32>
    %cst_26 = arith.constant 1.000000e+00 : f32
    %105 = vector.broadcast %cst_26 : f32 to vector<2x64xf32>
    %106 = arith.addf %105, %104 : vector<2x64xf32>
    %107 = arith.divf %105, %106 : vector<2x64xf32>
    %108 = vector.extract_strided_slice %107 {offsets = [0, 0], sizes = [2, 32], strides = [1, 1]} : vector<2x64xf32> to vector<2x32xf32>
    %109 = vector.extract_strided_slice %107 {offsets = [0, 32], sizes = [2, 32], strides = [1, 1]} : vector<2x64xf32> to vector<2x32xf32>
    %110 = vector.extract_strided_slice %97 {offsets = [0, 64], sizes = [2, 32], strides = [1, 1]} : vector<2x96xf32> to vector<2x32xf32>
    %111 = vector.extract_strided_slice %99 {offsets = [0, 64], sizes = [2, 32], strides = [1, 1]} : vector<2x96xf32> to vector<2x32xf32>
    %112 = vector.broadcast %13 : vector<1x32xf32> to vector<2x32xf32>
    %113 = arith.addf %111, %112 : vector<2x32xf32>
    %114 = arith.mulf %108, %113 : vector<2x32xf32>
    %115 = arith.addf %110, %114 : vector<2x32xf32>
    %116 = math.tanh %115 : vector<2x32xf32>
    %cst_27 = arith.constant 1.000000e+00 : f32
    %117 = vector.broadcast %cst_27 : f32 to vector<2x32xf32>
    %118 = arith.subf %117, %109 : vector<2x32xf32>
    %119 = arith.mulf %118, %116 : vector<2x32xf32>
    %120 = arith.mulf %109, %68 : vector<2x32xf32>
    %121 = arith.addf %119, %120 : vector<2x32xf32>
    %122 = vector.extract_strided_slice %7 {offsets = [4, 0], sizes = [2, 96], strides = [1, 1]} : vector<16x96xf32> to vector<2x96xf32>
    %123 = arith.truncf %93 : vector<2x32xf32> to vector<2x32xbf16>
    %cst_28 = arith.constant dense<0.000000e+00> : vector<2x96xf32>
    %124 = tpu.matmul %123, %8, %cst_28 {dimension_numbers = #tpu.dot_dimension_numbers<[1], [0], [0], [1], [0, 0, 1, 1], [], []>} : vector<2x32xbf16>, vector<32x96xbf16>, vector<2x96xf32> -> vector<2x96xf32>
    %125 = vector.extract_strided_slice %122 {offsets = [0, 0], sizes = [2, 64], strides = [1, 1]} : vector<2x96xf32> to vector<2x64xf32>
    %126 = vector.extract_strided_slice %124 {offsets = [0, 0], sizes = [2, 64], strides = [1, 1]} : vector<2x96xf32> to vector<2x64xf32>
    %127 = arith.addf %125, %126 : vector<2x64xf32>
    %128 = arith.negf %127 : vector<2x64xf32>
    %129 = math.exp %128 : vector<2x64xf32>
    %cst_29 = arith.constant 1.000000e+00 : f32
    %130 = vector.broadcast %cst_29 : f32 to vector<2x64xf32>
    %131 = arith.addf %130, %129 : vector<2x64xf32>
    %132 = arith.divf %130, %131 : vector<2x64xf32>
    %133 = vector.extract_strided_slice %132 {offsets = [0, 0], sizes = [2, 32], strides = [1, 1]} : vector<2x64xf32> to vector<2x32xf32>
    %134 = vector.extract_strided_slice %132 {offsets = [0, 32], sizes = [2, 32], strides = [1, 1]} : vector<2x64xf32> to vector<2x32xf32>
    %135 = vector.extract_strided_slice %122 {offsets = [0, 64], sizes = [2, 32], strides = [1, 1]} : vector<2x96xf32> to vector<2x32xf32>
    %136 = vector.extract_strided_slice %124 {offsets = [0, 64], sizes = [2, 32], strides = [1, 1]} : vector<2x96xf32> to vector<2x32xf32>
    %137 = vector.broadcast %12 : vector<1x32xf32> to vector<2x32xf32>
    %138 = arith.addf %136, %137 : vector<2x32xf32>
    %139 = arith.mulf %133, %138 : vector<2x32xf32>
    %140 = arith.addf %135, %139 : vector<2x32xf32>
    %141 = math.tanh %140 : vector<2x32xf32>
    %cst_30 = arith.constant 1.000000e+00 : f32
    %142 = vector.broadcast %cst_30 : f32 to vector<2x32xf32>
    %143 = arith.subf %142, %134 : vector<2x32xf32>
    %144 = arith.mulf %143, %141 : vector<2x32xf32>
    %145 = arith.mulf %134, %93 : vector<2x32xf32>
    %146 = arith.addf %144, %145 : vector<2x32xf32>
    %147 = arith.truncf %146 : vector<2x32xf32> to vector<2x32xbf16>
    %cst_31 = arith.constant dense<0.000000e+00> : vector<2x96xf32>
    %148 = tpu.matmul %147, %10, %cst_31 {dimension_numbers = #tpu.dot_dimension_numbers<[1], [0], [0], [1], [0, 0, 1, 1], [], []>} : vector<2x32xbf16>, vector<32x96xbf16>, vector<2x96xf32> -> vector<2x96xf32>
    %149 = vector.broadcast %11 : vector<1x96xf32> to vector<2x96xf32>
    %150 = arith.addf %148, %149 : vector<2x96xf32>
    %151 = arith.truncf %121 : vector<2x32xf32> to vector<2x32xbf16>
    %cst_32 = arith.constant dense<0.000000e+00> : vector<2x96xf32>
    %152 = tpu.matmul %151, %9, %cst_32 {dimension_numbers = #tpu.dot_dimension_numbers<[1], [0], [0], [1], [0, 0, 1, 1], [], []>} : vector<2x32xbf16>, vector<32x96xbf16>, vector<2x96xf32> -> vector<2x96xf32>
    %153 = vector.extract_strided_slice %150 {offsets = [0, 0], sizes = [2, 64], strides = [1, 1]} : vector<2x96xf32> to vector<2x64xf32>
    %154 = vector.extract_strided_slice %152 {offsets = [0, 0], sizes = [2, 64], strides = [1, 1]} : vector<2x96xf32> to vector<2x64xf32>
    %155 = arith.addf %153, %154 : vector<2x64xf32>
    %156 = arith.negf %155 : vector<2x64xf32>
    %157 = math.exp %156 : vector<2x64xf32>
    %cst_33 = arith.constant 1.000000e+00 : f32
    %158 = vector.broadcast %cst_33 : f32 to vector<2x64xf32>
    %159 = arith.addf %158, %157 : vector<2x64xf32>
    %160 = arith.divf %158, %159 : vector<2x64xf32>
    %161 = vector.extract_strided_slice %160 {offsets = [0, 0], sizes = [2, 32], strides = [1, 1]} : vector<2x64xf32> to vector<2x32xf32>
    %162 = vector.extract_strided_slice %160 {offsets = [0, 32], sizes = [2, 32], strides = [1, 1]} : vector<2x64xf32> to vector<2x32xf32>
    %163 = vector.extract_strided_slice %150 {offsets = [0, 64], sizes = [2, 32], strides = [1, 1]} : vector<2x96xf32> to vector<2x32xf32>
    %164 = vector.extract_strided_slice %152 {offsets = [0, 64], sizes = [2, 32], strides = [1, 1]} : vector<2x96xf32> to vector<2x32xf32>
    %165 = vector.broadcast %13 : vector<1x32xf32> to vector<2x32xf32>
    %166 = arith.addf %164, %165 : vector<2x32xf32>
    %167 = arith.mulf %161, %166 : vector<2x32xf32>
    %168 = arith.addf %163, %167 : vector<2x32xf32>
    %169 = math.tanh %168 : vector<2x32xf32>
    %cst_34 = arith.constant 1.000000e+00 : f32
    %170 = vector.broadcast %cst_34 : f32 to vector<2x32xf32>
    %171 = arith.subf %170, %162 : vector<2x32xf32>
    %172 = arith.mulf %171, %169 : vector<2x32xf32>
    %173 = arith.mulf %162, %121 : vector<2x32xf32>
    %174 = arith.addf %172, %173 : vector<2x32xf32>
    %175 = vector.extract_strided_slice %7 {offsets = [6, 0], sizes = [2, 96], strides = [1, 1]} : vector<16x96xf32> to vector<2x96xf32>
    %176 = arith.truncf %146 : vector<2x32xf32> to vector<2x32xbf16>
    %cst_35 = arith.constant dense<0.000000e+00> : vector<2x96xf32>
    %177 = tpu.matmul %176, %8, %cst_35 {dimension_numbers = #tpu.dot_dimension_numbers<[1], [0], [0], [1], [0, 0, 1, 1], [], []>} : vector<2x32xbf16>, vector<32x96xbf16>, vector<2x96xf32> -> vector<2x96xf32>
    %178 = vector.extract_strided_slice %175 {offsets = [0, 0], sizes = [2, 64], strides = [1, 1]} : vector<2x96xf32> to vector<2x64xf32>
    %179 = vector.extract_strided_slice %177 {offsets = [0, 0], sizes = [2, 64], strides = [1, 1]} : vector<2x96xf32> to vector<2x64xf32>
    %180 = arith.addf %178, %179 : vector<2x64xf32>
    %181 = arith.negf %180 : vector<2x64xf32>
    %182 = math.exp %181 : vector<2x64xf32>
    %cst_36 = arith.constant 1.000000e+00 : f32
    %183 = vector.broadcast %cst_36 : f32 to vector<2x64xf32>
    %184 = arith.addf %183, %182 : vector<2x64xf32>
    %185 = arith.divf %183, %184 : vector<2x64xf32>
    %186 = vector.extract_strided_slice %185 {offsets = [0, 0], sizes = [2, 32], strides = [1, 1]} : vector<2x64xf32> to vector<2x32xf32>
    %187 = vector.extract_strided_slice %185 {offsets = [0, 32], sizes = [2, 32], strides = [1, 1]} : vector<2x64xf32> to vector<2x32xf32>
    %188 = vector.extract_strided_slice %175 {offsets = [0, 64], sizes = [2, 32], strides = [1, 1]} : vector<2x96xf32> to vector<2x32xf32>
    %189 = vector.extract_strided_slice %177 {offsets = [0, 64], sizes = [2, 32], strides = [1, 1]} : vector<2x96xf32> to vector<2x32xf32>
    %190 = vector.broadcast %12 : vector<1x32xf32> to vector<2x32xf32>
    %191 = arith.addf %189, %190 : vector<2x32xf32>
    %192 = arith.mulf %186, %191 : vector<2x32xf32>
    %193 = arith.addf %188, %192 : vector<2x32xf32>
    %194 = math.tanh %193 : vector<2x32xf32>
    %cst_37 = arith.constant 1.000000e+00 : f32
    %195 = vector.broadcast %cst_37 : f32 to vector<2x32xf32>
    %196 = arith.subf %195, %187 : vector<2x32xf32>
    %197 = arith.mulf %196, %194 : vector<2x32xf32>
    %198 = arith.mulf %187, %146 : vector<2x32xf32>
    %199 = arith.addf %197, %198 : vector<2x32xf32>
    %200 = arith.truncf %199 : vector<2x32xf32> to vector<2x32xbf16>
    %cst_38 = arith.constant dense<0.000000e+00> : vector<2x96xf32>
    %201 = tpu.matmul %200, %10, %cst_38 {dimension_numbers = #tpu.dot_dimension_numbers<[1], [0], [0], [1], [0, 0, 1, 1], [], []>} : vector<2x32xbf16>, vector<32x96xbf16>, vector<2x96xf32> -> vector<2x96xf32>
    %202 = vector.broadcast %11 : vector<1x96xf32> to vector<2x96xf32>
    %203 = arith.addf %201, %202 : vector<2x96xf32>
    %204 = arith.truncf %174 : vector<2x32xf32> to vector<2x32xbf16>
    %cst_39 = arith.constant dense<0.000000e+00> : vector<2x96xf32>
    %205 = tpu.matmul %204, %9, %cst_39 {dimension_numbers = #tpu.dot_dimension_numbers<[1], [0], [0], [1], [0, 0, 1, 1], [], []>} : vector<2x32xbf16>, vector<32x96xbf16>, vector<2x96xf32> -> vector<2x96xf32>
    %206 = vector.extract_strided_slice %203 {offsets = [0, 0], sizes = [2, 64], strides = [1, 1]} : vector<2x96xf32> to vector<2x64xf32>
    %207 = vector.extract_strided_slice %205 {offsets = [0, 0], sizes = [2, 64], strides = [1, 1]} : vector<2x96xf32> to vector<2x64xf32>
    %208 = arith.addf %206, %207 : vector<2x64xf32>
    %209 = arith.negf %208 : vector<2x64xf32>
    %210 = math.exp %209 : vector<2x64xf32>
    %cst_40 = arith.constant 1.000000e+00 : f32
    %211 = vector.broadcast %cst_40 : f32 to vector<2x64xf32>
    %212 = arith.addf %211, %210 : vector<2x64xf32>
    %213 = arith.divf %211, %212 : vector<2x64xf32>
    %214 = vector.extract_strided_slice %213 {offsets = [0, 0], sizes = [2, 32], strides = [1, 1]} : vector<2x64xf32> to vector<2x32xf32>
    %215 = vector.extract_strided_slice %213 {offsets = [0, 32], sizes = [2, 32], strides = [1, 1]} : vector<2x64xf32> to vector<2x32xf32>
    %216 = vector.extract_strided_slice %203 {offsets = [0, 64], sizes = [2, 32], strides = [1, 1]} : vector<2x96xf32> to vector<2x32xf32>
    %217 = vector.extract_strided_slice %205 {offsets = [0, 64], sizes = [2, 32], strides = [1, 1]} : vector<2x96xf32> to vector<2x32xf32>
    %218 = vector.broadcast %13 : vector<1x32xf32> to vector<2x32xf32>
    %219 = arith.addf %217, %218 : vector<2x32xf32>
    %220 = arith.mulf %214, %219 : vector<2x32xf32>
    %221 = arith.addf %216, %220 : vector<2x32xf32>
    %222 = math.tanh %221 : vector<2x32xf32>
    %cst_41 = arith.constant 1.000000e+00 : f32
    %223 = vector.broadcast %cst_41 : f32 to vector<2x32xf32>
    %224 = arith.subf %223, %215 : vector<2x32xf32>
    %225 = arith.mulf %224, %222 : vector<2x32xf32>
    %226 = arith.mulf %215, %174 : vector<2x32xf32>
    %227 = arith.addf %225, %226 : vector<2x32xf32>
    %228 = vector.extract_strided_slice %7 {offsets = [8, 0], sizes = [2, 96], strides = [1, 1]} : vector<16x96xf32> to vector<2x96xf32>
    %229 = arith.truncf %199 : vector<2x32xf32> to vector<2x32xbf16>
    %cst_42 = arith.constant dense<0.000000e+00> : vector<2x96xf32>
    %230 = tpu.matmul %229, %8, %cst_42 {dimension_numbers = #tpu.dot_dimension_numbers<[1], [0], [0], [1], [0, 0, 1, 1], [], []>} : vector<2x32xbf16>, vector<32x96xbf16>, vector<2x96xf32> -> vector<2x96xf32>
    %231 = vector.extract_strided_slice %228 {offsets = [0, 0], sizes = [2, 64], strides = [1, 1]} : vector<2x96xf32> to vector<2x64xf32>
    %232 = vector.extract_strided_slice %230 {offsets = [0, 0], sizes = [2, 64], strides = [1, 1]} : vector<2x96xf32> to vector<2x64xf32>
    %233 = arith.addf %231, %232 : vector<2x64xf32>
    %234 = arith.negf %233 : vector<2x64xf32>
    %235 = math.exp %234 : vector<2x64xf32>
    %cst_43 = arith.constant 1.000000e+00 : f32
    %236 = vector.broadcast %cst_43 : f32 to vector<2x64xf32>
    %237 = arith.addf %236, %235 : vector<2x64xf32>
    %238 = arith.divf %236, %237 : vector<2x64xf32>
    %239 = vector.extract_strided_slice %238 {offsets = [0, 0], sizes = [2, 32], strides = [1, 1]} : vector<2x64xf32> to vector<2x32xf32>
    %240 = vector.extract_strided_slice %238 {offsets = [0, 32], sizes = [2, 32], strides = [1, 1]} : vector<2x64xf32> to vector<2x32xf32>
    %241 = vector.extract_strided_slice %228 {offsets = [0, 64], sizes = [2, 32], strides = [1, 1]} : vector<2x96xf32> to vector<2x32xf32>
    %242 = vector.extract_strided_slice %230 {offsets = [0, 64], sizes = [2, 32], strides = [1, 1]} : vector<2x96xf32> to vector<2x32xf32>
    %243 = vector.broadcast %12 : vector<1x32xf32> to vector<2x32xf32>
    %244 = arith.addf %242, %243 : vector<2x32xf32>
    %245 = arith.mulf %239, %244 : vector<2x32xf32>
    %246 = arith.addf %241, %245 : vector<2x32xf32>
    %247 = math.tanh %246 : vector<2x32xf32>
    %cst_44 = arith.constant 1.000000e+00 : f32
    %248 = vector.broadcast %cst_44 : f32 to vector<2x32xf32>
    %249 = arith.subf %248, %240 : vector<2x32xf32>
    %250 = arith.mulf %249, %247 : vector<2x32xf32>
    %251 = arith.mulf %240, %199 : vector<2x32xf32>
    %252 = arith.addf %250, %251 : vector<2x32xf32>
    %253 = arith.truncf %252 : vector<2x32xf32> to vector<2x32xbf16>
    %cst_45 = arith.constant dense<0.000000e+00> : vector<2x96xf32>
    %254 = tpu.matmul %253, %10, %cst_45 {dimension_numbers = #tpu.dot_dimension_numbers<[1], [0], [0], [1], [0, 0, 1, 1], [], []>} : vector<2x32xbf16>, vector<32x96xbf16>, vector<2x96xf32> -> vector<2x96xf32>
    %255 = vector.broadcast %11 : vector<1x96xf32> to vector<2x96xf32>
    %256 = arith.addf %254, %255 : vector<2x96xf32>
    %257 = arith.truncf %227 : vector<2x32xf32> to vector<2x32xbf16>
    %cst_46 = arith.constant dense<0.000000e+00> : vector<2x96xf32>
    %258 = tpu.matmul %257, %9, %cst_46 {dimension_numbers = #tpu.dot_dimension_numbers<[1], [0], [0], [1], [0, 0, 1, 1], [], []>} : vector<2x32xbf16>, vector<32x96xbf16>, vector<2x96xf32> -> vector<2x96xf32>
    %259 = vector.extract_strided_slice %256 {offsets = [0, 0], sizes = [2, 64], strides = [1, 1]} : vector<2x96xf32> to vector<2x64xf32>
    %260 = vector.extract_strided_slice %258 {offsets = [0, 0], sizes = [2, 64], strides = [1, 1]} : vector<2x96xf32> to vector<2x64xf32>
    %261 = arith.addf %259, %260 : vector<2x64xf32>
    %262 = arith.negf %261 : vector<2x64xf32>
    %263 = math.exp %262 : vector<2x64xf32>
    %cst_47 = arith.constant 1.000000e+00 : f32
    %264 = vector.broadcast %cst_47 : f32 to vector<2x64xf32>
    %265 = arith.addf %264, %263 : vector<2x64xf32>
    %266 = arith.divf %264, %265 : vector<2x64xf32>
    %267 = vector.extract_strided_slice %266 {offsets = [0, 0], sizes = [2, 32], strides = [1, 1]} : vector<2x64xf32> to vector<2x32xf32>
    %268 = vector.extract_strided_slice %266 {offsets = [0, 32], sizes = [2, 32], strides = [1, 1]} : vector<2x64xf32> to vector<2x32xf32>
    %269 = vector.extract_strided_slice %256 {offsets = [0, 64], sizes = [2, 32], strides = [1, 1]} : vector<2x96xf32> to vector<2x32xf32>
    %270 = vector.extract_strided_slice %258 {offsets = [0, 64], sizes = [2, 32], strides = [1, 1]} : vector<2x96xf32> to vector<2x32xf32>
    %271 = vector.broadcast %13 : vector<1x32xf32> to vector<2x32xf32>
    %272 = arith.addf %270, %271 : vector<2x32xf32>
    %273 = arith.mulf %267, %272 : vector<2x32xf32>
    %274 = arith.addf %269, %273 : vector<2x32xf32>
    %275 = math.tanh %274 : vector<2x32xf32>
    %cst_48 = arith.constant 1.000000e+00 : f32
    %276 = vector.broadcast %cst_48 : f32 to vector<2x32xf32>
    %277 = arith.subf %276, %268 : vector<2x32xf32>
    %278 = arith.mulf %277, %275 : vector<2x32xf32>
    %279 = arith.mulf %268, %227 : vector<2x32xf32>
    %280 = arith.addf %278, %279 : vector<2x32xf32>
    %281 = vector.extract_strided_slice %7 {offsets = [10, 0], sizes = [2, 96], strides = [1, 1]} : vector<16x96xf32> to vector<2x96xf32>
    %282 = arith.truncf %252 : vector<2x32xf32> to vector<2x32xbf16>
    %cst_49 = arith.constant dense<0.000000e+00> : vector<2x96xf32>
    %283 = tpu.matmul %282, %8, %cst_49 {dimension_numbers = #tpu.dot_dimension_numbers<[1], [0], [0], [1], [0, 0, 1, 1], [], []>} : vector<2x32xbf16>, vector<32x96xbf16>, vector<2x96xf32> -> vector<2x96xf32>
    %284 = vector.extract_strided_slice %281 {offsets = [0, 0], sizes = [2, 64], strides = [1, 1]} : vector<2x96xf32> to vector<2x64xf32>
    %285 = vector.extract_strided_slice %283 {offsets = [0, 0], sizes = [2, 64], strides = [1, 1]} : vector<2x96xf32> to vector<2x64xf32>
    %286 = arith.addf %284, %285 : vector<2x64xf32>
    %287 = arith.negf %286 : vector<2x64xf32>
    %288 = math.exp %287 : vector<2x64xf32>
    %cst_50 = arith.constant 1.000000e+00 : f32
    %289 = vector.broadcast %cst_50 : f32 to vector<2x64xf32>
    %290 = arith.addf %289, %288 : vector<2x64xf32>
    %291 = arith.divf %289, %290 : vector<2x64xf32>
    %292 = vector.extract_strided_slice %291 {offsets = [0, 0], sizes = [2, 32], strides = [1, 1]} : vector<2x64xf32> to vector<2x32xf32>
    %293 = vector.extract_strided_slice %291 {offsets = [0, 32], sizes = [2, 32], strides = [1, 1]} : vector<2x64xf32> to vector<2x32xf32>
    %294 = vector.extract_strided_slice %281 {offsets = [0, 64], sizes = [2, 32], strides = [1, 1]} : vector<2x96xf32> to vector<2x32xf32>
    %295 = vector.extract_strided_slice %283 {offsets = [0, 64], sizes = [2, 32], strides = [1, 1]} : vector<2x96xf32> to vector<2x32xf32>
    %296 = vector.broadcast %12 : vector<1x32xf32> to vector<2x32xf32>
    %297 = arith.addf %295, %296 : vector<2x32xf32>
    %298 = arith.mulf %292, %297 : vector<2x32xf32>
    %299 = arith.addf %294, %298 : vector<2x32xf32>
    %300 = math.tanh %299 : vector<2x32xf32>
    %cst_51 = arith.constant 1.000000e+00 : f32
    %301 = vector.broadcast %cst_51 : f32 to vector<2x32xf32>
    %302 = arith.subf %301, %293 : vector<2x32xf32>
    %303 = arith.mulf %302, %300 : vector<2x32xf32>
    %304 = arith.mulf %293, %252 : vector<2x32xf32>
    %305 = arith.addf %303, %304 : vector<2x32xf32>
    %306 = arith.truncf %305 : vector<2x32xf32> to vector<2x32xbf16>
    %cst_52 = arith.constant dense<0.000000e+00> : vector<2x96xf32>
    %307 = tpu.matmul %306, %10, %cst_52 {dimension_numbers = #tpu.dot_dimension_numbers<[1], [0], [0], [1], [0, 0, 1, 1], [], []>} : vector<2x32xbf16>, vector<32x96xbf16>, vector<2x96xf32> -> vector<2x96xf32>
    %308 = vector.broadcast %11 : vector<1x96xf32> to vector<2x96xf32>
    %309 = arith.addf %307, %308 : vector<2x96xf32>
    %310 = arith.truncf %280 : vector<2x32xf32> to vector<2x32xbf16>
    %cst_53 = arith.constant dense<0.000000e+00> : vector<2x96xf32>
    %311 = tpu.matmul %310, %9, %cst_53 {dimension_numbers = #tpu.dot_dimension_numbers<[1], [0], [0], [1], [0, 0, 1, 1], [], []>} : vector<2x32xbf16>, vector<32x96xbf16>, vector<2x96xf32> -> vector<2x96xf32>
    %312 = vector.extract_strided_slice %309 {offsets = [0, 0], sizes = [2, 64], strides = [1, 1]} : vector<2x96xf32> to vector<2x64xf32>
    %313 = vector.extract_strided_slice %311 {offsets = [0, 0], sizes = [2, 64], strides = [1, 1]} : vector<2x96xf32> to vector<2x64xf32>
    %314 = arith.addf %312, %313 : vector<2x64xf32>
    %315 = arith.negf %314 : vector<2x64xf32>
    %316 = math.exp %315 : vector<2x64xf32>
    %cst_54 = arith.constant 1.000000e+00 : f32
    %317 = vector.broadcast %cst_54 : f32 to vector<2x64xf32>
    %318 = arith.addf %317, %316 : vector<2x64xf32>
    %319 = arith.divf %317, %318 : vector<2x64xf32>
    %320 = vector.extract_strided_slice %319 {offsets = [0, 0], sizes = [2, 32], strides = [1, 1]} : vector<2x64xf32> to vector<2x32xf32>
    %321 = vector.extract_strided_slice %319 {offsets = [0, 32], sizes = [2, 32], strides = [1, 1]} : vector<2x64xf32> to vector<2x32xf32>
    %322 = vector.extract_strided_slice %309 {offsets = [0, 64], sizes = [2, 32], strides = [1, 1]} : vector<2x96xf32> to vector<2x32xf32>
    %323 = vector.extract_strided_slice %311 {offsets = [0, 64], sizes = [2, 32], strides = [1, 1]} : vector<2x96xf32> to vector<2x32xf32>
    %324 = vector.broadcast %13 : vector<1x32xf32> to vector<2x32xf32>
    %325 = arith.addf %323, %324 : vector<2x32xf32>
    %326 = arith.mulf %320, %325 : vector<2x32xf32>
    %327 = arith.addf %322, %326 : vector<2x32xf32>
    %328 = math.tanh %327 : vector<2x32xf32>
    %cst_55 = arith.constant 1.000000e+00 : f32
    %329 = vector.broadcast %cst_55 : f32 to vector<2x32xf32>
    %330 = arith.subf %329, %321 : vector<2x32xf32>
    %331 = arith.mulf %330, %328 : vector<2x32xf32>
    %332 = arith.mulf %321, %280 : vector<2x32xf32>
    %333 = arith.addf %331, %332 : vector<2x32xf32>
    %334 = vector.extract_strided_slice %7 {offsets = [12, 0], sizes = [2, 96], strides = [1, 1]} : vector<16x96xf32> to vector<2x96xf32>
    %335 = arith.truncf %305 : vector<2x32xf32> to vector<2x32xbf16>
    %cst_56 = arith.constant dense<0.000000e+00> : vector<2x96xf32>
    %336 = tpu.matmul %335, %8, %cst_56 {dimension_numbers = #tpu.dot_dimension_numbers<[1], [0], [0], [1], [0, 0, 1, 1], [], []>} : vector<2x32xbf16>, vector<32x96xbf16>, vector<2x96xf32> -> vector<2x96xf32>
    %337 = vector.extract_strided_slice %334 {offsets = [0, 0], sizes = [2, 64], strides = [1, 1]} : vector<2x96xf32> to vector<2x64xf32>
    %338 = vector.extract_strided_slice %336 {offsets = [0, 0], sizes = [2, 64], strides = [1, 1]} : vector<2x96xf32> to vector<2x64xf32>
    %339 = arith.addf %337, %338 : vector<2x64xf32>
    %340 = arith.negf %339 : vector<2x64xf32>
    %341 = math.exp %340 : vector<2x64xf32>
    %cst_57 = arith.constant 1.000000e+00 : f32
    %342 = vector.broadcast %cst_57 : f32 to vector<2x64xf32>
    %343 = arith.addf %342, %341 : vector<2x64xf32>
    %344 = arith.divf %342, %343 : vector<2x64xf32>
    %345 = vector.extract_strided_slice %344 {offsets = [0, 0], sizes = [2, 32], strides = [1, 1]} : vector<2x64xf32> to vector<2x32xf32>
    %346 = vector.extract_strided_slice %344 {offsets = [0, 32], sizes = [2, 32], strides = [1, 1]} : vector<2x64xf32> to vector<2x32xf32>
    %347 = vector.extract_strided_slice %334 {offsets = [0, 64], sizes = [2, 32], strides = [1, 1]} : vector<2x96xf32> to vector<2x32xf32>
    %348 = vector.extract_strided_slice %336 {offsets = [0, 64], sizes = [2, 32], strides = [1, 1]} : vector<2x96xf32> to vector<2x32xf32>
    %349 = vector.broadcast %12 : vector<1x32xf32> to vector<2x32xf32>
    %350 = arith.addf %348, %349 : vector<2x32xf32>
    %351 = arith.mulf %345, %350 : vector<2x32xf32>
    %352 = arith.addf %347, %351 : vector<2x32xf32>
    %353 = math.tanh %352 : vector<2x32xf32>
    %cst_58 = arith.constant 1.000000e+00 : f32
    %354 = vector.broadcast %cst_58 : f32 to vector<2x32xf32>
    %355 = arith.subf %354, %346 : vector<2x32xf32>
    %356 = arith.mulf %355, %353 : vector<2x32xf32>
    %357 = arith.mulf %346, %305 : vector<2x32xf32>
    %358 = arith.addf %356, %357 : vector<2x32xf32>
    %359 = arith.truncf %358 : vector<2x32xf32> to vector<2x32xbf16>
    %cst_59 = arith.constant dense<0.000000e+00> : vector<2x96xf32>
    %360 = tpu.matmul %359, %10, %cst_59 {dimension_numbers = #tpu.dot_dimension_numbers<[1], [0], [0], [1], [0, 0, 1, 1], [], []>} : vector<2x32xbf16>, vector<32x96xbf16>, vector<2x96xf32> -> vector<2x96xf32>
    %361 = vector.broadcast %11 : vector<1x96xf32> to vector<2x96xf32>
    %362 = arith.addf %360, %361 : vector<2x96xf32>
    %363 = arith.truncf %333 : vector<2x32xf32> to vector<2x32xbf16>
    %cst_60 = arith.constant dense<0.000000e+00> : vector<2x96xf32>
    %364 = tpu.matmul %363, %9, %cst_60 {dimension_numbers = #tpu.dot_dimension_numbers<[1], [0], [0], [1], [0, 0, 1, 1], [], []>} : vector<2x32xbf16>, vector<32x96xbf16>, vector<2x96xf32> -> vector<2x96xf32>
    %365 = vector.extract_strided_slice %362 {offsets = [0, 0], sizes = [2, 64], strides = [1, 1]} : vector<2x96xf32> to vector<2x64xf32>
    %366 = vector.extract_strided_slice %364 {offsets = [0, 0], sizes = [2, 64], strides = [1, 1]} : vector<2x96xf32> to vector<2x64xf32>
    %367 = arith.addf %365, %366 : vector<2x64xf32>
    %368 = arith.negf %367 : vector<2x64xf32>
    %369 = math.exp %368 : vector<2x64xf32>
    %cst_61 = arith.constant 1.000000e+00 : f32
    %370 = vector.broadcast %cst_61 : f32 to vector<2x64xf32>
    %371 = arith.addf %370, %369 : vector<2x64xf32>
    %372 = arith.divf %370, %371 : vector<2x64xf32>
    %373 = vector.extract_strided_slice %372 {offsets = [0, 0], sizes = [2, 32], strides = [1, 1]} : vector<2x64xf32> to vector<2x32xf32>
    %374 = vector.extract_strided_slice %372 {offsets = [0, 32], sizes = [2, 32], strides = [1, 1]} : vector<2x64xf32> to vector<2x32xf32>
    %375 = vector.extract_strided_slice %362 {offsets = [0, 64], sizes = [2, 32], strides = [1, 1]} : vector<2x96xf32> to vector<2x32xf32>
    %376 = vector.extract_strided_slice %364 {offsets = [0, 64], sizes = [2, 32], strides = [1, 1]} : vector<2x96xf32> to vector<2x32xf32>
    %377 = vector.broadcast %13 : vector<1x32xf32> to vector<2x32xf32>
    %378 = arith.addf %376, %377 : vector<2x32xf32>
    %379 = arith.mulf %373, %378 : vector<2x32xf32>
    %380 = arith.addf %375, %379 : vector<2x32xf32>
    %381 = math.tanh %380 : vector<2x32xf32>
    %cst_62 = arith.constant 1.000000e+00 : f32
    %382 = vector.broadcast %cst_62 : f32 to vector<2x32xf32>
    %383 = arith.subf %382, %374 : vector<2x32xf32>
    %384 = arith.mulf %383, %381 : vector<2x32xf32>
    %385 = arith.mulf %374, %333 : vector<2x32xf32>
    %386 = arith.addf %384, %385 : vector<2x32xf32>
    %387 = vector.extract_strided_slice %7 {offsets = [14, 0], sizes = [2, 96], strides = [1, 1]} : vector<16x96xf32> to vector<2x96xf32>
    %388 = arith.truncf %358 : vector<2x32xf32> to vector<2x32xbf16>
    %cst_63 = arith.constant dense<0.000000e+00> : vector<2x96xf32>
    %389 = tpu.matmul %388, %8, %cst_63 {dimension_numbers = #tpu.dot_dimension_numbers<[1], [0], [0], [1], [0, 0, 1, 1], [], []>} : vector<2x32xbf16>, vector<32x96xbf16>, vector<2x96xf32> -> vector<2x96xf32>
    %390 = vector.extract_strided_slice %387 {offsets = [0, 0], sizes = [2, 64], strides = [1, 1]} : vector<2x96xf32> to vector<2x64xf32>
    %391 = vector.extract_strided_slice %389 {offsets = [0, 0], sizes = [2, 64], strides = [1, 1]} : vector<2x96xf32> to vector<2x64xf32>
    %392 = arith.addf %390, %391 : vector<2x64xf32>
    %393 = arith.negf %392 : vector<2x64xf32>
    %394 = math.exp %393 : vector<2x64xf32>
    %cst_64 = arith.constant 1.000000e+00 : f32
    %395 = vector.broadcast %cst_64 : f32 to vector<2x64xf32>
    %396 = arith.addf %395, %394 : vector<2x64xf32>
    %397 = arith.divf %395, %396 : vector<2x64xf32>
    %398 = vector.extract_strided_slice %397 {offsets = [0, 0], sizes = [2, 32], strides = [1, 1]} : vector<2x64xf32> to vector<2x32xf32>
    %399 = vector.extract_strided_slice %397 {offsets = [0, 32], sizes = [2, 32], strides = [1, 1]} : vector<2x64xf32> to vector<2x32xf32>
    %400 = vector.extract_strided_slice %387 {offsets = [0, 64], sizes = [2, 32], strides = [1, 1]} : vector<2x96xf32> to vector<2x32xf32>
    %401 = vector.extract_strided_slice %389 {offsets = [0, 64], sizes = [2, 32], strides = [1, 1]} : vector<2x96xf32> to vector<2x32xf32>
    %402 = vector.broadcast %12 : vector<1x32xf32> to vector<2x32xf32>
    %403 = arith.addf %401, %402 : vector<2x32xf32>
    %404 = arith.mulf %398, %403 : vector<2x32xf32>
    %405 = arith.addf %400, %404 : vector<2x32xf32>
    %406 = math.tanh %405 : vector<2x32xf32>
    %cst_65 = arith.constant 1.000000e+00 : f32
    %407 = vector.broadcast %cst_65 : f32 to vector<2x32xf32>
    %408 = arith.subf %407, %399 : vector<2x32xf32>
    %409 = arith.mulf %408, %406 : vector<2x32xf32>
    %410 = arith.mulf %399, %358 : vector<2x32xf32>
    %411 = arith.addf %409, %410 : vector<2x32xf32>
    %412 = arith.truncf %411 : vector<2x32xf32> to vector<2x32xbf16>
    %cst_66 = arith.constant dense<0.000000e+00> : vector<2x96xf32>
    %413 = tpu.matmul %412, %10, %cst_66 {dimension_numbers = #tpu.dot_dimension_numbers<[1], [0], [0], [1], [0, 0, 1, 1], [], []>} : vector<2x32xbf16>, vector<32x96xbf16>, vector<2x96xf32> -> vector<2x96xf32>
    %414 = vector.broadcast %11 : vector<1x96xf32> to vector<2x96xf32>
    %415 = arith.addf %413, %414 : vector<2x96xf32>
    %416 = arith.truncf %386 : vector<2x32xf32> to vector<2x32xbf16>
    %cst_67 = arith.constant dense<0.000000e+00> : vector<2x96xf32>
    %417 = tpu.matmul %416, %9, %cst_67 {dimension_numbers = #tpu.dot_dimension_numbers<[1], [0], [0], [1], [0, 0, 1, 1], [], []>} : vector<2x32xbf16>, vector<32x96xbf16>, vector<2x96xf32> -> vector<2x96xf32>
    %418 = vector.extract_strided_slice %415 {offsets = [0, 0], sizes = [2, 64], strides = [1, 1]} : vector<2x96xf32> to vector<2x64xf32>
    %419 = vector.extract_strided_slice %417 {offsets = [0, 0], sizes = [2, 64], strides = [1, 1]} : vector<2x96xf32> to vector<2x64xf32>
    %420 = arith.addf %418, %419 : vector<2x64xf32>
    %421 = arith.negf %420 : vector<2x64xf32>
    %422 = math.exp %421 : vector<2x64xf32>
    %cst_68 = arith.constant 1.000000e+00 : f32
    %423 = vector.broadcast %cst_68 : f32 to vector<2x64xf32>
    %424 = arith.addf %423, %422 : vector<2x64xf32>
    %425 = arith.divf %423, %424 : vector<2x64xf32>
    %426 = vector.extract_strided_slice %425 {offsets = [0, 0], sizes = [2, 32], strides = [1, 1]} : vector<2x64xf32> to vector<2x32xf32>
    %427 = vector.extract_strided_slice %425 {offsets = [0, 32], sizes = [2, 32], strides = [1, 1]} : vector<2x64xf32> to vector<2x32xf32>
    %428 = vector.extract_strided_slice %415 {offsets = [0, 64], sizes = [2, 32], strides = [1, 1]} : vector<2x96xf32> to vector<2x32xf32>
    %429 = vector.extract_strided_slice %417 {offsets = [0, 64], sizes = [2, 32], strides = [1, 1]} : vector<2x96xf32> to vector<2x32xf32>
    %430 = vector.broadcast %13 : vector<1x32xf32> to vector<2x32xf32>
    %431 = arith.addf %429, %430 : vector<2x32xf32>
    %432 = arith.mulf %426, %431 : vector<2x32xf32>
    %433 = arith.addf %428, %432 : vector<2x32xf32>
    %434 = math.tanh %433 : vector<2x32xf32>
    %cst_69 = arith.constant 1.000000e+00 : f32
    %435 = vector.broadcast %cst_69 : f32 to vector<2x32xf32>
    %436 = arith.subf %435, %427 : vector<2x32xf32>
    %437 = arith.mulf %436, %434 : vector<2x32xf32>
    %438 = arith.mulf %427, %386 : vector<2x32xf32>
    %439 = arith.addf %437, %438 : vector<2x32xf32>
    %440 = tpu.concatenate %68, %121, %174, %227, %280, %333, %386, %439 in 0 : vector<2x32xf32>, vector<2x32xf32>, vector<2x32xf32>, vector<2x32xf32>, vector<2x32xf32>, vector<2x32xf32>, vector<2x32xf32>, vector<2x32xf32> -> vector<16x32xf32>
    %cst_70 = arith.constant 0.000000e+00 : f32
    %441 = vector.broadcast %cst_70 : f32 to vector<16x128xf32>
    %442 = arith.truncf %440 : vector<16x32xf32> to vector<16x32xbf16>
    %c224 = arith.constant 224 : index
    %c0_71 = arith.constant 0 : index
    %443 = vector.load %arg1[%c224, %c0_71] : memref<1600x384xbf16, #tpu.memory_space<vmem>>, vector<32x384xbf16>
    %cst_72 = arith.constant dense<0.000000e+00> : vector<16x384xf32>
    %444 = tpu.matmul %442, %443, %cst_72 {dimension_numbers = #tpu.dot_dimension_numbers<[1], [0], [0], [1], [0, 0, 1, 1], [], []>} : vector<16x32xbf16>, vector<32x384xbf16>, vector<16x384xf32> -> vector<16x384xf32>
    %c4 = arith.constant 4 : index
    %c0_73 = arith.constant 0 : index
    %445 = vector.load %arg2[%c4, %c0_73] : memref<10x384xf32, #tpu.memory_space<vmem>>, vector<1x384xf32>
    %446 = vector.broadcast %445 : vector<1x384xf32> to vector<16x384xf32>
    %447 = arith.addf %444, %446 : vector<16x384xf32>
    %cst_74 = arith.constant 0.000000e+00 : f32
    %448 = vector.broadcast %cst_74 : f32 to vector<16x384xf32>
    %449 = arith.maximumf %447, %448 : vector<16x384xf32>
    %450 = arith.truncf %449 : vector<16x384xf32> to vector<16x384xbf16>
    %c256 = arith.constant 256 : index
    %c0_75 = arith.constant 0 : index
    %451 = vector.load %arg1[%c256, %c0_75] : memref<1600x384xbf16, #tpu.memory_space<vmem>>, vector<384x128xbf16>
    %cst_76 = arith.constant dense<0.000000e+00> : vector<16x128xf32>
    %452 = tpu.matmul %450, %451, %cst_76 {dimension_numbers = #tpu.dot_dimension_numbers<[1], [0], [0], [1], [0, 0, 1, 1], [], []>} : vector<16x384xbf16>, vector<384x128xbf16>, vector<16x128xf32> -> vector<16x128xf32>
    %453 = arith.addf %441, %452 : vector<16x128xf32>
    %454 = arith.truncf %440 : vector<16x32xf32> to vector<16x32xbf16>
    %c640 = arith.constant 640 : index
    %c0_77 = arith.constant 0 : index
    %455 = vector.load %arg1[%c640, %c0_77] : memref<1600x384xbf16, #tpu.memory_space<vmem>>, vector<32x384xbf16>
    %cst_78 = arith.constant dense<0.000000e+00> : vector<16x384xf32>
    %456 = tpu.matmul %454, %455, %cst_78 {dimension_numbers = #tpu.dot_dimension_numbers<[1], [0], [0], [1], [0, 0, 1, 1], [], []>} : vector<16x32xbf16>, vector<32x384xbf16>, vector<16x384xf32> -> vector<16x384xf32>
    %c5 = arith.constant 5 : index
    %c0_79 = arith.constant 0 : index
    %457 = vector.load %arg2[%c5, %c0_79] : memref<10x384xf32, #tpu.memory_space<vmem>>, vector<1x384xf32>
    %458 = vector.broadcast %457 : vector<1x384xf32> to vector<16x384xf32>
    %459 = arith.addf %456, %458 : vector<16x384xf32>
    %cst_80 = arith.constant 0.000000e+00 : f32
    %460 = vector.broadcast %cst_80 : f32 to vector<16x384xf32>
    %461 = arith.maximumf %459, %460 : vector<16x384xf32>
    %462 = arith.truncf %461 : vector<16x384xf32> to vector<16x384xbf16>
    %c672 = arith.constant 672 : index
    %c0_81 = arith.constant 0 : index
    %463 = vector.load %arg1[%c672, %c0_81] : memref<1600x384xbf16, #tpu.memory_space<vmem>>, vector<384x128xbf16>
    %cst_82 = arith.constant dense<0.000000e+00> : vector<16x128xf32>
    %464 = tpu.matmul %462, %463, %cst_82 {dimension_numbers = #tpu.dot_dimension_numbers<[1], [0], [0], [1], [0, 0, 1, 1], [], []>} : vector<16x384xbf16>, vector<384x128xbf16>, vector<16x128xf32> -> vector<16x128xf32>
    %465 = arith.addf %453, %464 : vector<16x128xf32>
    %466 = arith.truncf %440 : vector<16x32xf32> to vector<16x32xbf16>
    %c1056 = arith.constant 1056 : index
    %c0_83 = arith.constant 0 : index
    %467 = vector.load %arg1[%c1056, %c0_83] : memref<1600x384xbf16, #tpu.memory_space<vmem>>, vector<32x256xbf16>
    %cst_84 = arith.constant dense<0.000000e+00> : vector<16x256xf32>
    %468 = tpu.matmul %466, %467, %cst_84 {dimension_numbers = #tpu.dot_dimension_numbers<[1], [0], [0], [1], [0, 0, 1, 1], [], []>} : vector<16x32xbf16>, vector<32x256xbf16>, vector<16x256xf32> -> vector<16x256xf32>
    %c6 = arith.constant 6 : index
    %c0_85 = arith.constant 0 : index
    %469 = vector.load %arg2[%c6, %c0_85] : memref<10x384xf32, #tpu.memory_space<vmem>>, vector<1x256xf32>
    %470 = vector.broadcast %469 : vector<1x256xf32> to vector<16x256xf32>
    %471 = arith.addf %468, %470 : vector<16x256xf32>
    %cst_86 = arith.constant 0.000000e+00 : f32
    %472 = vector.broadcast %cst_86 : f32 to vector<16x256xf32>
    %473 = arith.maximumf %471, %472 : vector<16x256xf32>
    %474 = arith.truncf %473 : vector<16x256xf32> to vector<16x256xbf16>
    %c1088 = arith.constant 1088 : index
    %c0_87 = arith.constant 0 : index
    %475 = vector.load %arg1[%c1088, %c0_87] : memref<1600x384xbf16, #tpu.memory_space<vmem>>, vector<256x128xbf16>
    %cst_88 = arith.constant dense<0.000000e+00> : vector<16x128xf32>
    %476 = tpu.matmul %474, %475, %cst_88 {dimension_numbers = #tpu.dot_dimension_numbers<[1], [0], [0], [1], [0, 0, 1, 1], [], []>} : vector<16x256xbf16>, vector<256x128xbf16>, vector<16x128xf32> -> vector<16x128xf32>
    %c7 = arith.constant 7 : index
    %c0_89 = arith.constant 0 : index
    %477 = vector.load %arg2[%c7, %c0_89] : memref<10x384xf32, #tpu.memory_space<vmem>>, vector<1x128xf32>
    %478 = vector.broadcast %477 : vector<1x128xf32> to vector<16x128xf32>
    %479 = arith.addf %476, %478 : vector<16x128xf32>
    %cst_90 = arith.constant 0.000000e+00 : f32
    %480 = vector.broadcast %cst_90 : f32 to vector<16x128xf32>
    %481 = arith.maximumf %479, %480 : vector<16x128xf32>
    %482 = arith.truncf %481 : vector<16x128xf32> to vector<16x128xbf16>
    %c1344 = arith.constant 1344 : index
    %c0_91 = arith.constant 0 : index
    %483 = vector.load %arg1[%c1344, %c0_91] : memref<1600x384xbf16, #tpu.memory_space<vmem>>, vector<128x128xbf16>
    %cst_92 = arith.constant dense<0.000000e+00> : vector<16x128xf32>
    %484 = tpu.matmul %482, %483, %cst_92 {dimension_numbers = #tpu.dot_dimension_numbers<[1], [0], [0], [1], [0, 0, 1, 1], [], []>} : vector<16x128xbf16>, vector<128x128xbf16>, vector<16x128xf32> -> vector<16x128xf32>
    %c8 = arith.constant 8 : index
    %c0_93 = arith.constant 0 : index
    %485 = vector.load %arg2[%c8, %c0_93] : memref<10x384xf32, #tpu.memory_space<vmem>>, vector<1x128xf32>
    %486 = vector.broadcast %485 : vector<1x128xf32> to vector<16x128xf32>
    %487 = arith.addf %484, %486 : vector<16x128xf32>
    %cst_94 = arith.constant 0.000000e+00 : f32
    %488 = vector.broadcast %cst_94 : f32 to vector<16x128xf32>
    %489 = arith.maximumf %487, %488 : vector<16x128xf32>
    %490 = arith.truncf %489 : vector<16x128xf32> to vector<16x128xbf16>
    %c1472 = arith.constant 1472 : index
    %c0_95 = arith.constant 0 : index
    %491 = vector.load %arg1[%c1472, %c0_95] : memref<1600x384xbf16, #tpu.memory_space<vmem>>, vector<128x128xbf16>
    %cst_96 = arith.constant dense<0.000000e+00> : vector<16x128xf32>
    %492 = tpu.matmul %490, %491, %cst_96 {dimension_numbers = #tpu.dot_dimension_numbers<[1], [0], [0], [1], [0, 0, 1, 1], [], []>} : vector<16x128xbf16>, vector<128x128xbf16>, vector<16x128xf32> -> vector<16x128xf32>
    %493 = arith.addf %465, %492 : vector<16x128xf32>
    %c9 = arith.constant 9 : index
    %c0_97 = arith.constant 0 : index
    %494 = vector.load %arg2[%c9, %c0_97] : memref<10x384xf32, #tpu.memory_space<vmem>>, vector<1x128xf32>
    %495 = vector.broadcast %494 : vector<1x128xf32> to vector<16x128xf32>
    %496 = arith.addf %493, %495 : vector<16x128xf32>
    %497 = vector.shape_cast %496 : vector<16x128xf32> to vector<8x2x128xf32>
    %c0_98 = arith.constant 0 : index
    %c0_99 = arith.constant 0 : index
    %c0_100 = arith.constant 0 : index
    %498 = vector.load %arg3[%c0_98, %c0_99, %c0_100] : memref<8x2x128xf32, #tpu.memory_space<vmem>>, vector<8x2x128xf32>
    tpu.vector_store %arg3[%c0_98, %c0_99, %c0_100], %497 {strides = array<i32>} : memref<8x2x128xf32, #tpu.memory_space<vmem>>, vector<8x2x128xf32>,
    return
  }
}

</mosaic_0001>

<bundles_post_ra>
// kernel: gru_forward.1
= control target key start
LH: loop header
LB: loop body
LE: loop exit
PB: predicated region body
PF: predicated region fallthrough
CT: control target
= control target key end

     0   :  { %8 = vsyncpa [#allocation3], 0  ;;  %s3593_s0 = inlined_call_operand.vmem [shape: f32[8,2,128], index: 0, kind: input, shape index: {}]   ;;  %s3594_s1 = inlined_call_operand.hbm [shape: bf16[1600,384], index: 1, kind: input, shape index: {}]   ;;  %s3595_s2 = inlined_call_operand.hbm [shape: f32[10,384], index: 2, kind: input, shape index: {}]   ;;  %s3596_s3 = inlined_call_operand.vmem [shape: f32[8,2,128], index: 3, kind: output, shape index: {}]  }
   0x1   :  { %s16_s14 = sshll.u32 %s3594_s1, 4  ;;  %s17_s14 = int_to_ptr.hbm [resolvable:$true] %s16_s14 }
   0x2   :  { %9 = vsyncpa [#allocation5], 0  ;;  %s3207_s15 = smov [#allocation2]   ;;  %s29_s19 = sshll.u32 %s3595_s2, 4  ;;  %s30_s19 = int_to_ptr.hbm [resolvable:$true] %s29_s19 }
   0x3   :  { %s18_s16 = sshll.u32 %s3207_s15, 4  ;;  %s3208_s20 = smov 192   ;;  %s19_s16 = int_to_ptr.vmem [resolvable:$true] %s18_s16 }
   0x4   :  { %s3209_s21 = smov 12   ;;  %s3210_s22 = smov [#allocation4]  }
   0x5   :  { %24 = dma.hbm_to_vmem [thread:$0]  %s17_s14, 38400, %s19_s16, [#allocation3], %s3208_s20, %s3208_s20, %s3209_s21  }
   0x6   :  { %s31_s23 = sshll.u32 %s3210_s22, 4  ;;  %s3211_s24 = smov 384   ;;  %s32_s23 = int_to_ptr.vmem [resolvable:$true] %s31_s23 }
   0x7   :  { %s3212_s25 = smov 24  }
   0x8   :  { %37 = dma.hbm_to_vmem [thread:$0]  %s30_s19, 768, %s32_s23, [#allocation5], %s3211_s24, %s3211_s24, %s3212_s25  }
   0x9   :  { %3203 = dma.done.wait [#allocation3], 38400  }
   0xa   :  { %3204 = vsyncadd [#allocation3], 4294928896 }
   0xb   :  { %3205 = dma.done.wait [#allocation5], 768  }
   0xc   :  { %3206 = vsyncadd [#allocation5], 4294966528  ;;  %v2483_v0 = vld [vmem:[#allocation2 + $0xa8] sm:$0xf]  ;;  %v2946_v1 = vld [vmem:[#allocation2 + $0xb0] sm:$0xf0] }
   0xd   :  { %v2491_v2 = vld [vmem:[#allocation2 + $0xd8] sm:$0xf]  ;;  %v2484_v3 = vor.u32 %v2946_v1, %v2483_v0  ;;  %v2948_v4 = vld [vmem:[#allocation2 + $0xe0] sm:$0xf0]  ;;  %v2479_v5 = vld [vmem:[#allocation2 + $0x90] sm:$0xf] }
   0xe   :  { %v2945_v6 = vld [vmem:[#allocation2 + $0x98] sm:$0xf0]  ;;  %v3242_v7 = vor.u32 %v2948_v4, %v2491_v2  ;;  %v2487_v8 = vld [vmem:[#allocation2 + $0xc0] sm:$0xf]  ;;  %v2947_v9 = vld [vmem:[#allocation2 + $0xc8] sm:$0xf0] }
   0xf   :  { %148 = vmatpush.bf16.msra.mxu0 %v2484_v3  ;;  %v2480_v10 = vor.u32 %v2945_v6, %v2479_v5  ;;  %v3245_v11 = vor.u32 %v2947_v9, %v2487_v8  ;;  %v2475_v12 = vld [vmem:[#allocation2 + $0x78] sm:$0xf]  ;;  %v2944_v13 = vld [vmem:[#allocation2 + $0x80] sm:$0xf0]  ;;  %v175_v14 = vld [vmem:[#allocation4 + $0x1] ss:$0 sm:$0xff] }
  0x10   :  { %199 = vmatpush.bf16.msra.mxu1 %v3242_v7  ;;  %s3213_s1 = smov 64   ;;  %v2476_v15 = vor.u32 %v2944_v13, %v2475_v12  ;;  %v47_v16 = vld [vmem:[%s3593_s0] sm:$0x3]  ;;  %v48_v17 = vld [vmem:[%s3593_s0 + $0x2] sm:$0x3]  ;;  %v3214_v23 = vmov 0  }
  0x11   :  { %227 = vrot.lane.b32.xlu0 %v175_v14, %s3213_s1  ;;  %v2471_v18 = vld [vmem:[#allocation2 + $0x60] sm:$0xf]  ;;  %v2943_v19 = vld [vmem:[#allocation2 + $0x68] sm:$0xf0]  ;;  %v49_v20 = vld [vmem:[%s3593_s0 + $0x4] sm:$0x3] }
  0x12   :  { %v50_v21 = vld [vmem:[%s3593_s0 + $0x6] sm:$0x3]  ;;  %63 = vst [vmem:[#allocation1] ss:$4 sm:$0xff] %v47_v16  ;;  %v51_v22 = vld [vmem:[%s3593_s0 + $0x8] sm:$0x3]  ;;  %v2472_v24 = vor.u32 %v2943_v19, %v2471_v18 }
  0x13   :  { %149 = vmatpush.bf16.msra.mxu0 %v2480_v10  ;;  %65 = vst [vmem:[#allocation1 + $0x1] ss:$4 sm:$0xff] %v48_v17  ;;  %v2467_v25 = vld [vmem:[#allocation2 + $0x48] sm:$0xf]  ;;  %v52_v26 = vld [vmem:[%s3593_s0 + $0xa] sm:$0x3] }
  0x14   :  { %200 = vmatpush.bf16.msra.mxu1 %v3245_v11  ;;  %67 = vst [vmem:[#allocation1 + $0x2] ss:$4 sm:$0xff] %v49_v20  ;;  %v2942_v27 = vld [vmem:[#allocation2 + $0x50] sm:$0xf0]  ;;  %v53_v28 = vld [vmem:[%s3593_s0 + $0xc] sm:$0x3] }
  0x15   :  { %69 = vst [vmem:[#allocation1 + $0x3] ss:$4 sm:$0xff] %v50_v21  ;;  %v54_v29 = vld [vmem:[%s3593_s0 + $0xe] sm:$0x3]  ;;  %v2468_v30 = vor.u32 %v2942_v27, %v2467_v25  ;;  %v2463_v31 = vld [vmem:[#allocation2 + $0x30] sm:$0xf] }
  0x16   :  { %71 = vst [vmem:[#allocation1 + $0x20] ss:$4 sm:$0xff] %v51_v22  ;;  %v2941_v32 = vld [vmem:[#allocation2 + $0x38] sm:$0xf0]  ;;  %v2459_v34 = vld [vmem:[#allocation2 + $0x18] sm:$0xf] }
  0x17   :  { %201 = vmatmul.bf16.vlgmr.msra.gmra.mxu1 %v3214_v23  ;;  %150 = vmatpush.bf16.msra.mxu0 %v2476_v15  ;;  %73 = vst [vmem:[#allocation1 + $0x21] ss:$4 sm:$0xff] %v52_v26  ;;  %v2464_v33 = vor.u32 %v2941_v32, %v2463_v31  ;;  %v2940_v35 = vld [vmem:[#allocation2 + $0x20] sm:$0xf0]  ;;  %v2455_v37 = vld [vmem:[#allocation2] sm:$0xf] }
  0x18   :  { %357 = vmatpush.bf16.msrb.mxu1 %v3242_v7  ;;  %75 = vst [vmem:[#allocation1 + $0x22] ss:$4 sm:$0xff] %v53_v28  ;;  %v2460_v36 = vor.u32 %v2940_v35, %v2459_v34  ;;  %v2939_v38 = vld [vmem:[#allocation2 + $0x8] sm:$0xf0]  ;;  %v3284_v47 = vld [vmem:[#allocation4] ss:$0 sm:$0xff] }
  0x19   :  { %77 = vst [vmem:[#allocation1 + $0x23] ss:$4 sm:$0xff] %v54_v29  ;;  %v2456_v39 = vor.u32 %v2939_v38, %v2455_v37  ;;  %s3215_s0 = smov 96   ;;  %v2509_v5 = vld [vmem:[#allocation2 + $0x138] sm:$0xf]  ;;  %vm189_vm4 = vcmask 261120  }
  0x1a   :  { %v2950_v6 = vld [vmem:[#allocation2 + $0x140] sm:$0xf0]  ;;  %v2505_v9 = vld [vmem:[#allocation2 + $0x120] sm:$0xf]  ;;  %v2949_v10 = vld [vmem:[#allocation2 + $0x128] sm:$0xf0] }
  0x1b   :  { %151 = vmatpush.bf16.msra.mxu0 %v2472_v24  ;;  %v3293_v8 = vor.u32 %v2950_v6, %v2509_v5  ;;  %v3296_v12 = vor.u32 %v2949_v10, %v2505_v9  ;;  %v2500_v13 = vld [vmem:[#allocation2 + $0x108] sm:$0xf]  ;;  %v2952_v14 = vld [vmem:[#allocation2 + $0x110] sm:$0xf0]  ;;  %v2496_v15 = vld [vmem:[#allocation2 + $0xf0] sm:$0xf] }
  0x1c   :  { %358 = vmatpush.bf16.msrb.mxu1 %v3245_v11  ;;  %v78_v40 = vld.sshfl [vmem:[#allocation1] sm:$0xff pattern:$0x73625140]  ;;  %v3302_v16 = vor.u32 %v2952_v14, %v2500_v13  ;;  %v176_v25 = vld [vmem:[#allocation4 + $0x3] ss:$0 sm:$0xff] }
  0x1d   :  { %300 = vmatpush.bf16.msra.mxu3 %v3293_v8  ;;  %v2951_v17 = vld [vmem:[#allocation2 + $0xf8] sm:$0xf0]  ;;  %v3331_v34 = vld [vmem:[#allocation4 + $0x2] ss:$0 sm:$0xff] }
  0x1e   :  { %275 = vmatpush.bf16.msra.mxu2 %v3302_v16  ;;  %v3306_v18 = vor.u32 %v2951_v17, %v2496_v15 }
  0x1f   :  { %152 = vmatpush.bf16.msra.mxu0 %v2468_v30 }
  0x20   :  { %498 = vmatpush.bf16.msra.mxu1 %v3242_v7  ;;  %v79_v41 = vld.sshfl [vmem:[#allocation1 + $0x20] sm:$0xff pattern:$0x73625140] }
  0x21   :  { %v82_v42 = vpack.c.bf16 %v79_v41, %v78_v40  ;;  %301 = vmatpush.bf16.msra.mxu3 %v3296_v12 }
  0x22   :  { %276 = vmatpush.bf16.msra.mxu2 %v3306_v18 }
  0x23   :  { %153 = vmatpush.bf16.msra.mxu0 %v2464_v33 }
  0x24   :  { %499 = vmatpush.bf16.msra.mxu1 %v3245_v11  ;;  %302 = vmatmul.bf16.vlgmr.msra.gmra.mxu3 %v3214_v23 }
  0x25   :  { %445 = vmatpush.bf16.msrb.mxu3 %v3293_v8 }
  0x26   :  { %425 = vmatpush.bf16.msrb.mxu2 %v3302_v16 }
  0x27   :  { %154 = vmatpush.bf16.msra.mxu0 %v2460_v36 }
  0x29   :  { %446 = vmatpush.bf16.msrb.mxu3 %v3296_v12 }
  0x2a   :  { %426 = vmatpush.bf16.msrb.mxu2 %v3306_v18 }
  0x2b   :  { %155 = vmatpush.bf16.msra.mxu0 %v2456_v39 }
  0x2d   :  { %586 = vmatpush.bf16.msra.mxu3 %v3293_v8 }
  0x2e   :  { %156 = vmatmul.bf16.vlgmr.msra.gmra.mxu0 %v82_v42 }
  0x2f   :  { %639 = vmatpush.bf16.msrb.mxu0 %v3242_v7 }
  0x31   :  { %587 = vmatpush.bf16.msra.mxu3 %v3296_v12 }
  0x33   :  { %640 = vmatpush.bf16.msrb.mxu0 %v3245_v11 }
  0x37   :  { %843 = vmatpush.bf16.msra.mxu0 %v3302_v16 }
  0x3b   :  { %844 = vmatpush.bf16.msra.mxu0 %v3306_v18 }
  0x83   :  { %v3280_v43 = vpop.permute.xlu0 %227 }
  0x94   :  { %v202_v44 = vpop.f32.mrf.mxu1 }
  0x95   :  { %v230_v45 = vadd.f32 %v3280_v43, %v202_v44 }
  0x97   :  { %232 = vrot.lane.b32.xlu0 %v230_v45, %s3213_s1 }
  0x9c   :  { %v204_v46 = vpop.f32.mrf.mxu1 }
  0xa7   :  { %v303_v28 = vpop.f32.mrf.mxu3 }
  0xab   :  { %v157_v48 = vpop.f32.mrf.mxu0 }
  0xac   :  { %v3287_v49 = vadd.f32 %v157_v48, %v3284_v47 }
  0xae   :  { %v206_v50 = vadd.f32 %v202_v44, %v3287_v49 }
  0xaf   :  { %v305_v30 = vpop.f32.mrf.mxu3 }
  0xb0   :  { %v2493_v51 = vmul.f32 -1.442695, %v206_v50 }
  0xb2   :  { %3058 = vpow2.f32 %v2493_v51 }
  0xb8   :  { %v3059_v52 = vpop.eup %3058 }
  0xb9   :  { %v210_v53 = vadd.f32 1.0, %v3059_v52 }
  0xbb   :  { %3060 = vrcp.f32 %v210_v53  ;;  %v222_v59 = vand.u32 2147483648, %v210_v53  ;;  %vm216_vm1 = vweird.f32 %v210_v53  ;;  %v220_v60 = vand.u32 2147483647, %v210_v53 }
  0xbd   :  { %v223_v62 = vor.u32 1.1754944e-38, %v222_v59  ;;  %vm221_vm3 = vcmp.eq.f32.partialorder %v220_v60, 8.507059e+37 }
  0xc1   :  { %v3061_v54 = vpop.eup %3060 }
  0xc2   :  { %v212_v55 = vmul.f32 %v3061_v54, %v210_v53  ;;  %vm217_vm0 = vweird.f32 %v3061_v54 }
  0xc3   :  { %vm218_vm2 = vmor %vm216_vm1, %vm217_vm0 }
  0xc4   :  { %v213_v56 = vsub.f32 1.0, %v212_v55 }
  0xc6   :  { %v214_v57 = vmul.f32 %v3061_v54, %v213_v56 }
  0xc8   :  { %v215_v58 = vadd.f32 %v3061_v54, %v214_v57 }
  0xca   :  { %v219_v61 = vsel %vm218_vm2, %v3061_v54, %v215_v58 }
  0xcb   :  { %v224_v0 = vsel %vm221_vm3, %v223_v62, %v219_v61 }
  0xcc   :  { %v242_v19 = vsub.f32 1.0, %v224_v0  ;;  %v248_v21 = vmul.f32 0.0, %v224_v0 }
 0x109   :  { %v233_v63 = vpop.permute.xlu0 %232 }
 0x10a   :  { %v235_v1 = vmul.f32 %v233_v63, %v224_v0 }
 0x10c   :  { %237 = vrot.lane.b32.xlu1 %v235_v1, %s3213_s1 }
 0x17e   :  { %v238_v2 = vpop.permute.xlu1 %237 }
 0x17f   :  { %v240_v3 = vadd.f32 %v238_v2, %v3287_v49 }
 0x181   :  { %3062 = vtanh.f32 %v240_v3 }
 0x187   :  { %v3063_v4 = vpop.eup %3062 }
 0x188   :  { %244 = vrot.lane.b32.xlu1 %v3063_v4, %s3215_s0 }
 0x1fa   :  { %v245_v20 = vpop.permute.xlu1 %244 }
 0x1fb   :  { %v247_v22 = vmul.f32 %v245_v20, %v242_v19 }
 0x1fd   :  { %v3314_v23 = vadd.f32 %v248_v21, %v247_v22 }
 0x1ff   :  { %v250_v24 = vpack.c.bf16 %v3314_v23, %v3314_v23 }
 0x201   :  { %252 = vrot.lane.b32.xlu2 %v250_v24, %s3215_s0 }
 0x209   :  { %328 = vrot.lane.b32.xlu2 %v176_v25, %s3213_s1 }
 0x25b   :  { %v253_v26 = vpop.permute.xlu2 %252 }
 0x25c   :  { %2502 = vmatmul.msk.bf16.vlgmr.msra.gmra.mxu2 %vm189_vm4, %v253_v26  ;;  %2512 = vmatmul.msk.bf16.vlgmr.msrb.gmra.mxu1 %vm189_vm4, %v253_v26 }
 0x25d   :  { %566 = vmatpush.bf16.msra.mxu2 %v3302_v16  ;;  %707 = vmatpush.bf16.msrb.mxu1 %v3302_v16 }
 0x261   :  { %567 = vmatpush.bf16.msra.mxu2 %v3306_v18  ;;  %708 = vmatpush.bf16.msrb.mxu1 %v3306_v18 }
 0x263   :  { %v3326_v27 = vpop.permute.xlu2 %328 }
 0x264   :  { %v331_v29 = vadd.f32 %v3326_v27, %v303_v28 }
 0x266   :  { %333 = vrot.lane.b32.xlu1 %v331_v29, %s3213_s1 }
 0x2d8   :  { %v334_v54 = vpop.permute.xlu1 %333 }
 0x2d9   :  { %v360_v31 = vpop.f32.mrf.mxu1 }
 0x2da   :  { %v387_v32 = vadd.f32 %v360_v31, %v3280_v43  ;;  %v365_v58 = vrot.slane %v360_v31, 6  ;;  %v407_v31 = vrot.slane %v3314_v23, 6 }
 0x2dc   :  { %v389_v33 = vrot.slane %v387_v32, 6  ;;  %v367_v59 = vadd.f32 %v365_v58, %v3287_v49 }
 0x2de   :  { %390 = vrot.lane.b32.xlu0 %v389_v33, %s3213_s1  ;;  %v2513_v60 = vmul.f32 -1.442695, %v367_v59 }
 0x2df   :  { %v278_v35 = vpop.f32.mrf.mxu2 }
 0x2e0   :  { %v279_v36 = vadd.f32 %v278_v35, %v3331_v34 }
 0x2e1   :  { %v362_v37 = vpop.f32.mrf.mxu1 }
 0x2e2   :  { %v307_v38 = vadd.f32 %v303_v28, %v279_v36 }
 0x2e4   :  { %v2511_v39 = vmul.f32 -1.442695, %v307_v38 }
 0x2e6   :  { %3064 = vpow2.f32 %v2511_v39 }
 0x2e7   :  { %v280_v40 = vpop.f32.mrf.mxu2 }
 0x2ec   :  { %v3065_v41 = vpop.eup %3064 }
 0x2ed   :  { %v311_v42 = vadd.f32 1.0, %v3065_v41 }
 0x2ef   :  { %3066 = vrcp.f32 %v311_v42  ;;  %v323_v48 = vand.u32 2147483648, %v311_v42  ;;  %v321_v51 = vand.u32 2147483647, %v311_v42  ;;  %vm317_vm6 = vweird.f32 %v311_v42 }
 0x2f0   :  { %3068 = vpow2.f32 %v2513_v60 }
 0x2f1   :  { %v324_v53 = vor.u32 1.1754944e-38, %v323_v48  ;;  %vm322_vm8 = vcmp.eq.f32.partialorder %v321_v51, 8.507059e+37 }
 0x2f5   :  { %v3067_v44 = vpop.eup %3066 }
 0x2f6   :  { %v313_v45 = vmul.f32 %v3067_v44, %v311_v42  ;;  %vm318_vm5 = vweird.f32 %v3067_v44  ;;  %v3069_v61 = vpop.eup %3068 }
 0x2f7   :  { %vm319_vm7 = vmor %vm317_vm6, %vm318_vm5  ;;  %v371_v62 = vadd.f32 1.0, %v3069_v61 }
 0x2f8   :  { %v314_v46 = vsub.f32 1.0, %v313_v45 }
 0x2f9   :  { %3070 = vrcp.f32 %v371_v62  ;;  %v383_v4 = vand.u32 2147483648, %v371_v62  ;;  %vm377_vm10 = vweird.f32 %v371_v62  ;;  %v381_v5 = vand.u32 2147483647, %v371_v62 }
 0x2fa   :  { %v315_v50 = vmul.f32 %v3067_v44, %v314_v46 }
 0x2fb   :  { %v384_v9 = vor.u32 1.1754944e-38, %v383_v4  ;;  %vm382_vm12 = vcmp.eq.f32.partialorder %v381_v5, 8.507059e+37 }
 0x2fc   :  { %v316_v52 = vadd.f32 %v3067_v44, %v315_v50 }
 0x2fe   :  { %v320_v55 = vsel %vm319_vm7, %v3067_v44, %v316_v52 }
 0x2ff   :  { %v325_v56 = vsel %vm322_vm8, %v324_v53, %v320_v55  ;;  %v3071_v63 = vpop.eup %3070 }
 0x300   :  { %v336_v57 = vmul.f32 %v334_v54, %v325_v56  ;;  %v373_v0 = vmul.f32 %v3071_v63, %v371_v62  ;;  %vm378_vm9 = vweird.f32 %v3071_v63  ;;  %v343_v24 = vsub.f32 1.0, %v325_v56 }
 0x301   :  { %vm379_vm11 = vmor %vm377_vm10, %vm378_vm9  ;;  %v349_v26 = vmul.f32 0.0, %v325_v56 }
 0x302   :  { %338 = vrot.lane.b32.xlu0 %v336_v57, %s3213_s1  ;;  %v374_v1 = vsub.f32 1.0, %v373_v0 }
 0x304   :  { %v375_v2 = vmul.f32 %v3071_v63, %v374_v1 }
 0x306   :  { %v376_v3 = vadd.f32 %v3071_v63, %v375_v2 }
 0x308   :  { %v380_v6 = vsel %vm379_vm11, %v3071_v63, %v376_v3 }
 0x309   :  { %v385_v13 = vsel %vm382_vm12, %v384_v9, %v380_v6 }
 0x30a   :  { %v400_v32 = vsub.f32 1.0, %v385_v13  ;;  %v409_v35 = vmul.f32 %v407_v31, %v385_v13 }
 0x350   :  { %v391_v10 = vpop.permute.xlu0 %390 }
 0x351   :  { %v393_v14 = vmul.f32 %v391_v10, %v385_v13 }
 0x353   :  { %395 = vrot.lane.b32.xlu2 %v393_v14, %s3213_s1 }
 0x374   :  { %v339_v15 = vpop.permute.xlu0 %338 }
 0x375   :  { %v341_v17 = vadd.f32 %v339_v15, %v279_v36 }
 0x377   :  { %3072 = vtanh.f32 %v341_v17 }
 0x37d   :  { %v3073_v19 = vpop.eup %3072 }
 0x37e   :  { %345 = vrot.lane.b32.xlu2 %v3073_v19, %s3215_s0 }
 0x3ad   :  { %v396_v20 = vpop.permute.xlu2 %395 }
 0x3ae   :  { %v398_v21 = vadd.f32 %v396_v20, %v3287_v49 }
 0x3b0   :  { %3074 = vtanh.f32 %v398_v21 }
 0x3b6   :  { %v3075_v22 = vpop.eup %3074 }
 0x3b7   :  { %402 = vrot.lane.b32.xlu1 %v3075_v22, %s3215_s0 }
 0x3d8   :  { %v346_v25 = vpop.permute.xlu2 %345 }
 0x3d9   :  { %v348_v28 = vmul.f32 %v346_v25, %v343_v24 }
 0x3db   :  { %v3341_v29 = vadd.f32 %v349_v26, %v348_v28 }
 0x3dd   :  { %v432_v30 = vpack.c.bf16 %v3341_v29, %v3341_v29 }
 0x3df   :  { %434 = vrot.lane.b32.xlu1 %v432_v30, %s3215_s0 }
 0x429   :  { %v403_v33 = vpop.permute.xlu1 %402 }
 0x42a   :  { %v405_v36 = vmul.f32 %v403_v33, %v400_v32 }
 0x42c   :  { %v410_v37 = vadd.f32 %v409_v35, %v405_v36 }
 0x42e   :  { %v411_v38 = vpack.c.bf16 %v410_v37, %v410_v37  ;;  %v548_v13 = vrot.slane %v410_v37, 6 }
 0x430   :  { %v413_v39 = vrot.slane %v411_v38, 1 }
 0x432   :  { %414 = vrot.lane.b32.xlu0 %v413_v39, %s3215_s0 }
 0x451   :  { %v435_v40 = vpop.permute.xlu1 %434 }
 0x452   :  { %2515 = vmatmul.msk.bf16.vlgmr.msrb.gmra.mxu3 %vm189_vm4, %v435_v40 }
 0x453   :  { %780 = vmatpush.bf16.msrb.mxu3 %v3242_v7 }
 0x457   :  { %781 = vmatpush.bf16.msrb.mxu3 %v3245_v11 }
 0x4a4   :  { %v415_v41 = vpop.permute.xlu0 %414 }
 0x4a5   :  { %2514 = vmatmul.msk.bf16.vlgmr.msrb.gmra.mxu2 %vm189_vm4, %v415_v41  ;;  %2517 = vmatmul.msk.bf16.vlgmr.msra.gmra.mxu1 %vm189_vm4, %v415_v41 }
 0x4a6   :  { %727 = vmatpush.bf16.msrb.mxu2 %v3293_v8  ;;  %863 = vmatpush.bf16.msra.mxu1 %v3293_v8 }
 0x4aa   :  { %728 = vmatpush.bf16.msrb.mxu2 %v3296_v12  ;;  %864 = vmatpush.bf16.msra.mxu1 %v3296_v12 }
 0x4d5   :  { %v448_v23 = vpop.f32.mrf.mxu3 }
 0x4d6   :  { %v472_v42 = vadd.f32 %v448_v23, %v3326_v27 }
 0x4d8   :  { %474 = vrot.lane.b32.xlu0 %v472_v42, %s3213_s1 }
 0x4dd   :  { %v450_v44 = vpop.f32.mrf.mxu3 }
 0x522   :  { %v501_v45 = vpop.f32.mrf.mxu1 }
 0x523   :  { %v506_v46 = vrot.slane %v501_v45, 4  ;;  %v528_v48 = vadd.f32 %v501_v45, %v3280_v43 }
 0x525   :  { %v508_v50 = vadd.f32 %v506_v46, %v3287_v49  ;;  %v530_v51 = vrot.slane %v528_v48, 4 }
 0x527   :  { %v2518_v52 = vmul.f32 -1.442695, %v508_v50  ;;  %531 = vrot.lane.b32.xlu2 %v530_v51, %s3213_s1 }
 0x528   :  { %v428_v53 = vpop.f32.mrf.mxu2 }
 0x529   :  { %3076 = vpow2.f32 %v2518_v52  ;;  %v429_v54 = vadd.f32 %v428_v53, %v3331_v34 }
 0x52a   :  { %v503_v55 = vpop.f32.mrf.mxu1 }
 0x52b   :  { %v452_v56 = vadd.f32 %v448_v23, %v429_v54 }
 0x52d   :  { %v2516_v57 = vmul.f32 -1.442695, %v452_v56 }
 0x52f   :  { %v3077_v58 = vpop.eup %3076  ;;  %3078 = vpow2.f32 %v2516_v57 }
 0x530   :  { %v512_v59 = vadd.f32 1.0, %v3077_v58  ;;  %v430_v60 = vpop.f32.mrf.mxu2 }
 0x531   :  { %v3390_v60 = vpop.f32.mrf.mxu0 }
 0x532   :  { %3080 = vrcp.f32 %v512_v59  ;;  %v524_v2 = vand.u32 2147483648, %v512_v59  ;;  %v522_v4 = vand.u32 2147483647, %v512_v59  ;;  %vm518_vm14 = vweird.f32 %v512_v59 }
 0x534   :  { %v525_v10 = vor.u32 1.1754944e-38, %v524_v2  ;;  %vm523_vm0 = vcmp.eq.f32.partialorder %v522_v4, 8.507059e+37 }
 0x535   :  { %v3079_v61 = vpop.eup %3078 }
 0x536   :  { %v456_v62 = vadd.f32 1.0, %v3079_v61 }
 0x538   :  { %v3081_v63 = vpop.eup %3080  ;;  %3082 = vrcp.f32 %v456_v62  ;;  %v468_v21 = vand.u32 2147483648, %v456_v62  ;;  %vm462_vm2 = vweird.f32 %v456_v62  ;;  %v466_v24 = vand.u32 2147483647, %v456_v62 }
 0x539   :  { %v514_v0 = vmul.f32 %v3081_v63, %v512_v59  ;;  %vm519_vm13 = vweird.f32 %v3081_v63 }
 0x53a   :  { %vm520_vm15 = vmor %vm518_vm14, %vm519_vm13  ;;  %v469_v26 = vor.u32 1.1754944e-38, %v468_v21  ;;  %vm467_vm5 = vcmp.eq.f32.partialorder %v466_v24, 8.507059e+37 }
 0x53b   :  { %v515_v1 = vsub.f32 1.0, %v514_v0 }
 0x53d   :  { %v516_v3 = vmul.f32 %v3081_v63, %v515_v1 }
 0x53e   :  { %v3083_v5 = vpop.eup %3082 }
 0x53f   :  { %v458_v6 = vmul.f32 %v3083_v5, %v456_v62  ;;  %v517_v9 = vadd.f32 %v3081_v63, %v516_v3  ;;  %vm463_vm1 = vweird.f32 %v3083_v5 }
 0x540   :  { %vm464_vm3 = vmor %vm462_vm2, %vm463_vm1 }
 0x541   :  { %v459_v14 = vsub.f32 1.0, %v458_v6  ;;  %v521_v15 = vsel %vm520_vm15, %v3081_v63, %v517_v9 }
 0x542   :  { %v526_v17 = vsel %vm523_vm0, %v525_v10, %v521_v15 }
 0x543   :  { %v460_v19 = vmul.f32 %v3083_v5, %v459_v14  ;;  %v550_v20 = vmul.f32 %v548_v13, %v526_v17  ;;  %v541_v48 = vsub.f32 1.0, %v526_v17 }
 0x545   :  { %v461_v22 = vadd.f32 %v3083_v5, %v460_v19 }
 0x547   :  { %v465_v25 = vsel %vm464_vm3, %v3083_v5, %v461_v22 }
 0x548   :  { %v470_v30 = vsel %vm467_vm5, %v469_v26, %v465_v25 }
 0x549   :  { %v484_v41 = vsub.f32 1.0, %v470_v30  ;;  %v490_v42 = vmul.f32 %v470_v30, %v3341_v29 }
 0x54a   :  { %v475_v28 = vpop.permute.xlu0 %474 }
 0x54b   :  { %v477_v31 = vmul.f32 %v475_v28, %v470_v30 }
 0x54d   :  { %479 = vrot.lane.b32.xlu2 %v477_v31, %s3213_s1 }
 0x581   :  { %v532_v32 = vpop.permute.xlu2 %531 }
 0x582   :  { %v534_v33 = vmul.f32 %v532_v32, %v526_v17 }
 0x584   :  { %536 = vrot.lane.b32.xlu1 %v534_v33, %s3213_s1 }
 0x5a7   :  { %v480_v35 = vpop.permute.xlu2 %479 }
 0x5a8   :  { %v482_v36 = vadd.f32 %v480_v35, %v429_v54 }
 0x5aa   :  { %3084 = vtanh.f32 %v482_v36 }
 0x5b0   :  { %v3085_v37 = vpop.eup %3084 }
 0x5b1   :  { %486 = vrot.lane.b32.xlu1 %v3085_v37, %s3215_s0 }
 0x5f6   :  { %v537_v38 = vpop.permute.xlu1 %536 }
 0x5f7   :  { %v539_v39 = vadd.f32 %v537_v38, %v3287_v49 }
 0x5f9   :  { %3086 = vtanh.f32 %v539_v39 }
 0x5ff   :  { %v3087_v40 = vpop.eup %3086 }
 0x600   :  { %543 = vrot.lane.b32.xlu0 %v3087_v40, %s3215_s0 }
 0x623   :  { %v487_v23 = vpop.permute.xlu1 %486 }
 0x624   :  { %v489_v44 = vmul.f32 %v487_v23, %v484_v41 }
 0x626   :  { %v3369_v45 = vadd.f32 %v490_v42, %v489_v44 }
 0x628   :  { %v573_v46 = vpack.c.bf16 %v3369_v45, %v3369_v45 }
 0x62a   :  { %575 = vrot.lane.b32.xlu0 %v573_v46, %s3215_s0 }
 0x672   :  { %v544_v50 = vpop.permute.xlu0 %543 }
 0x673   :  { %v546_v51 = vmul.f32 %v544_v50, %v541_v48 }
 0x675   :  { %v3374_v52 = vadd.f32 %v550_v20, %v546_v51 }
 0x677   :  { %v552_v53 = vpack.c.bf16 %v3374_v52, %v3374_v52 }
 0x679   :  { %v554_v54 = vrot.slane %v552_v53, 2 }
 0x67b   :  { %555 = vrot.lane.b32.xlu2 %v554_v54, %s3215_s0 }
 0x69c   :  { %v576_v55 = vpop.permute.xlu0 %575 }
 0x69d   :  { %2520 = vmatmul.msk.bf16.vlgmr.msra.gmra.mxu3 %vm189_vm4, %v576_v55 }
 0x69e   :  { %984 = vmatpush.bf16.msra.mxu3 %v3302_v16 }
 0x6a2   :  { %985 = vmatpush.bf16.msra.mxu3 %v3306_v18 }
 0x6d5   :  { %v556_v56 = vpop.permute.xlu2 %555 }
 0x6d6   :  { %2519 = vmatmul.msk.bf16.vlgmr.msra.gmra.mxu2 %vm189_vm4, %v556_v56  ;;  %2522 = vmatmul.msk.bf16.vlgmr.msrb.gmra.mxu0 %vm189_vm4, %v556_v56 }
 0x6d7   :  { %916 = vmatpush.bf16.msra.mxu2 %v3242_v7  ;;  %1004 = vmatpush.bf16.msrb.mxu0 %v3293_v8 }
 0x6db   :  { %917 = vmatpush.bf16.msra.mxu2 %v3245_v11  ;;  %1005 = vmatpush.bf16.msrb.mxu0 %v3296_v12 }
 0x720   :  { %v589_v57 = vpop.f32.mrf.mxu3 }
 0x721   :  { %v613_v58 = vadd.f32 %v589_v57, %v3326_v27 }
 0x723   :  { %615 = vrot.lane.b32.xlu2 %v613_v58, %s3213_s1 }
 0x728   :  { %v591_v59 = vpop.f32.mrf.mxu3 }
 0x753   :  { %v642_v61 = vpop.f32.mrf.mxu0 }
 0x754   :  { %v669_v62 = vadd.f32 %v642_v61, %v3280_v43  ;;  %v647_v28 = vrot.slane %v642_v61, 2 }
 0x756   :  { %v671_v63 = vrot.slane %v669_v62, 2  ;;  %v649_v30 = vadd.f32 %v647_v28, %v3287_v49 }
 0x758   :  { %672 = vrot.lane.b32.xlu1 %v671_v63, %s3213_s1  ;;  %v2523_v31 = vmul.f32 -1.442695, %v649_v30 }
 0x759   :  { %v569_v0 = vpop.f32.mrf.mxu2 }
 0x75a   :  { %v570_v1 = vadd.f32 %v569_v0, %v3331_v34  ;;  %v689_v0 = vrot.slane %v3374_v52, 6 }
 0x75b   :  { %v644_v2 = vpop.f32.mrf.mxu0 }
 0x75c   :  { %v593_v3 = vadd.f32 %v589_v57, %v570_v1 }
 0x75e   :  { %v2521_v4 = vmul.f32 -1.442695, %v593_v3 }
 0x760   :  { %3088 = vpow2.f32 %v2521_v4 }
 0x761   :  { %v571_v5 = vpop.f32.mrf.mxu2 }
 0x766   :  { %v3089_v6 = vpop.eup %3088 }
 0x767   :  { %v597_v9 = vadd.f32 1.0, %v3089_v6 }
 0x769   :  { %3090 = vrcp.f32 %v597_v9  ;;  %v609_v19 = vand.u32 2147483648, %v597_v9  ;;  %vm603_vm7 = vweird.f32 %v597_v9  ;;  %v607_v20 = vand.u32 2147483647, %v597_v9 }
 0x76a   :  { %3092 = vpow2.f32 %v2523_v31 }
 0x76b   :  { %v610_v22 = vor.u32 1.1754944e-38, %v609_v19  ;;  %vm608_vm9 = vcmp.eq.f32.partialorder %v607_v20, 8.507059e+37 }
 0x76f   :  { %v3091_v10 = vpop.eup %3090 }
 0x770   :  { %v599_v13 = vmul.f32 %v3091_v10, %v597_v9  ;;  %vm604_vm6 = vweird.f32 %v3091_v10  ;;  %v3093_v32 = vpop.eup %3092 }
 0x771   :  { %vm605_vm8 = vmor %vm603_vm7, %vm604_vm6  ;;  %v653_v33 = vadd.f32 1.0, %v3093_v32 }
 0x772   :  { %v600_v14 = vsub.f32 1.0, %v599_v13 }
 0x773   :  { %3094 = vrcp.f32 %v653_v33  ;;  %v665_v40 = vand.u32 2147483648, %v653_v33  ;;  %vm659_vm11 = vweird.f32 %v653_v33  ;;  %v663_v41 = vand.u32 2147483647, %v653_v33 }
 0x774   :  { %v601_v15 = vmul.f32 %v3091_v10, %v600_v14 }
 0x775   :  { %v666_v42 = vor.u32 1.1754944e-38, %v665_v40  ;;  %vm664_vm13 = vcmp.eq.f32.partialorder %v663_v41, 8.507059e+37 }
 0x776   :  { %v602_v17 = vadd.f32 %v3091_v10, %v601_v15 }
 0x778   :  { %v606_v21 = vsel %vm605_vm8, %v3091_v10, %v602_v17 }
 0x779   :  { %v611_v24 = vsel %vm608_vm9, %v610_v22, %v606_v21  ;;  %v3095_v35 = vpop.eup %3094 }
 0x77a   :  { %v655_v36 = vmul.f32 %v3095_v35, %v653_v33  ;;  %vm660_vm10 = vweird.f32 %v3095_v35  ;;  %v625_v57 = vsub.f32 1.0, %v611_v24  ;;  %v631_v59 = vmul.f32 %v611_v24, %v3369_v45 }
 0x77b   :  { %vm661_vm12 = vmor %vm659_vm11, %vm660_vm10 }
 0x77c   :  { %v656_v37 = vsub.f32 1.0, %v655_v36 }
 0x77d   :  { %v616_v25 = vpop.permute.xlu2 %615 }
 0x77e   :  { %v618_v26 = vmul.f32 %v616_v25, %v611_v24  ;;  %v657_v38 = vmul.f32 %v3095_v35, %v656_v37 }
 0x780   :  { %620 = vrot.lane.b32.xlu1 %v618_v26, %s3213_s1  ;;  %v658_v39 = vadd.f32 %v3095_v35, %v657_v38 }
 0x782   :  { %v662_v23 = vsel %vm661_vm12, %v3095_v35, %v658_v39 }
 0x783   :  { %v667_v46 = vsel %vm664_vm13, %v666_v42, %v662_v23  ;;  %v3430_v42 = vadd.f32 %v3390_v60, %v3284_v47 }
 0x784   :  { %v691_v2 = vmul.f32 %v689_v0, %v667_v46 }
 0x7ca   :  { %v673_v44 = vpop.permute.xlu1 %672 }
 0x7cb   :  { %v675_v48 = vmul.f32 %v673_v44, %v667_v46 }
 0x7cd   :  { %677 = vrot.lane.b32.xlu0 %v675_v48, %s3213_s1 }
 0x7f2   :  { %v621_v50 = vpop.permute.xlu1 %620 }
 0x7f3   :  { %v623_v51 = vadd.f32 %v621_v50, %v570_v1  ;;  %v682_v1 = vsub.f32 1.0, %v667_v46 }
 0x7f5   :  { %3096 = vtanh.f32 %v623_v51 }
 0x7fb   :  { %v3097_v53 = vpop.eup %3096 }
 0x7fc   :  { %627 = vrot.lane.b32.xlu0 %v3097_v53, %s3215_s0 }
 0x83f   :  { %v678_v54 = vpop.permute.xlu0 %677 }
 0x840   :  { %v680_v55 = vadd.f32 %v678_v54, %v3287_v49 }
 0x842   :  { %3098 = vtanh.f32 %v680_v55 }
 0x848   :  { %v3099_v56 = vpop.eup %3098 }
 0x849   :  { %684 = vrot.lane.b32.xlu2 %v3099_v56, %s3215_s0 }
 0x86e   :  { %v628_v58 = vpop.permute.xlu0 %627 }
 0x86f   :  { %v630_v61 = vmul.f32 %v628_v58, %v625_v57 }
 0x871   :  { %v3402_v62 = vadd.f32 %v631_v59, %v630_v61 }
 0x873   :  { %v714_v63 = vpack.c.bf16 %v3402_v62, %v3402_v62 }
 0x875   :  { %716 = vrot.lane.b32.xlu2 %v714_v63, %s3215_s0 }
 0x8a3   :  { %v685_v49 = vpop.permute.xlu2 %684 }
 0x8a4   :  { %v687_v3 = vmul.f32 %v685_v49, %v682_v1 }
 0x8a6   :  { %v3408_v4 = vadd.f32 %v691_v2, %v687_v3 }
 0x8a8   :  { %v693_v5 = vpack.c.bf16 %v3408_v4, %v3408_v4 }
 0x8aa   :  { %v695_v6 = vrot.slane %v693_v5, 3 }
 0x8ac   :  { %696 = vrot.lane.b32.xlu1 %v695_v6, %s3215_s0 }
 0x8cf   :  { %v717_v9 = vpop.permute.xlu2 %716 }
 0x8d0   :  { %2525 = vmatmul.msk.bf16.vlgmr.msrb.gmra.mxu2 %vm189_vm4, %v717_v9 }
 0x8d1   :  { %1125 = vmatpush.bf16.msrb.mxu2 %v3302_v16 }
 0x8d5   :  { %1126 = vmatpush.bf16.msrb.mxu2 %v3306_v18 }
 0x91e   :  { %v697_v52 = vpop.permute.xlu1 %696 }
 0x91f   :  { %2524 = vmatmul.msk.bf16.vlgmr.msrb.gmra.mxu1 %vm189_vm4, %v697_v52  ;;  %2527 = vmatmul.msk.bf16.vlgmr.msrb.gmra.mxu3 %vm189_vm4, %v697_v52 }
 0x920   :  { %1057 = vmatpush.bf16.msrb.mxu1 %v3242_v7  ;;  %1145 = vmatpush.bf16.msrb.mxu3 %v3293_v8 }
 0x924   :  { %1058 = vmatpush.bf16.msrb.mxu1 %v3245_v11  ;;  %1146 = vmatpush.bf16.msrb.mxu3 %v3296_v12 }
 0x953   :  { %v730_v10 = vpop.f32.mrf.mxu2 }
 0x954   :  { %v754_v13 = vadd.f32 %v730_v10, %v3326_v27 }
 0x956   :  { %756 = vrot.lane.b32.xlu1 %v754_v13, %s3213_s1 }
 0x95b   :  { %v732_v14 = vpop.f32.mrf.mxu2 }
 0x99c   :  { %v710_v15 = vpop.f32.mrf.mxu1 }
 0x99d   :  { %v711_v17 = vadd.f32 %v710_v15, %v3331_v34  ;;  %v826_v15 = vrot.slane %v3408_v4, 6 }
 0x99f   :  { %v734_v19 = vadd.f32 %v730_v10, %v711_v17 }
 0x9a1   :  { %v2526_v20 = vmul.f32 -1.442695, %v734_v19 }
 0x9a2   :  { %v783_v21 = vpop.f32.mrf.mxu3 }
 0x9a3   :  { %3100 = vpow2.f32 %v2526_v20  ;;  %v807_v22 = vadd.f32 %v783_v21, %v3280_v43  ;;  %v787_v44 = vadd.f32 %v783_v21, %v3430_v42 }
 0x9a4   :  { %v712_v24 = vpop.f32.mrf.mxu1 }
 0x9a5   :  { %809 = vrot.lane.b32.xlu0 %v807_v22, %s3213_s1  ;;  %v2528_v46 = vmul.f32 -1.442695, %v787_v44 }
 0x9a9   :  { %v3101_v25 = vpop.eup %3100 }
 0x9aa   :  { %v738_v26 = vadd.f32 1.0, %v3101_v25  ;;  %v785_v28 = vpop.f32.mrf.mxu3 }
 0x9ac   :  { %3102 = vrcp.f32 %v738_v26  ;;  %v750_v36 = vand.u32 2147483648, %v738_v26  ;;  %vm744_vm15 = vweird.f32 %v738_v26  ;;  %v748_v37 = vand.u32 2147483647, %v738_v26 }
 0x9ad   :  { %3104 = vpow2.f32 %v2528_v46 }
 0x9ae   :  { %v751_v39 = vor.u32 1.1754944e-38, %v750_v36  ;;  %vm749_vm1 = vcmp.eq.f32.partialorder %v748_v37, 8.507059e+37 }
 0x9b2   :  { %v3103_v30 = vpop.eup %3102 }
 0x9b3   :  { %v740_v31 = vmul.f32 %v3103_v30, %v738_v26  ;;  %vm745_vm14 = vweird.f32 %v3103_v30  ;;  %v3105_v48 = vpop.eup %3104 }
 0x9b4   :  { %vm746_vm0 = vmor %vm744_vm15, %vm745_vm14  ;;  %v791_v50 = vadd.f32 1.0, %v3105_v48 }
 0x9b5   :  { %v741_v32 = vsub.f32 1.0, %v740_v31 }
 0x9b6   :  { %3106 = vrcp.f32 %v791_v50  ;;  %v803_v57 = vand.u32 2147483648, %v791_v50  ;;  %vm797_vm3 = vweird.f32 %v791_v50  ;;  %v801_v58 = vand.u32 2147483647, %v791_v50 }
 0x9b7   :  { %v742_v33 = vmul.f32 %v3103_v30, %v741_v32 }
 0x9b8   :  { %v804_v47 = vor.u32 1.1754944e-38, %v803_v57  ;;  %vm802_vm6 = vcmp.eq.f32.partialorder %v801_v58, 8.507059e+37 }
 0x9b9   :  { %v743_v35 = vadd.f32 %v3103_v30, %v742_v33 }
 0x9bb   :  { %v747_v38 = vsel %vm746_vm0, %v3103_v30, %v743_v35 }
 0x9bc   :  { %v752_v41 = vsel %vm749_vm1, %v751_v39, %v747_v38  ;;  %v3107_v51 = vpop.eup %3106 }
 0x9bd   :  { %v793_v53 = vmul.f32 %v3107_v51, %v791_v50  ;;  %vm798_vm2 = vweird.f32 %v3107_v51  ;;  %v766_v6 = vsub.f32 1.0, %v752_v41  ;;  %v772_v52 = vmul.f32 %v752_v41, %v3402_v62 }
 0x9be   :  { %vm799_vm5 = vmor %vm797_vm3, %vm798_vm2 }
 0x9bf   :  { %v794_v54 = vsub.f32 1.0, %v793_v53 }
 0x9c1   :  { %v795_v55 = vmul.f32 %v3107_v51, %v794_v54 }
 0x9c3   :  { %v796_v56 = vadd.f32 %v3107_v51, %v795_v55 }
 0x9c5   :  { %v800_v59 = vsel %vm799_vm5, %v3107_v51, %v796_v56 }
 0x9c6   :  { %v805_v61 = vsel %vm802_vm6, %v804_v47, %v800_v59 }
 0x9c7   :  { %v828_v20 = vmul.f32 %v826_v15, %v805_v61 }
 0x9c8   :  { %v757_v40 = vpop.permute.xlu1 %756 }
 0x9c9   :  { %v759_v23 = vmul.f32 %v757_v40, %v752_v41 }
 0x9cb   :  { %761 = vrot.lane.b32.xlu0 %v759_v23, %s3213_s1 }
 0xa17   :  { %v810_v60 = vpop.permute.xlu0 %809 }
 0xa18   :  { %v812_v63 = vmul.f32 %v810_v60, %v805_v61 }
 0xa1a   :  { %814 = vrot.lane.b32.xlu2 %v812_v63, %s3213_s1 }
 0xa3d   :  { %v762_v0 = vpop.permute.xlu0 %761 }
 0xa3e   :  { %v764_v1 = vadd.f32 %v762_v0, %v711_v17  ;;  %v819_v17 = vsub.f32 1.0, %v805_v61 }
 0xa40   :  { %3108 = vtanh.f32 %v764_v1 }
 0xa46   :  { %v3109_v49 = vpop.eup %3108 }
 0xa47   :  { %768 = vrot.lane.b32.xlu2 %v3109_v49, %s3215_s0 }
 0xa74   :  { %v815_v2 = vpop.permute.xlu2 %814 }
 0xa75   :  { %v817_v3 = vadd.f32 %v815_v2, %v3430_v42 }
 0xa77   :  { %3110 = vtanh.f32 %v817_v3 }
 0xa7d   :  { %v3111_v5 = vpop.eup %3110 }
 0xa7e   :  { %821 = vrot.lane.b32.xlu1 %v3111_v5, %s3215_s0 }
 0xaa1   :  { %v769_v9 = vpop.permute.xlu2 %768 }
 0xaa2   :  { %v771_v10 = vmul.f32 %v769_v9, %v766_v6 }
 0xaa4   :  { %v3438_v13 = vadd.f32 %v772_v52, %v771_v10 }
 0xaa6   :  { %v850_v14 = vpack.c.bf16 %v3438_v13, %v3438_v13 }
 0xaa8   :  { %852 = vrot.lane.b32.xlu1 %v850_v14, %s3215_s0 }
 0xaf0   :  { %v822_v19 = vpop.permute.xlu1 %821 }
 0xaf1   :  { %v824_v21 = vmul.f32 %v822_v19, %v819_v17 }
 0xaf3   :  { %v3444_v22 = vadd.f32 %v828_v20, %v824_v21 }
 0xaf5   :  { %v830_v24 = vpack.c.bf16 %v3444_v22, %v3444_v22 }
 0xaf7   :  { %832 = vrot.lane.b32.xlu0 %v830_v24, %s3215_s0 }
 0xb1a   :  { %v853_v25 = vpop.permute.xlu1 %852 }
 0xb1b   :  { %2530 = vmatmul.msk.bf16.vlgmr.msra.gmra.mxu1 %vm189_vm4, %v853_v25 }
 0xb1c   :  { %1266 = vmatpush.bf16.msra.mxu1 %v3302_v16 }
 0xb20   :  { %1267 = vmatpush.bf16.msra.mxu1 %v3306_v18 }
 0xb69   :  { %v833_v26 = vpop.permute.xlu0 %832 }
 0xb6a   :  { %2529 = vmatmul.msk.bf16.vlgmr.msra.gmra.mxu0 %vm189_vm4, %v833_v26  ;;  %2532 = vmatmul.msk.bf16.vlgmr.msra.gmra.mxu2 %vm189_vm4, %v833_v26 }
 0xb6b   :  { %1198 = vmatpush.bf16.msra.mxu0 %v3242_v7  ;;  %1286 = vmatpush.bf16.msra.mxu2 %v3293_v8 }
 0xb6f   :  { %1199 = vmatpush.bf16.msra.mxu0 %v3245_v11  ;;  %1287 = vmatpush.bf16.msra.mxu2 %v3296_v12 }
 0xb98   :  { %v866_v4 = vpop.f32.mrf.mxu1 }
 0xb99   :  { %v890_v28 = vadd.f32 %v866_v4, %v3326_v27 }
 0xb9b   :  { %892 = vrot.lane.b32.xlu2 %v890_v28, %s3213_s1 }
 0xba0   :  { %v868_v16 = vpop.f32.mrf.mxu1 }
 0xbe7   :  { %v846_v18 = vpop.f32.mrf.mxu0 }
 0xbe8   :  { %v847_v30 = vadd.f32 %v846_v18, %v3331_v34 }
 0xbea   :  { %v870_v31 = vadd.f32 %v866_v4, %v847_v30  ;;  %v966_v4 = vrot.slane %v3444_v22, 6 }
 0xbec   :  { %v2531_v32 = vmul.f32 -1.442695, %v870_v31 }
 0xbed   :  { %v919_v33 = vpop.f32.mrf.mxu2 }
 0xbee   :  { %3112 = vpow2.f32 %v2531_v32  ;;  %v946_v7 = vadd.f32 %v919_v33, %v3280_v43  ;;  %v924_v54 = vrot.slane %v919_v33, 6 }
 0xbef   :  { %v848_v8 = vpop.f32.mrf.mxu0 }
 0xbf0   :  { %v948_v35 = vrot.slane %v946_v7, 6  ;;  %v926_v55 = vadd.f32 %v924_v54, %v3430_v42 }
 0xbf2   :  { %949 = vrot.lane.b32.xlu0 %v948_v35, %s3213_s1  ;;  %v2533_v56 = vmul.f32 -1.442695, %v926_v55 }
 0xbf4   :  { %v3113_v11 = vpop.eup %3112 }
 0xbf5   :  { %v874_v12 = vadd.f32 1.0, %v3113_v11  ;;  %v921_v36 = vpop.f32.mrf.mxu2  ;;  %v893_v50 = vpop.permute.xlu2 %892 }
 0xbf7   :  { %3114 = vrcp.f32 %v874_v12  ;;  %v886_v40 = vand.u32 2147483648, %v874_v12  ;;  %v884_v23 = vand.u32 2147483647, %v874_v12  ;;  %vm880_vm8 = vweird.f32 %v874_v12 }
 0xbf8   :  { %3116 = vpow2.f32 %v2533_v56 }
 0xbf9   :  { %v887_v46 = vor.u32 1.1754944e-38, %v886_v40  ;;  %vm885_vm10 = vcmp.eq.f32.partialorder %v884_v23, 8.507059e+37 }
 0xbfd   :  { %v3115_v37 = vpop.eup %3114 }
 0xbfe   :  { %v876_v38 = vmul.f32 %v3115_v37, %v874_v12  ;;  %vm881_vm7 = vweird.f32 %v3115_v37  ;;  %v3117_v57 = vpop.eup %3116 }
 0xbff   :  { %vm882_vm9 = vmor %vm880_vm8, %vm881_vm7  ;;  %v930_v58 = vadd.f32 1.0, %v3117_v57 }
 0xc00   :  { %v877_v39 = vsub.f32 1.0, %v876_v38 }
 0xc01   :  { %3118 = vrcp.f32 %v930_v58  ;;  %v942_v0 = vand.u32 2147483648, %v930_v58  ;;  %vm936_vm12 = vweird.f32 %v930_v58  ;;  %v940_v1 = vand.u32 2147483647, %v930_v58 }
 0xc02   :  { %v878_v41 = vmul.f32 %v3115_v37, %v877_v39 }
 0xc03   :  { %v943_v2 = vor.u32 1.1754944e-38, %v942_v0  ;;  %vm941_vm14 = vcmp.eq.f32.partialorder %v940_v1, 8.507059e+37 }
 0xc04   :  { %v879_v44 = vadd.f32 %v3115_v37, %v878_v41 }
 0xc06   :  { %v883_v48 = vsel %vm882_vm9, %v3115_v37, %v879_v44 }
 0xc07   :  { %v888_v51 = vsel %vm885_vm10, %v887_v46, %v883_v48  ;;  %v3119_v59 = vpop.eup %3118 }
 0xc08   :  { %v895_v53 = vmul.f32 %v893_v50, %v888_v51  ;;  %v932_v47 = vmul.f32 %v3119_v59, %v930_v58  ;;  %vm937_vm11 = vweird.f32 %v3119_v59  ;;  %v902_v19 = vsub.f32 1.0, %v888_v51 }
 0xc09   :  { %vm938_vm13 = vmor %vm936_vm12, %vm937_vm11  ;;  %v908_v21 = vmul.f32 %v888_v51, %v3438_v13 }
 0xc0a   :  { %897 = vrot.lane.b32.xlu1 %v895_v53, %s3213_s1  ;;  %v933_v60 = vsub.f32 1.0, %v932_v47 }
 0xc0c   :  { %v934_v61 = vmul.f32 %v3119_v59, %v933_v60 }
 0xc0e   :  { %v935_v63 = vadd.f32 %v3119_v59, %v934_v61 }
 0xc10   :  { %v939_v49 = vsel %vm938_vm13, %v3119_v59, %v935_v63 }
 0xc11   :  { %v944_v5 = vsel %vm941_vm14, %v943_v2, %v939_v49 }
 0xc12   :  { %v959_v28 = vsub.f32 1.0, %v944_v5  ;;  %v968_v18 = vmul.f32 %v966_v4, %v944_v5 }
 0xc64   :  { %v950_v3 = vpop.permute.xlu0 %949 }
 0xc65   :  { %v952_v6 = vmul.f32 %v950_v3, %v944_v5 }
 0xc67   :  { %954 = vrot.lane.b32.xlu2 %v952_v6, %s3213_s1 }
 0xc7c   :  { %v898_v9 = vpop.permute.xlu1 %897 }
 0xc7d   :  { %v900_v52 = vadd.f32 %v898_v9, %v847_v30 }
 0xc7f   :  { %3120 = vtanh.f32 %v900_v52 }
 0xc85   :  { %v3121_v10 = vpop.eup %3120 }
 0xc86   :  { %904 = vrot.lane.b32.xlu0 %v3121_v10, %s3215_s0 }
 0xcc1   :  { %v955_v14 = vpop.permute.xlu2 %954 }
 0xcc2   :  { %v957_v15 = vadd.f32 %v955_v14, %v3430_v42 }
 0xcc4   :  { %3122 = vtanh.f32 %v957_v15 }
 0xcca   :  { %v3123_v17 = vpop.eup %3122 }
 0xccb   :  { %961 = vrot.lane.b32.xlu1 %v3123_v17, %s3215_s0 }
 0xcf8   :  { %v905_v20 = vpop.permute.xlu0 %904 }
 0xcf9   :  { %v907_v24 = vmul.f32 %v905_v20, %v902_v19 }
 0xcfb   :  { %v3470_v25 = vadd.f32 %v908_v21, %v907_v24 }
 0xcfd   :  { %v991_v26 = vpack.c.bf16 %v3470_v25, %v3470_v25 }
 0xcff   :  { %993 = vrot.lane.b32.xlu2 %v991_v26, %s3215_s0 }
 0xd3d   :  { %v962_v16 = vpop.permute.xlu1 %961 }
 0xd3e   :  { %v964_v30 = vmul.f32 %v962_v16, %v959_v28 }
 0xd40   :  { %v969_v31 = vadd.f32 %v968_v18, %v964_v30 }
 0xd42   :  { %v970_v32 = vpack.c.bf16 %v969_v31, %v969_v31  ;;  %v1107_v1 = vrot.slane %v969_v31, 6 }
 0xd44   :  { %v972_v33 = vrot.slane %v970_v32, 1 }
 0xd46   :  { %973 = vrot.lane.b32.xlu0 %v972_v33, %s3215_s0 }
 0xd59   :  { %v994_v7 = vpop.permute.xlu2 %993 }
 0xd5a   :  { %2535 = vmatmul.msk.bf16.vlgmr.msrb.gmra.mxu0 %vm189_vm4, %v994_v7 }
 0xdb8   :  { %v974_v8 = vpop.permute.xlu0 %973 }
 0xdb9   :  { %2534 = vmatmul.msk.bf16.vlgmr.msra.gmra.mxu3 %vm189_vm4, %v974_v8  ;;  %2537 = vmatmul.msk.bf16.vlgmr.msrb.gmra.mxu1 %vm189_vm4, %v974_v8 }
 0xdd7   :  { %v1007_v35 = vpop.f32.mrf.mxu0 }
 0xdd8   :  { %v1031_v22 = vadd.f32 %v1007_v35, %v3326_v27 }
 0xdda   :  { %1033 = vrot.lane.b32.xlu1 %v1031_v22, %s3213_s1 }
 0xddf   :  { %v1009_v11 = vpop.f32.mrf.mxu0 }
 0xe36   :  { %v1060_v12 = vpop.f32.mrf.mxu1 }
 0xe37   :  { %v1065_v36 = vrot.slane %v1060_v12, 4  ;;  %v1087_v37 = vadd.f32 %v1060_v12, %v3280_v43 }
 0xe39   :  { %v1067_v38 = vadd.f32 %v1065_v36, %v3430_v42  ;;  %v1089_v39 = vrot.slane %v1087_v37, 4 }
 0xe3b   :  { %v2538_v40 = vmul.f32 -1.442695, %v1067_v38  ;;  %1090 = vrot.lane.b32.xlu2 %v1089_v39, %s3213_s1 }
 0xe3c   :  { %v987_v41 = vpop.f32.mrf.mxu3 }
 0xe3d   :  { %3124 = vpow2.f32 %v2538_v40  ;;  %v988_v23 = vadd.f32 %v987_v41, %v3331_v34 }
 0xe3e   :  { %v1062_v44 = vpop.f32.mrf.mxu1 }
 0xe3f   :  { %v1011_v46 = vadd.f32 %v1007_v35, %v988_v23 }
 0xe41   :  { %v2536_v48 = vmul.f32 -1.442695, %v1011_v46 }
 0xe43   :  { %v3125_v50 = vpop.eup %3124  ;;  %3126 = vpow2.f32 %v2536_v48 }
 0xe44   :  { %v1071_v51 = vadd.f32 1.0, %v3125_v50  ;;  %v989_v53 = vpop.f32.mrf.mxu3 }
 0xe46   :  { %3128 = vrcp.f32 %v1071_v51  ;;  %v1083_v59 = vand.u32 2147483648, %v1071_v51  ;;  %v1081_v60 = vand.u32 2147483647, %v1071_v51  ;;  %vm1077_vm0 = vweird.f32 %v1071_v51 }
 0xe48   :  { %v1084_v0 = vor.u32 1.1754944e-38, %v1083_v59  ;;  %vm1082_vm2 = vcmp.eq.f32.partialorder %v1081_v60, 8.507059e+37 }
 0xe49   :  { %v3127_v54 = vpop.eup %3126 }
 0xe4a   :  { %v1015_v55 = vadd.f32 1.0, %v3127_v54  ;;  %v3509_v54 = vld [vmem:[#allocation4 + $0x2] ss:$0 sm:$0xff] }
 0xe4c   :  { %v3129_v56 = vpop.eup %3128  ;;  %3130 = vrcp.f32 %v1015_v55  ;;  %v1027_v3 = vand.u32 2147483648, %v1015_v55  ;;  %v1025_v9 = vand.u32 2147483647, %v1015_v55  ;;  %vm1021_vm5 = vweird.f32 %v1015_v55  ;;  %v1034_v19 = vpop.permute.xlu1 %1033 }
 0xe4d   :  { %v1073_v57 = vmul.f32 %v3129_v56, %v1071_v51  ;;  %vm1078_vm15 = vweird.f32 %v3129_v56 }
 0xe4e   :  { %vm1079_vm1 = vmor %vm1077_vm0, %vm1078_vm15  ;;  %v1028_v14 = vor.u32 1.1754944e-38, %v1027_v3  ;;  %vm1026_vm7 = vcmp.eq.f32.partialorder %v1025_v9, 8.507059e+37 }
 0xe4f   :  { %v1074_v58 = vsub.f32 1.0, %v1073_v57 }
 0xe51   :  { %v1075_v47 = vmul.f32 %v3129_v56, %v1074_v58 }
 0xe52   :  { %v3131_v61 = vpop.eup %3130 }
 0xe53   :  { %v1017_v34 = vmul.f32 %v3131_v61, %v1015_v55  ;;  %v1076_v63 = vadd.f32 %v3129_v56, %v1075_v47  ;;  %vm1022_vm3 = vweird.f32 %v3131_v61 }
 0xe54   :  { %vm1023_vm6 = vmor %vm1021_vm5, %vm1022_vm3  ;;  %vm1351_vm5 = vcmask 1041408  }
 0xe55   :  { %v1018_v49 = vsub.f32 1.0, %v1017_v34  ;;  %v1080_v2 = vsel %vm1079_vm1, %v3129_v56, %v1076_v63 }
 0xe56   :  { %v1085_v5 = vsel %vm1082_vm2, %v1084_v0, %v1080_v2 }
 0xe57   :  { %v1019_v6 = vmul.f32 %v3131_v61, %v1018_v49  ;;  %v1109_v52 = vmul.f32 %v1107_v1, %v1085_v5  ;;  %v1100_v22 = vsub.f32 1.0, %v1085_v5 }
 0xe59   :  { %v1020_v10 = vadd.f32 %v3131_v61, %v1019_v6 }
 0xe5b   :  { %v1024_v15 = vsel %vm1023_vm6, %v3131_v61, %v1020_v10  ;;  %vm1353_vm6 = vcmask 1043456  }
 0xe5c   :  { %v1029_v17 = vsel %vm1026_vm7, %v1028_v14, %v1024_v15  ;;  %vm1355_vm7 = vcmask 1045504  }
 0xe5d   :  { %v1036_v20 = vmul.f32 %v1034_v19, %v1029_v17  ;;  %v1043_v31 = vsub.f32 1.0, %v1029_v17  ;;  %v1049_v33 = vmul.f32 %v1029_v17, %v3470_v25 }
 0xe5f   :  { %1038 = vrot.lane.b32.xlu0 %v1036_v20, %s3213_s1 }
 0xe95   :  { %v1091_v21 = vpop.permute.xlu2 %1090 }
 0xe96   :  { %v1093_v24 = vmul.f32 %v1091_v21, %v1085_v5 }
 0xe98   :  { %1095 = vrot.lane.b32.xlu1 %v1093_v24, %s3213_s1 }
 0xed1   :  { %v1039_v26 = vpop.permute.xlu0 %1038 }
 0xed2   :  { %v1041_v4 = vadd.f32 %v1039_v26, %v988_v23 }
 0xed4   :  { %3132 = vtanh.f32 %v1041_v4 }
 0xeda   :  { %v3133_v28 = vpop.eup %3132 }
 0xedb   :  { %1045 = vrot.lane.b32.xlu2 %v3133_v28, %s3215_s0 }
 0xf0a   :  { %v1096_v16 = vpop.permute.xlu1 %1095 }
 0xf0b   :  { %v1098_v18 = vadd.f32 %v1096_v16, %v3430_v42 }
 0xf0d   :  { %3134 = vtanh.f32 %v1098_v18 }
 0xf13   :  { %v3135_v30 = vpop.eup %3134 }
 0xf14   :  { %1102 = vrot.lane.b32.xlu0 %v3135_v30, %s3215_s0 }
 0xf35   :  { %v1046_v32 = vpop.permute.xlu2 %1045 }
 0xf36   :  { %v1048_v7 = vmul.f32 %v1046_v32, %v1043_v31 }
 0xf38   :  { %v3492_v8 = vadd.f32 %v1049_v33, %v1048_v7 }
 0xf3a   :  { %v1132_v35 = vpack.c.bf16 %v3492_v8, %v3492_v8 }
 0xf3c   :  { %1134 = vrot.lane.b32.xlu1 %v1132_v35, %s3215_s0 }
 0xf86   :  { %v1103_v11 = vpop.permute.xlu0 %1102 }
 0xf87   :  { %v1105_v12 = vmul.f32 %v1103_v11, %v1100_v22 }
 0xf89   :  { %v3497_v36 = vadd.f32 %v1109_v52, %v1105_v12 }
 0xf8b   :  { %v1111_v37 = vpack.c.bf16 %v3497_v36, %v3497_v36 }
 0xf8d   :  { %v1113_v38 = vrot.slane %v1111_v37, 2 }
 0xf8f   :  { %1114 = vrot.lane.b32.xlu2 %v1113_v38, %s3215_s0 }
 0xfae   :  { %v1135_v39 = vpop.permute.xlu1 %1134 }
 0xfaf   :  { %2540 = vmatmul.msk.bf16.vlgmr.msrb.gmra.mxu3 %vm189_vm4, %v1135_v39 }
 0xfe9   :  { %v1115_v40 = vpop.permute.xlu2 %1114 }
 0xfea   :  { %2539 = vmatmul.msk.bf16.vlgmr.msrb.gmra.mxu2 %vm189_vm4, %v1115_v40  ;;  %2542 = vmatmul.msk.bf16.vlgmr.msra.gmra.mxu0 %vm189_vm4, %v1115_v40 }
0x1032   :  { %v1148_v41 = vpop.f32.mrf.mxu3 }
0x1033   :  { %v1172_v23 = vadd.f32 %v1148_v41, %v3326_v27 }
0x1035   :  { %1174 = vrot.lane.b32.xlu0 %v1172_v23, %s3213_s1  ;;  %v1248_v23 = vrot.slane %v3497_v36, 6 }
0x103a   :  { %v1150_v44 = vpop.f32.mrf.mxu3 }
0x1067   :  { %v1201_v46 = vpop.f32.mrf.mxu0 }
0x1068   :  { %v1228_v48 = vadd.f32 %v1201_v46, %v3280_v43  ;;  %v1206_v9 = vrot.slane %v1201_v46, 2 }
0x106a   :  { %v1230_v50 = vrot.slane %v1228_v48, 2  ;;  %v1208_v52 = vadd.f32 %v1206_v9, %v3430_v42 }
0x106c   :  { %1231 = vrot.lane.b32.xlu1 %v1230_v50, %s3213_s1  ;;  %v2543_v10 = vmul.f32 -1.442695, %v1208_v52 }
0x106d   :  { %v1128_v51 = vpop.f32.mrf.mxu2 }
0x106e   :  { %v1129_v55 = vadd.f32 %v3509_v54, %v1128_v51 }
0x106f   :  { %v1203_v53 = vpop.f32.mrf.mxu0 }
0x1070   :  { %v1152_v57 = vadd.f32 %v1148_v41, %v1129_v55 }
0x1072   :  { %v2541_v58 = vmul.f32 -1.442695, %v1152_v57 }
0x1074   :  { %3136 = vpow2.f32 %v2541_v58 }
0x1075   :  { %v1130_v56 = vpop.f32.mrf.mxu2 }
0x107a   :  { %v3137_v59 = vpop.eup %3136 }
0x107b   :  { %v1156_v47 = vadd.f32 1.0, %v3137_v59 }
0x107d   :  { %3138 = vrcp.f32 %v1156_v47  ;;  %v1168_v0 = vand.u32 2147483648, %v1156_v47  ;;  %vm1162_vm9 = vweird.f32 %v1156_v47  ;;  %v1166_v1 = vand.u32 2147483647, %v1156_v47 }
0x107e   :  { %3140 = vpow2.f32 %v2543_v10 }
0x107f   :  { %v1169_v2 = vor.u32 1.1754944e-38, %v1168_v0  ;;  %vm1167_vm11 = vcmp.eq.f32.partialorder %v1166_v1, 8.507059e+37 }
0x1083   :  { %v3139_v60 = vpop.eup %3138 }
0x1084   :  { %v1158_v61 = vmul.f32 %v3139_v60, %v1156_v47  ;;  %vm1163_vm8 = vweird.f32 %v3139_v60  ;;  %v3141_v14 = vpop.eup %3140 }
0x1085   :  { %vm1164_vm10 = vmor %vm1162_vm9, %vm1163_vm8  ;;  %v1212_v15 = vadd.f32 1.0, %v3141_v14 }
0x1086   :  { %v1159_v34 = vsub.f32 1.0, %v1158_v61 }
0x1087   :  { %3142 = vrcp.f32 %v1212_v15  ;;  %v1224_v26 = vand.u32 2147483648, %v1212_v15  ;;  %vm1218_vm13 = vweird.f32 %v1212_v15  ;;  %v1222_v4 = vand.u32 2147483647, %v1212_v15 }
0x1088   :  { %v1160_v43 = vmul.f32 %v3139_v60, %v1159_v34 }
0x1089   :  { %v1225_v16 = vor.u32 1.1754944e-38, %v1224_v26  ;;  %vm1223_vm15 = vcmp.eq.f32.partialorder %v1222_v4, 8.507059e+37  ;;  %v2551_v26 = vld [vmem:[#allocation2 + $0x15c] sm:$0xf0]  ;;  %v2561_v4 = vld [vmem:[#allocation2 + $0x168] sm:$0xf] }
0x108a   :  { %v1161_v63 = vadd.f32 %v3139_v60, %v1160_v43 }
0x108c   :  { %v1165_v49 = vsel %vm1164_vm10, %v3139_v60, %v1161_v63 }
0x108d   :  { %v1170_v5 = vsel %vm1167_vm11, %v1169_v2, %v1165_v49  ;;  %v3143_v17 = vpop.eup %3142 }
0x108e   :  { %v1214_v19 = vmul.f32 %v3143_v17, %v1212_v15  ;;  %vm1219_vm12 = vweird.f32 %v3143_v17  ;;  %v1184_v12 = vsub.f32 1.0, %v1170_v5  ;;  %v1190_v38 = vmul.f32 %v1170_v5, %v3492_v8 }
0x108f   :  { %vm1220_vm14 = vmor %vm1218_vm13, %vm1219_vm12 }
0x1090   :  { %v1215_v20 = vsub.f32 1.0, %v1214_v19  ;;  %v2956_v19 = vld [vmem:[#allocation2 + $0x16c] sm:$0xf] }
0x1092   :  { %v1216_v21 = vmul.f32 %v3143_v17, %v1215_v20  ;;  %v2563_v20 = vld [vmem:[#allocation2 + $0x174] sm:$0xf0] }
0x1094   :  { %v1217_v24 = vadd.f32 %v3143_v17, %v1216_v21  ;;  %v2953_v21 = vld [vmem:[#allocation2 + $0x154] sm:$0xf] }
0x1096   :  { %v1221_v28 = vsel %vm1220_vm14, %v3143_v17, %v1217_v24  ;;  %v2566_v24 = vor.u32 %v2956_v19, %v2563_v20  ;;  %v2659_v20 = vld [vmem:[#allocation2 + $0x540] sm:$0xf] }
0x1097   :  { %v1226_v18 = vsel %vm1223_vm15, %v1225_v16, %v1221_v28  ;;  %v2957_v28 = vld [vmem:[#allocation2 + $0x170] sm:$0xf0] }
0x1098   :  { %v1241_v44 = vsub.f32 1.0, %v1226_v18  ;;  %v1250_v46 = vmul.f32 %v1248_v23, %v1226_v18  ;;  %v2562_v16 = vor.u32 %v2957_v28, %v2561_v4  ;;  %1436 = vmatpush.bf16.msrb.mxu0 %v2566_v24  ;;  %v2984_v23 = vld [vmem:[#allocation2 + $0x3c8] sm:$0xf0]  ;;  %v2619_v4 = vld [vmem:[#allocation2 + $0x450] sm:$0xf] }
0x1099   :  { %v2993_v28 = vld [vmem:[#allocation2 + $0x458] sm:$0xf0] }
0x109a   :  { %1422 = vmatpush.bf16.msra.mxu3 %v2562_v16  ;;  %v2620_v16 = vor.u32 %v2993_v28, %v2619_v4  ;;  %v2703_v4 = vld [vmem:[#allocation2 + $0x198] sm:$0xf]  ;;  %v2960_v28 = vld [vmem:[#allocation2 + $0x1a0] sm:$0xf0] }
0x10a7   :  { %v1175_v3 = vpop.permute.xlu0 %1174 }
0x10a8   :  { %v1177_v6 = vmul.f32 %v1175_v3, %v1170_v5 }
0x10aa   :  { %1179 = vrot.lane.b32.xlu2 %v1177_v6, %s3213_s1 }
0x10de   :  { %v1232_v30 = vpop.permute.xlu1 %1231 }
0x10df   :  { %v1234_v31 = vmul.f32 %v1232_v30, %v1226_v18  ;;  %v2569_v18 = vld [vmem:[#allocation2 + $0x170] sm:$0xf]  ;;  %v2958_v30 = vld [vmem:[#allocation2 + $0x178] sm:$0xf0] }
0x10e1   :  { %1236 = vrot.lane.b32.xlu0 %v1234_v31, %s3213_s1  ;;  %v2588_v31 = vld [vmem:[#allocation2 + $0x3d8] sm:$0xf] }
0x1104   :  { %v1180_v32 = vpop.permute.xlu2 %1179 }
0x1105   :  { %v1182_v33 = vadd.f32 %v1180_v32, %v1129_v55  ;;  %v2554_v32 = vor.u32 %v2953_v21, %v2551_v26  ;;  %v3003_v21 = vld [vmem:[#allocation2 + $0x548] sm:$0xf0] }
0x1106   :  { %v2660_v26 = vor.u32 %v3003_v21, %v2659_v20  ;;  %v2643_v21 = vld [vmem:[#allocation2 + $0x4e0] sm:$0xf] }
0x1107   :  { %3144 = vtanh.f32 %v1182_v33  ;;  %v2570_v33 = vor.u32 %v2958_v30, %v2569_v18  ;;  %1437 = vmatpush.bf16.msrb.mxu0 %v2554_v32  ;;  %v2727_v18 = vld [vmem:[#allocation2 + $0x228] sm:$0xf]  ;;  %v2966_v30 = vld [vmem:[#allocation2 + $0x230] sm:$0xf0]  ;;  %v2992_v32 = vld [vmem:[#allocation2 + $0x440] sm:$0xf0] }
0x1109   :  { %1450 = vmatpush.bf16.msrb.mxu1 %v2570_v33  ;;  %v2728_v33 = vor.u32 %v2966_v30, %v2727_v18  ;;  %v2704_v18 = vor.u32 %v2960_v28, %v2703_v4  ;;  %v2972_v30 = vld [vmem:[#allocation2 + $0x2c0] sm:$0xf0]  ;;  %v2775_v28 = vld [vmem:[#allocation2 + $0x348] sm:$0xf] }
0x110d   :  { %v3145_v7 = vpop.eup %3144 }
0x110e   :  { %1186 = vrot.lane.b32.xlu1 %v3145_v7, %s3215_s0  ;;  %v2987_v7 = vld [vmem:[#allocation2 + $0x3e0] sm:$0xf0] }
0x1153   :  { %v1237_v35 = vpop.permute.xlu0 %1236 }
0x1154   :  { %v1239_v22 = vadd.f32 %v1237_v35, %v3430_v42  ;;  %v2549_v35 = vld [vmem:[#allocation2 + $0x150] sm:$0xf] }
0x1156   :  { %3146 = vtanh.f32 %v1239_v22  ;;  %v2954_v22 = vld [vmem:[#allocation2 + $0x158] sm:$0xf0] }
0x115c   :  { %v3147_v11 = vpop.eup %3146 }
0x115d   :  { %1243 = vrot.lane.b32.xlu2 %v3147_v11, %s3215_s0  ;;  %v2589_v11 = vor.u32 %v2987_v7, %v2588_v31  ;;  %v2615_v31 = vld [vmem:[#allocation2 + $0x438] sm:$0xf] }
0x115f   :  { %1570 = vmatpush.bf16.msrb.mxu2 %v2589_v11  ;;  %v2965_v11 = vld [vmem:[#allocation2 + $0x218] sm:$0xf0] }
0x1180   :  { %v1187_v37 = vpop.permute.xlu1 %1186 }
0x1181   :  { %v1189_v39 = vmul.f32 %v1187_v37, %v1184_v12  ;;  %v2550_v12 = vor.u32 %v2954_v22, %v2549_v35  ;;  %v2557_v37 = vld [vmem:[#allocation2 + $0x158] sm:$0xf]  ;;  %v2616_v35 = vor.u32 %v2992_v32, %v2615_v31  ;;  %v2723_v22 = vld [vmem:[#allocation2 + $0x210] sm:$0xf] }
0x1182   :  { %v2679_v32 = vld [vmem:[#allocation2 + $0x5b8] sm:$0xf] }
0x1183   :  { %v3519_v40 = vadd.f32 %v1190_v38, %v1189_v39  ;;  %v2955_v38 = vld [vmem:[#allocation2 + $0x160] sm:$0xf0]  ;;  %v2576_v39 = vld [vmem:[#allocation2 + $0x3c0] sm:$0xf]  ;;  %1423 = vmatpush.bf16.msra.mxu3 %v2550_v12 }
0x1184   :  { %v2611_v12 = vld [vmem:[#allocation2 + $0x420] sm:$0xf] }
0x1185   :  { %v1273_v41 = vpack.c.bf16 %v3519_v40, %v3519_v40 }
0x1187   :  { %1275 = vrot.lane.b32.xlu0 %v1273_v41, %s3215_s0  ;;  %v2558_v41 = vor.u32 %v2955_v38, %v2557_v37  ;;  %v2991_v37 = vld [vmem:[#allocation2 + $0x428] sm:$0xf0]  ;;  %v2724_v38 = vor.u32 %v2965_v11, %v2723_v22  ;;  %v2639_v22 = vld [vmem:[#allocation2 + $0x4c8] sm:$0xf]  ;;  %v2998_v11 = vld [vmem:[#allocation2 + $0x4d0] sm:$0xf0] }
0x1189   :  { %1451 = vmatpush.bf16.msrb.mxu1 %v2558_v41  ;;  %v2719_v41 = vld [vmem:[#allocation2 + $0x1f8] sm:$0xf] }
0x11b7   :  { %v1244_v42 = vpop.permute.xlu2 %1243 }
0x11b8   :  { %v1246_v48 = vmul.f32 %v1244_v42, %v1241_v44  ;;  %v2577_v44 = vor.u32 %v2984_v23, %v2576_v39  ;;  %v2612_v39 = vor.u32 %v2991_v37, %v2611_v12  ;;  %v2964_v23 = vld [vmem:[#allocation2 + $0x200] sm:$0xf0]  ;;  %v2640_v12 = vor.u32 %v2998_v11, %v2639_v22  ;;  %v2699_v37 = vld [vmem:[#allocation2 + $0x180] sm:$0xf] }
0x11ba   :  { %v1251_v50 = vadd.f32 %v1250_v46, %v1246_v48  ;;  %1571 = vmatpush.bf16.msrb.mxu2 %v2577_v44  ;;  %v1334_v48 = vrot.slane %v3369_v45, 6  ;;  %v2720_v44 = vor.u32 %v2964_v23, %v2719_v41  ;;  %v2747_v41 = vld [vmem:[#allocation2 + $0x2a0] sm:$0xf]  ;;  %v2971_v23 = vld [vmem:[#allocation2 + $0x2a8] sm:$0xf0] }
0x11bc   :  { %v1252_v51 = vpack.c.bf16 %v1251_v50, %v1251_v50  ;;  %v1343_v50 = vrot.slane %v3492_v8, 6 }
0x11be   :  { %v1254_v53 = vrot.slane %v1252_v51, 3  ;;  %v1357_v45 = vsel %vm1351_vm5, %v3470_v25, %v1343_v50  ;;  %v2607_v50 = vld [vmem:[#allocation2 + $0x408] sm:$0xf] }
0x11c0   :  { %1255 = vrot.lane.b32.xlu1 %v1254_v53, %s3215_s0 }
0x11f9   :  { %v1276_v55 = vpop.permute.xlu0 %1275 }
0x11fa   :  { %2545 = vmatmul.msk.bf16.vlgmr.msra.gmra.mxu2 %vm189_vm4, %v1276_v55  ;;  %v1337_v55 = vrot.slane %v3402_v62, 4  ;;  %v2596_v62 = vld [vmem:[#allocation2 + $0x3e0] sm:$0xf] }
0x1232   :  { %v1256_v56 = vpop.permute.xlu1 %1255 }
0x1233   :  { %2544 = vmatmul.msk.bf16.vlgmr.msra.gmra.mxu1 %vm189_vm4, %v1256_v56  ;;  %v1346_v56 = vrot.slane %v3519_v40, 4 }
0x1235   :  { %v1358_v8 = vsel %vm1353_vm6, %v1357_v45, %v1346_v56  ;;  %v3002_v56 = vld [vmem:[#allocation2 + $0x530] sm:$0xf0]  ;;  %v2691_v45 = vld [vmem:[#allocation2 + $0x600] sm:$0xf] }
0x127d   :  { %v1289_v57 = vpop.f32.mrf.mxu2 }
0x127e   :  { %v1313_v58 = vadd.f32 %v1289_v57, %v3326_v27 }
0x1280   :  { %1315 = vrot.lane.b32.xlu2 %v1313_v58, %s3213_s1 }
0x1285   :  { %v1291_v36 = vpop.f32.mrf.mxu2 }
0x12b0   :  { %v1269_v59 = vpop.f32.mrf.mxu1 }
0x12b1   :  { %v1270_v47 = vadd.f32 %v3509_v54, %v1269_v59  ;;  %v1352_v59 = vsel %vm1351_vm5, %v3341_v29, %v1334_v48 }
0x12b3   :  { %v1293_v60 = vadd.f32 %v1289_v57, %v1270_v47  ;;  %v1340_v57 = vrot.slane %v3438_v13, 2  ;;  %v2985_v13 = vld [vmem:[#allocation2 + $0x3d0] sm:$0xf0] }
0x12b5   :  { %v2546_v61 = vmul.f32 -1.442695, %v1293_v60 }
0x12b7   :  { %3148 = vpow2.f32 %v2546_v61 }
0x12b8   :  { %v1271_v34 = vpop.f32.mrf.mxu1 }
0x12bd   :  { %v3149_v43 = vpop.eup %3148 }
0x12be   :  { %v1297_v63 = vadd.f32 1.0, %v3149_v43  ;;  %v2584_v43 = vld [vmem:[#allocation2 + $0x3c8] sm:$0xf] }
0x12bf   :  { %v2585_v29 = vor.u32 %v2985_v13, %v2584_v43  ;;  %v2711_v43 = vld [vmem:[#allocation2 + $0x1c8] sm:$0xf]  ;;  %v2962_v13 = vld [vmem:[#allocation2 + $0x1d0] sm:$0xf0] }
0x12c0   :  { %3150 = vrcp.f32 %v1297_v63  ;;  %v1309_v27 = vand.u32 2147483648, %v1297_v63  ;;  %vm1303_vm1 = vweird.f32 %v1297_v63  ;;  %v1307_v5 = vand.u32 2147483647, %v1297_v63 }
0x12c2   :  { %v1310_v9 = vor.u32 1.1754944e-38, %v1309_v27  ;;  %vm1308_vm3 = vcmp.eq.f32.partialorder %v1307_v5, 8.507059e+37  ;;  %v2631_v27 = vld [vmem:[#allocation2 + $0x498] sm:$0xf]  ;;  %v2996_v5 = vld [vmem:[#allocation2 + $0x4a0] sm:$0xf0] }
0x12c6   :  { %v3151_v0 = vpop.eup %3150 }
0x12c7   :  { %v1299_v1 = vmul.f32 %v3151_v0, %v1297_v63  ;;  %vm1304_vm0 = vweird.f32 %v3151_v0 }
0x12c8   :  { %vm1305_vm2 = vmor %vm1303_vm1, %vm1304_vm0 }
0x12c9   :  { %v1300_v49 = vsub.f32 1.0, %v1299_v1  ;;  %v2590_v1 = vld [vmem:[#allocation2 + $0x3e4] sm:$0xf0] }
0x12cb   :  { %v1301_v2 = vmul.f32 %v3151_v0, %v1300_v49 }
0x12cd   :  { %v1302_v3 = vadd.f32 %v3151_v0, %v1301_v2  ;;  %v2983_v2 = vld [vmem:[#allocation2 + $0x3c4] sm:$0xf] }
0x12cf   :  { %v1306_v6 = vsel %vm1305_vm2, %v3151_v0, %v1302_v3  ;;  %v2986_v0 = vld [vmem:[#allocation2 + $0x3dc] sm:$0xf]  ;;  %v2578_v3 = vld [vmem:[#allocation2 + $0x3cc] sm:$0xf0] }
0x12d0   :  { %v1311_v52 = vsel %vm1308_vm3, %v1310_v9, %v1306_v6  ;;  %v2593_v49 = vor.u32 %v2986_v0, %v2590_v1  ;;  %v2581_v25 = vor.u32 %v2983_v2, %v2578_v3  ;;  %v2627_v6 = vld [vmem:[#allocation2 + $0x480] sm:$0xf]  ;;  %v2632_v9 = vor.u32 %v2996_v5, %v2631_v27  ;;  %v2759_v1 = vld [vmem:[#allocation2 + $0x2e8] sm:$0xf]  ;;  %v3000_v5 = vld [vmem:[#allocation2 + $0x500] sm:$0xf0] }
0x12d1   :  { %v1325_v42 = vsub.f32 1.0, %v1311_v52  ;;  %v1331_v51 = vmul.f32 %v1311_v52, %v3519_v40  ;;  %v2988_v40 = vld [vmem:[#allocation2 + $0x3e8] sm:$0xf0]  ;;  %v2712_v0 = vor.u32 %v2962_v13, %v2711_v43  ;;  %v2687_v3 = vld [vmem:[#allocation2 + $0x5e8] sm:$0xf] }
0x12d2   :  { %v2597_v63 = vor.u32 %v2988_v40, %v2596_v62  ;;  %1584 = vmatpush.bf16.msrb.mxu3 %v2593_v49  ;;  %1807 = vmatpush.bf16.msra.mxu1 %v2632_v9  ;;  %v3001_v40 = vld [vmem:[#allocation2 + $0x518] sm:$0xf0]  ;;  %v2974_v49 = vld [vmem:[#allocation2 + $0x2f0] sm:$0xf0] }
0x12d3   :  { %v2760_v2 = vor.u32 %v2974_v49, %v2759_v1  ;;  %v2961_v9 = vld [vmem:[#allocation2 + $0x1b8] sm:$0xf0]  ;;  %v2735_v1 = vld [vmem:[#allocation2 + $0x258] sm:$0xf]  ;;  %v2968_v49 = vld [vmem:[#allocation2 + $0x260] sm:$0xf0] }
0x12d4   :  { %1598 = vmatpush.bf16.msra.mxu0 %v2597_v63  ;;  %v3005_v13 = vld [vmem:[#allocation2 + $0x578] sm:$0xf0] }
0x12d6   :  { %1585 = vmatpush.bf16.msrb.mxu3 %v2581_v25  ;;  %v2647_v25 = vld [vmem:[#allocation2 + $0x4f8] sm:$0xf] }
0x12d8   :  { %1599 = vmatpush.bf16.msra.mxu0 %v2585_v29  ;;  %v3010_v29 = vld [vmem:[#allocation2 + $0x5f0] sm:$0xf0] }
0x12d9   :  { %v2688_v27 = vor.u32 %v3010_v29, %v2687_v3  ;;  %v2736_v3 = vor.u32 %v2968_v49, %v2735_v1  ;;  %v2980_v29 = vld [vmem:[#allocation2 + $0x380] sm:$0xf0] }
0x12da   :  { %v1316_v54 = vpop.permute.xlu2 %1315 }
0x12db   :  { %v1318_v10 = vmul.f32 %v1316_v54, %v1311_v52  ;;  %v2995_v54 = vld [vmem:[#allocation2 + $0x488] sm:$0xf0] }
0x12dc   :  { %v2628_v52 = vor.u32 %v2995_v54, %v2627_v6  ;;  %v2707_v6 = vld [vmem:[#allocation2 + $0x1b0] sm:$0xf]  ;;  %v2648_v54 = vor.u32 %v3000_v5, %v2647_v25  ;;  %v3015_v25 = vld [vmem:[#allocation2 + $0x64c] sm:$0xf] }
0x12dd   :  { %1320 = vrot.lane.b32.xlu0 %v1318_v10, %s3213_s1  ;;  %v2623_v10 = vld [vmem:[#allocation2 + $0x468] sm:$0xf] }
0x12de   :  { %1808 = vmatpush.bf16.msra.mxu1 %v2628_v52  ;;  %v2708_v52 = vor.u32 %v2961_v9, %v2707_v6 }
0x134f   :  { %v1321_v14 = vpop.permute.xlu0 %1320 }
0x1350   :  { %v1323_v15 = vadd.f32 %v1321_v14, %v1270_v47  ;;  %v1354_v47 = vsel %vm1353_vm6, %v1352_v59, %v1337_v55  ;;  %v2994_v14 = vld [vmem:[#allocation2 + $0x470] sm:$0xf0] }
0x1351   :  { %v1356_v60 = vsel %vm1355_vm7, %v1354_v47, %v1340_v57  ;;  %v2624_v24 = vor.u32 %v2994_v14, %v2623_v10  ;;  %v2715_v57 = vld [vmem:[#allocation2 + $0x1e0] sm:$0xf]  ;;  %v3011_v47 = vld [vmem:[#allocation2 + $0x608] sm:$0xf0]  ;;  %v2755_v10 = vld [vmem:[#allocation2 + $0x2d0] sm:$0xf] }
0x1352   :  { %3152 = vtanh.f32 %v1323_v15  ;;  %v2663_v15 = vld [vmem:[#allocation2 + $0x558] sm:$0xf]  ;;  %v2973_v14 = vld [vmem:[#allocation2 + $0x2d8] sm:$0xf0] }
0x1353   :  { %1809 = vmatpush.bf16.msra.mxu1 %v2624_v24  ;;  %v2999_v24 = vld [vmem:[#allocation2 + $0x4e8] sm:$0xf0] }
0x1357   :  { %1810 = vmatpush.bf16.msra.mxu1 %v2620_v16  ;;  %v2751_v16 = vld [vmem:[#allocation2 + $0x2b8] sm:$0xf] }
0x1358   :  { %v3153_v17 = vpop.eup %3152  ;;  %v2752_v31 = vor.u32 %v2972_v30, %v2751_v16  ;;  %v2978_v16 = vld [vmem:[#allocation2 + $0x350] sm:$0xf0] }
0x1359   :  { %1327 = vrot.lane.b32.xlu1 %v3153_v17, %s3215_s0  ;;  %v3004_v17 = vld [vmem:[#allocation2 + $0x560] sm:$0xf0] }
0x135a   :  { %v2664_v19 = vor.u32 %v3004_v17, %v2663_v15  ;;  %v2756_v15 = vor.u32 %v2973_v14, %v2755_v10  ;;  %v2683_v17 = vld [vmem:[#allocation2 + $0x5d0] sm:$0xf]  ;;  %v2779_v10 = vld [vmem:[#allocation2 + $0x360] sm:$0xf] }
0x135b   :  { %1811 = vmatpush.bf16.msra.mxu1 %v2616_v35 }
0x135c   :  { %1821 = vmatpush.bf16.msra.mxu2 %v2664_v19  ;;  %v3009_v19 = vld [vmem:[#allocation2 + $0x5d8] sm:$0xf0] }
0x135d   :  { %v2684_v20 = vor.u32 %v3009_v19, %v2683_v17  ;;  %v3013_v17 = vld [vmem:[#allocation2 + $0x634] sm:$0xf]  ;;  %v2797_v19 = vld [vmem:[#allocation2 + $0x63c] sm:$0xf0] }
0x135f   :  { %1812 = vmatpush.bf16.msra.mxu1 %v2612_v39 }
0x1360   :  { %1822 = vmatpush.bf16.msra.mxu2 %v2660_v26  ;;  %v2644_v26 = vor.u32 %v2999_v24, %v2643_v21  ;;  %v2800_v21 = vor.u32 %v3013_v17, %v2797_v19  ;;  %v2803_v24 = vld [vmem:[#allocation2 + $0x648] sm:$0xf] }
0x13cb   :  { %v1328_v46 = vpop.permute.xlu1 %1327 }
0x13cc   :  { %v1330_v53 = vmul.f32 %v1328_v46, %v1325_v42  ;;  %v2695_v42 = vld [vmem:[#allocation2 + $0x618] sm:$0xf]  ;;  %v3012_v46 = vld [vmem:[#allocation2 + $0x620] sm:$0xf0] }
0x13cd   :  { %v2696_v48 = vor.u32 %v3012_v46, %v2695_v42  ;;  %v2675_v42 = vld [vmem:[#allocation2 + $0x5a0] sm:$0xf]  ;;  %v3007_v46 = vld [vmem:[#allocation2 + $0x5a8] sm:$0xf0] }
0x13ce   :  { %v1332_v58 = vadd.f32 %v1331_v51, %v1330_v53  ;;  %v2990_v51 = vld [vmem:[#allocation2 + $0x410] sm:$0xf0]  ;;  %v2655_v53 = vld [vmem:[#allocation2 + $0x528] sm:$0xf] }
0x13cf   :  { %v2608_v55 = vor.u32 %v2990_v51, %v2607_v50  ;;  %v2635_v50 = vld [vmem:[#allocation2 + $0x4b0] sm:$0xf]  ;;  %v2997_v51 = vld [vmem:[#allocation2 + $0x4b8] sm:$0xf0] }
0x13d0   :  { %v1349_v36 = vrot.slane %v1332_v58, 2  ;;  %v2656_v58 = vor.u32 %v3002_v56, %v2655_v53  ;;  %v2636_v53 = vor.u32 %v2997_v51, %v2635_v50  ;;  %v2970_v56 = vld [vmem:[#allocation2 + $0x290] sm:$0xf0] }
0x13d1   :  { %1813 = vmatpush.bf16.msra.mxu1 %v2608_v55  ;;  %v2743_v55 = vld [vmem:[#allocation2 + $0x288] sm:$0xf] }
0x13d2   :  { %v1359_v61 = vsel %vm1355_vm7, %v1358_v8, %v1349_v36  ;;  %v2963_v36 = vld [vmem:[#allocation2 + $0x1e8] sm:$0xf0]  ;;  %1823 = vmatpush.bf16.msra.mxu2 %v2656_v58  ;;  %v2692_v8 = vor.u32 %v3011_v47, %v2691_v45  ;;  %v2744_v58 = vor.u32 %v2970_v56, %v2743_v55  ;;  %v2671_v45 = vld [vmem:[#allocation2 + $0x588] sm:$0xf]  ;;  %v3006_v47 = vld [vmem:[#allocation2 + $0x590] sm:$0xf0] }
0x13d3   :  { %v1360_v34 = vpack.c.bf16 %v1359_v61, %v1356_v60  ;;  %v2716_v59 = vor.u32 %v2963_v36, %v2715_v57  ;;  %v2603_v60 = vld [vmem:[#allocation2 + $0x3f0] sm:$0xf]  ;;  %v2989_v61 = vld [vmem:[#allocation2 + $0x3f8] sm:$0xf0]  ;;  %v2791_v57 = vld [vmem:[#allocation2 + $0x3a8] sm:$0xf] }
0x13d4   :  { %v2604_v62 = vor.u32 %v2989_v61, %v2603_v60  ;;  %v2982_v36 = vld [vmem:[#allocation2 + $0x3b0] sm:$0xf0]  ;;  %v2739_v60 = vld [vmem:[#allocation2 + $0x270] sm:$0xf]  ;;  %v2969_v61 = vld [vmem:[#allocation2 + $0x278] sm:$0xf0] }
0x13d5   :  { %1379 = vrot.lane.b32.xlu2 %v1360_v34, %s3215_s0  ;;  %v2651_v34 = vld [vmem:[#allocation2 + $0x510] sm:$0xf]  ;;  %v2763_v56 = vld [vmem:[#allocation2 + $0x300] sm:$0xf] }
0x13d6   :  { %v2652_v63 = vor.u32 %v3001_v40, %v2651_v34  ;;  %1814 = vmatpush.bf16.msra.mxu1 %v2604_v62  ;;  %v2787_v34 = vld [vmem:[#allocation2 + $0x390] sm:$0xf]  ;;  %v2740_v62 = vor.u32 %v2969_v61, %v2739_v60  ;;  %v2981_v40 = vld [vmem:[#allocation2 + $0x398] sm:$0xf0] }
0x13d7   :  { %v2788_v43 = vor.u32 %v2981_v40, %v2787_v34 }
0x13d8   :  { %1824 = vmatpush.bf16.msra.mxu2 %v2652_v63  ;;  %v2667_v63 = vld [vmem:[#allocation2 + $0x570] sm:$0xf] }
0x13dc   :  { %1825 = vmatpush.bf16.msra.mxu2 %v2648_v54  ;;  %v2731_v54 = vld [vmem:[#allocation2 + $0x240] sm:$0xf] }
0x13e0   :  { %1826 = vmatpush.bf16.msra.mxu2 %v2644_v26  ;;  %v3016_v26 = vld [vmem:[#allocation2 + $0x650] sm:$0xf0] }
0x13e1   :  { %v2804_v4 = vor.u32 %v3016_v26, %v2803_v24 }
0x13e4   :  { %1827 = vmatpush.bf16.msra.mxu2 %v2640_v12  ;;  %v2977_v12 = vld [vmem:[#allocation2 + $0x338] sm:$0xf0] }
0x13e8   :  { %1828 = vmatpush.bf16.msra.mxu2 %v2636_v53 }
0x142f   :  { %v3542_v7 = vpop.permute.xlu2 %1379 }
0x1430   :  { %2571 = vmatmul.msk.bf16.vlgmr.msra.gmra.mxu3 %vm189_vm4, %v3542_v7  ;;  %2572 = vmatmul.msk.bf16.vlgmr.msrb.gmra.mxu0 %vm189_vm4, %v3542_v7 }
0x1431   :  { %2573 = vmatmul.msk.bf16.vlgmr.msrb.gmra.mxu1 %vm189_vm4, %v3542_v7  ;;  %2598 = vmatmul.msk.bf16.vlgmr.msrb.gmra.mxu2 %vm189_vm4, %v3542_v7 }
0x1432   :  { %1993 = vmatpush.bf16.msrb.mxu0 %v2728_v33  ;;  %1835 = vmatpush.bf16.msra.mxu3 %v2696_v48  ;;  %v3008_v33 = vld [vmem:[#allocation2 + $0x5c0] sm:$0xf0]  ;;  %v2676_v48 = vor.u32 %v3007_v46, %v2675_v42 }
0x1433   :  { %2007 = vmatpush.bf16.msrb.mxu1 %v2760_v2  ;;  %v2680_v35 = vor.u32 %v3008_v33, %v2679_v32  ;;  %v2783_v2 = vld [vmem:[#allocation2 + $0x378] sm:$0xf]  ;;  %v3014_v32 = vld [vmem:[#allocation2 + $0x638] sm:$0xf0]  ;;  %v2771_v33 = vld [vmem:[#allocation2 + $0x330] sm:$0xf] }
0x1434   :  { %v2784_v5 = vor.u32 %v2980_v29, %v2783_v2 }
0x1436   :  { %1994 = vmatpush.bf16.msrb.mxu0 %v2724_v38  ;;  %1836 = vmatpush.bf16.msra.mxu3 %v2692_v8  ;;  %v2959_v38 = vld [vmem:[#allocation2 + $0x188] sm:$0xf0]  ;;  %v2672_v8 = vor.u32 %v3006_v47, %v2671_v45 }
0x1437   :  { %2008 = vmatpush.bf16.msrb.mxu1 %v2756_v15  ;;  %v2700_v39 = vor.u32 %v2959_v38, %v2699_v37  ;;  %v2979_v15 = vld [vmem:[#allocation2 + $0x368] sm:$0xf0] }
0x1438   :  { %v1370_v37 = vld [vmem:[#allocation4 + $0x4] ss:$8 sm:$0x7] }
0x1439   :  { %v1373_v1 = vperm.slane %v1370_v37, 1 }
0x143a   :  { %1995 = vmatpush.bf16.msrb.mxu0 %v2720_v44  ;;  %1837 = vmatpush.bf16.msra.mxu3 %v2688_v27  ;;  %v2748_v44 = vor.u32 %v2971_v23, %v2747_v41  ;;  %v2805_v27 = vld [vmem:[#allocation2 + $0x654] sm:$0xf0]  ;;  %v1372_v41 = vperm.slane %v1370_v37, 0 }
0x143b   :  { %2009 = vmatpush.bf16.msrb.mxu1 %v2752_v31  ;;  %v2808_v6 = vor.u32 %v3015_v25, %v2805_v27  ;;  %v2795_v31 = vld [vmem:[#allocation2 + $0x630] sm:$0xf]  ;;  %v2767_v23 = vld [vmem:[#allocation2 + $0x318] sm:$0xf] }
0x143c   :  { %v2796_v11 = vor.u32 %v3014_v32, %v2795_v31  ;;  %v2869_v31 = vld [vmem:[#allocation2 + $0x7b0] sm:$0xf]  ;;  %v3031_v32 = vld [vmem:[#allocation2 + $0x7b8] sm:$0xf0] }
0x143e   :  { %1996 = vmatpush.bf16.msrb.mxu0 %v2716_v59  ;;  %1838 = vmatpush.bf16.msra.mxu3 %v2684_v20  ;;  %v2792_v59 = vor.u32 %v2982_v36, %v2791_v57  ;;  %v2780_v20 = vor.u32 %v2979_v15, %v2779_v10  ;;  %v2975_v57 = vld [vmem:[#allocation2 + $0x308] sm:$0xf0] }
0x143f   :  { %2010 = vmatpush.bf16.msrb.mxu1 %v2748_v44  ;;  %v2976_v44 = vld [vmem:[#allocation2 + $0x320] sm:$0xf0] }
0x1440   :  { %2599 = vmatmul.msk.bf16.vlgmr.msrb.gmra.mxu3 %vm189_vm4, %v3542_v7  ;;  %2600 = vmatmul.msk.bf16.vlgmr.msra.gmra.mxu0 %vm189_vm4, %v3542_v7  ;;  %v2768_v46 = vor.u32 %v2976_v44, %v2767_v23  ;;  %v3028_v44 = vld [vmem:[#allocation2 + $0x770] sm:$0xf0] }
0x1441   :  { %2021 = vmatpush.bf16.msrb.mxu2 %v2792_v59  ;;  %v2764_v59 = vor.u32 %v2975_v57, %v2763_v56  ;;  %v2833_v56 = vld [vmem:[#allocation2 + $0x6d8] sm:$0xf]  ;;  %v3022_v57 = vld [vmem:[#allocation2 + $0x6e0] sm:$0xf0] }
0x1442   :  { %1997 = vmatpush.bf16.msrb.mxu0 %v2712_v0  ;;  %1839 = vmatpush.bf16.msra.mxu3 %v2680_v35  ;;  %v2668_v0 = vor.u32 %v3005_v13, %v2667_v63  ;;  %v1524_v35 = vld [vmem:[#allocation4 + $0x5] ss:$8 sm:$0x7] }
0x1443   :  { %2011 = vmatpush.bf16.msrb.mxu1 %v2744_v58  ;;  %v1526_v42 = vperm.slane %v1524_v35, 0  ;;  %v1528_v34 = vperm.slane %v1524_v35, 2  ;;  %v1527_v13 = vperm.slane %v1524_v35, 1  ;;  %v2865_v35 = vld [vmem:[#allocation2 + $0x798] sm:$0xf] }
0x1445   :  { %2022 = vmatpush.bf16.msrb.mxu2 %v2788_v43 }
0x1446   :  { %1998 = vmatpush.bf16.msrb.mxu0 %v2708_v52  ;;  %1840 = vmatpush.bf16.msra.mxu3 %v2676_v48  ;;  %v2967_v52 = vld [vmem:[#allocation2 + $0x248] sm:$0xf0] }
0x1447   :  { %2012 = vmatpush.bf16.msrb.mxu1 %v2740_v62  ;;  %v2732_v14 = vor.u32 %v2967_v52, %v2731_v54 }
0x1449   :  { %2023 = vmatpush.bf16.msrb.mxu2 %v2784_v5 }
0x144a   :  { %1999 = vmatpush.bf16.msrb.mxu0 %v2704_v18  ;;  %1841 = vmatpush.bf16.msra.mxu3 %v2672_v8  ;;  %v2776_v18 = vor.u32 %v2978_v16, %v2775_v28  ;;  %v2873_v16 = vld [vmem:[#allocation2 + $0x7c8] sm:$0xf] }
0x144b   :  { %2013 = vmatpush.bf16.msrb.mxu1 %v2736_v3 }
0x144d   :  { %2024 = vmatpush.bf16.msrb.mxu2 %v2780_v20 }
0x144e   :  { %2000 = vmatpush.bf16.msrb.mxu0 %v2700_v39  ;;  %1842 = vmatpush.bf16.msra.mxu3 %v2668_v0  ;;  %v2772_v39 = vor.u32 %v2977_v12, %v2771_v33  ;;  %v2870_v33 = vor.u32 %v3031_v32, %v2869_v31  ;;  %v2861_v12 = vld [vmem:[#allocation2 + $0x780] sm:$0xf] }
0x144f   :  { %2014 = vmatpush.bf16.msrb.mxu1 %v2732_v14 }
0x1451   :  { %2025 = vmatpush.bf16.msrb.mxu2 %v2776_v18  ;;  %v3032_v18 = vld [vmem:[#allocation2 + $0x7d0] sm:$0xf0] }
0x1452   :  { %2086 = vmatpush.bf16.msra.mxu0 %v2808_v6  ;;  %2072 = vmatpush.bf16.msrb.mxu3 %v2804_v4 }
0x1455   :  { %2026 = vmatpush.bf16.msrb.mxu2 %v2772_v39  ;;  %v3024_v39 = vld [vmem:[#allocation2 + $0x710] sm:$0xf0] }
0x1456   :  { %2087 = vmatpush.bf16.msra.mxu0 %v2800_v21  ;;  %2073 = vmatpush.bf16.msrb.mxu3 %v2796_v11  ;;  %v1374_v21 = vperm.slane %v1370_v37, 2  ;;  %v3029_v37 = vld [vmem:[#allocation2 + $0x788] sm:$0xf0] }
0x1459   :  { %2027 = vmatpush.bf16.msrb.mxu2 %v2768_v46  ;;  %v2837_v46 = vld [vmem:[#allocation2 + $0x6f0] sm:$0xf] }
0x145d   :  { %2028 = vmatpush.bf16.msrb.mxu2 %v2764_v59  ;;  %v3026_v59 = vld [vmem:[#allocation2 + $0x740] sm:$0xf0] }
0x14ad   :  { %v3556_v9 = vpop.f32.mrf.mxu0 }
0x14ae   :  { %v1440_v27 = vadd.f32 %v3556_v9, %v1373_v1  ;;  %v1453_v5 = vpop.f32.mrf.mxu1 }
0x14af   :  { %v1454_v26 = vadd.f32 %v1453_v5, %v1374_v21  ;;  %v2813_v5 = vld [vmem:[#allocation2 + $0x660] sm:$0xf] }
0x14b0   :  { %v1459_v15 = vmax.f32 %v1440_v27, 0.0 }
0x14b1   :  { %v1460_v4 = vmax.f32 %v1454_v26, 0.0 }
0x14b3   :  { %v1425_v30 = vpop.f32.mrf.mxu3 }
0x14b4   :  { %v1573_v22 = vpop.f32.mrf.mxu2  ;;  %v1426_v48 = vadd.f32 %v1425_v30, %v1372_v41  ;;  %v2874_v30 = vor.u32 %v3032_v18, %v2873_v16 }
0x14b5   :  { %v1441_v38 = vpop.f32.mrf.mxu0  ;;  %v1574_v50 = vadd.f32 %v1573_v22, %v1526_v42  ;;  %v3030_v22 = vld [vmem:[#allocation2 + $0x7a0] sm:$0xf0] }
0x14b6   :  { %v1458_v45 = vmax.f32 %v1426_v48, 0.0  ;;  %v1442_v3 = vadd.f32 %v1441_v38, %v1373_v1  ;;  %v1455_v20 = vpop.f32.mrf.mxu1  ;;  %v2866_v11 = vor.u32 %v3030_v22, %v2865_v35  ;;  %v2862_v38 = vor.u32 %v3029_v37, %v2861_v12  ;;  %v3023_v48 = vld [vmem:[#allocation2 + $0x6f8] sm:$0xf0] }
0x14b7   :  { %v1606_v8 = vmax.f32 %v1574_v50, 0.0  ;;  %v1456_v24 = vadd.f32 %v1455_v20, %v1374_v21  ;;  %v2853_v50 = vld [vmem:[#allocation2 + $0x750] sm:$0xf]  ;;  %v3019_v1 = vld [vmem:[#allocation2 + $0x698] sm:$0xf0] }
0x14b8   :  { %v1462_v52 = vmax.f32 %v1442_v3, 0.0  ;;  %v3018_v3 = vld [vmem:[#allocation2 + $0x680] sm:$0xf0] }
0x14b9   :  { %v1463_v9 = vmax.f32 %v1456_v24, 0.0 }
0x14ba   :  { %v1465_v19 = vpack.c.bf16 %v1462_v52, %v1459_v15 }
0x14bb   :  { %v1427_v51 = vpop.f32.mrf.mxu3  ;;  %v1466_v28 = vpack.c.bf16 %v1463_v9, %v1460_v4 }
0x14bc   :  { %v1428_v53 = vadd.f32 %v1427_v51, %v1372_v41  ;;  %v1575_v55 = vpop.f32.mrf.mxu2  ;;  %v2857_v41 = vld [vmem:[#allocation2 + $0x768] sm:$0xf]  ;;  %v2838_v51 = vor.u32 %v3023_v48, %v2837_v46  ;;  %v3040_v46 = vld [vmem:[#allocation2 + $0x890] sm:$0xf0] }
0x14bd   :  { %v1576_v58 = vadd.f32 %v1575_v55, %v1526_v42  ;;  %v1601_v36 = vpop.f32.mrf.mxu0  ;;  %v2858_v42 = vor.u32 %v3028_v44, %v2857_v41 }
0x14be   :  { %v1461_v47 = vmax.f32 %v1428_v53, 0.0  ;;  %v1602_v43 = vadd.f32 %v1601_v36, %v1528_v34  ;;  %v3027_v53 = vld [vmem:[#allocation2 + $0x758] sm:$0xf0]  ;;  %v2834_v36 = vor.u32 %v3022_v57, %v2833_v56  ;;  %v3038_v56 = vld [vmem:[#allocation2 + $0x860] sm:$0xf0] }
0x14bf   :  { %v1609_v60 = vmax.f32 %v1576_v58, 0.0  ;;  %v2854_v55 = vor.u32 %v3027_v53, %v2853_v50  ;;  %v2849_v58 = vld [vmem:[#allocation2 + $0x738] sm:$0xf]  ;;  %v2901_v50 = vld [vmem:[#allocation2 + $0x870] sm:$0xf] }
0x14c0   :  { %v1464_v61 = vpack.c.bf16 %v1461_v47, %v1458_v45  ;;  %v1608_v49 = vmax.f32 %v1602_v43, 0.0  ;;  %v2850_v45 = vor.u32 %v3026_v59, %v2849_v58  ;;  %v2829_v47 = vld [vmem:[#allocation2 + $0x6c0] sm:$0xf]  ;;  %v3020_v43 = vld [vmem:[#allocation2 + $0x6b0] sm:$0xf0] }
0x14c1   :  { %v1612_v62 = vpack.c.bf16 %v1609_v60, %v1606_v8  ;;  %v3021_v8 = vld [vmem:[#allocation2 + $0x6c8] sm:$0xf0]  ;;  %v2845_v60 = vld [vmem:[#allocation2 + $0x720] sm:$0xf] }
0x14c2   :  { %2001 = vmatmul.bf16.vlgmr.msrb.gmra.mxu0 %v1464_v61  ;;  %v2830_v61 = vor.u32 %v3021_v8, %v2829_v47  ;;  %v2893_v58 = vld [vmem:[#allocation2 + $0x840] sm:$0xf]  ;;  %v3036_v47 = vld [vmem:[#allocation2 + $0x830] sm:$0xf0] }
0x14c3   :  { %1815 = vmatmul.bf16.vlgmr.msra.gmra.mxu1 %v1612_v62  ;;  %v1587_v40 = vpop.f32.mrf.mxu3  ;;  %2243 = vmatpush.bf16.msrb.mxu0 %v2874_v30 }
0x14c4   :  { %v1588_v29 = vadd.f32 %v1587_v40, %v1527_v13  ;;  %v2825_v40 = vld [vmem:[#allocation2 + $0x6a8] sm:$0xf] }
0x14c5   :  { %v1603_v63 = vpop.f32.mrf.mxu0 }
0x14c6   :  { %v1604_v0 = vadd.f32 %v1603_v63, %v1528_v34  ;;  %v1607_v10 = vmax.f32 %v1588_v29, 0.0  ;;  %v3025_v34 = vld [vmem:[#allocation2 + $0x728] sm:$0xf0]  ;;  %v2826_v63 = vor.u32 %v3020_v43, %v2825_v40  ;;  %v3034_v40 = vld [vmem:[#allocation2 + $0x800] sm:$0xf0] }
0x14c7   :  { %2244 = vmatpush.bf16.msrb.mxu0 %v2870_v33  ;;  %v2846_v62 = vor.u32 %v3025_v34, %v2845_v60  ;;  %v2885_v60 = vld [vmem:[#allocation2 + $0x810] sm:$0xf] }
0x14c8   :  { %v1611_v2 = vmax.f32 %v1604_v0, 0.0  ;;  %v2821_v0 = vld [vmem:[#allocation2 + $0x690] sm:$0xf] }
0x14ca   :  { %v1614_v25 = vpack.c.bf16 %v1611_v2, %v1608_v49  ;;  %v2822_v49 = vor.u32 %v3019_v1, %v2821_v0  ;;  %v2817_v2 = vld [vmem:[#allocation2 + $0x678] sm:$0xf]  ;;  %v2937_v1 = vld [vmem:[#allocation2 + $0x948] sm:$0xf] }
0x14cb   :  { %v1589_v6 = vpop.f32.mrf.mxu3  ;;  %2245 = vmatpush.bf16.msrb.mxu0 %v2866_v11  ;;  %v2818_v29 = vor.u32 %v3018_v3, %v2817_v2  ;;  %v2933_v2 = vld [vmem:[#allocation2 + $0x930] sm:$0xf] }
0x14cc   :  { %v1590_v54 = vadd.f32 %v1589_v6, %v1527_v13  ;;  %1843 = vmatmul.bf16.vlgmr.msra.gmra.mxu3 %v1614_v25  ;;  %v3017_v6 = vld [vmem:[#allocation2 + $0x668] sm:$0xf0] }
0x14ce   :  { %v1610_v14 = vmax.f32 %v1590_v54, 0.0  ;;  %v2814_v54 = vor.u32 %v3017_v6, %v2813_v5  ;;  %v3046_v5 = vld [vmem:[#allocation2 + $0x920] sm:$0xf0] }
0x14cf   :  { %2246 = vmatpush.bf16.msrb.mxu0 %v2862_v38 }
0x14d0   :  { %v1613_v17 = vpack.c.bf16 %v1610_v14, %v1607_v10  ;;  %v2040_v10 = vld [vmem:[#allocation4 + $0x6] ss:$8 sm:$0x3] }
0x14d1   :  { %v2042_v12 = vperm.slane %v2040_v10, 0 }
0x14d2   :  { %1829 = vmatmul.bf16.vlgmr.msra.gmra.mxu2 %v1613_v17  ;;  %2810 = vmatmul.msk.bf16.vlgmr.msra.gmra.mxu0 %vm189_vm4, %v3542_v7  ;;  %v2043_v17 = vperm.slane %v2040_v10, 1 }
0x14d3   :  { %2015 = vmatmul.bf16.vlgmr.msrb.gmra.mxu1 %v1465_v19  ;;  %2247 = vmatpush.bf16.msrb.mxu0 %v2858_v42  ;;  %v2905_v42 = vld [vmem:[#allocation2 + $0x888] sm:$0xf] }
0x14d4   :  { %v2906_v48 = vor.u32 %v3040_v46, %v2905_v42  ;;  %v2276_v42 = vld [vmem:[#allocation4 + $0x18] ss:$0 sm:$0xff] }
0x14d6   :  { %2325 = vmatpush.bf16.msra.mxu1 %v2906_v48 }
0x14d7   :  { %2248 = vmatpush.bf16.msrb.mxu0 %v2854_v55  ;;  %v2897_v55 = vld [vmem:[#allocation2 + $0x858] sm:$0xf] }
0x14d8   :  { %v2898_v57 = vor.u32 %v3038_v56, %v2897_v55 }
0x14db   :  { %2249 = vmatpush.bf16.msrb.mxu0 %v2850_v45  ;;  %v2889_v45 = vld [vmem:[#allocation2 + $0x828] sm:$0xf] }
0x14dc   :  { %2809 = vmatmul.msk.bf16.vlgmr.msrb.gmra.mxu3 %vm189_vm4, %v3542_v7  ;;  %v2841_v7 = vld [vmem:[#allocation2 + $0x708] sm:$0xf]  ;;  %v2890_v8 = vor.u32 %v3036_v47, %v2889_v45 }
0x14dd   :  { %v2842_v23 = vor.u32 %v3024_v39, %v2841_v7 }
0x14df   :  { %2229 = vmatpush.bf16.msra.mxu3 %v2842_v23  ;;  %2250 = vmatpush.bf16.msrb.mxu0 %v2846_v62  ;;  %v2881_v62 = vld [vmem:[#allocation2 + $0x7f8] sm:$0xf] }
0x14e0   :  { %v2882_v43 = vor.u32 %v3034_v40, %v2881_v62 }
0x14e2   :  { %2029 = vmatmul.bf16.vlgmr.msrb.gmra.mxu2 %v1466_v28 }
0x14e3   :  { %2230 = vmatpush.bf16.msra.mxu3 %v2838_v51  ;;  %v3039_v51 = vld [vmem:[#allocation2 + $0x878] sm:$0xf0] }
0x14e4   :  { %v2902_v53 = vor.u32 %v3039_v51, %v2901_v50 }
0x14e6   :  { %2326 = vmatpush.bf16.msra.mxu1 %v2902_v53 }
0x14e7   :  { %2231 = vmatpush.bf16.msra.mxu3 %v2834_v36  ;;  %v3037_v36 = vld [vmem:[#allocation2 + $0x848] sm:$0xf0] }
0x14e8   :  { %v2894_v59 = vor.u32 %v3037_v36, %v2893_v58 }
0x14ea   :  { %2327 = vmatpush.bf16.msra.mxu1 %v2898_v57 }
0x14eb   :  { %2232 = vmatpush.bf16.msra.mxu3 %v2830_v61  ;;  %v3035_v61 = vld [vmem:[#allocation2 + $0x818] sm:$0xf0] }
0x14ec   :  { %v2886_v34 = vor.u32 %v3035_v61, %v2885_v60 }
0x14ee   :  { %2328 = vmatpush.bf16.msra.mxu1 %v2894_v59  ;;  %v2422_v59 = vld [vmem:[#allocation4 + $0x19] ss:$0 sm:$0xff] }
0x14ef   :  { %2233 = vmatpush.bf16.msra.mxu3 %v2826_v63  ;;  %v2877_v63 = vld [vmem:[#allocation2 + $0x7e0] sm:$0xf] }
0x14f2   :  { %2329 = vmatpush.bf16.msra.mxu1 %v2890_v8 }
0x14f3   :  { %2234 = vmatpush.bf16.msra.mxu3 %v2822_v49  ;;  %v3048_v49 = vld [vmem:[#allocation2 + $0x950] sm:$0xf0] }
0x14f4   :  { %v2938_v3 = vor.u32 %v3048_v49, %v2937_v1 }
0x14f6   :  { %2330 = vmatpush.bf16.msra.mxu1 %v2886_v34  ;;  %2406 = vmatpush.bf16.msra.mxu2 %v2938_v3 }
0x14f7   :  { %2235 = vmatpush.bf16.msra.mxu3 %v2818_v29  ;;  %v3047_v29 = vld [vmem:[#allocation2 + $0x938] sm:$0xf0] }
0x14fa   :  { %2331 = vmatpush.bf16.msra.mxu1 %v2882_v43 }
0x14fb   :  { %2236 = vmatpush.bf16.msra.mxu3 %v2814_v54  ;;  %v2925_v54 = vld [vmem:[#allocation2 + $0x900] sm:$0xf] }
0x153f   :  { %v2002_v13 = vpop.f32.mrf.mxu0 }
0x1540   :  { %v1816_v25 = vpop.f32.mrf.mxu1 }
0x1547   :  { %v2004_v27 = vpop.f32.mrf.mxu0 }
0x1548   :  { %v1818_v15 = vpop.f32.mrf.mxu1 }
0x154f   :  { %v1844_v52 = vpop.f32.mrf.mxu3  ;;  %v2089_v14 = vpop.f32.mrf.mxu0 }
0x1550   :  { %v2090_v20 = vadd.f32 %v2089_v14, %v2043_v17  ;;  %v2016_v30 = vpop.f32.mrf.mxu1 }
0x1552   :  { %v2095_v28 = vmax.f32 %v2090_v20, 0.0 }
0x1555   :  { %v1830_v19 = vpop.f32.mrf.mxu2 }
0x1556   :  { %v1831_v21 = vadd.f32 %v1830_v19, %v1816_v25  ;;  %v2934_v25 = vor.u32 %v3047_v29, %v2933_v2 }
0x1557   :  { %v1846_v24 = vpop.f32.mrf.mxu3  ;;  %v2091_v26 = vpop.f32.mrf.mxu0 }
0x1558   :  { %v1845_v9 = vadd.f32 %v1844_v52, %v1831_v21  ;;  %v2092_v4 = vadd.f32 %v2091_v26, %v2043_v17  ;;  %2407 = vmatpush.bf16.msra.mxu2 %v2934_v25  ;;  %v3045_v52 = vld [vmem:[#allocation2 + $0x908] sm:$0xf0]  ;;  %v2132_v17 = vld [vmem:[#allocation4 + $0x7] ss:$0 sm:$0xff] }
0x1559   :  { %v2926_v10 = vor.u32 %v3045_v52, %v2925_v54 }
0x155a   :  { %v2097_v16 = vmax.f32 %v2092_v4, 0.0  ;;  %v2003_v18 = vadd.f32 %v2002_v13, %v1845_v9  ;;  %v3033_v13 = vld [vmem:[#allocation2 + $0x7e8] sm:$0xf0] }
0x155b   :  { %v2878_v0 = vor.u32 %v3033_v13, %v2877_v63 }
0x155c   :  { %v2099_v31 = vpack.c.bf16 %v2097_v16, %v2095_v28  ;;  %v3563_v32 = vadd.f32 %v2016_v30, %v2003_v18  ;;  %v2921_v18 = vld [vmem:[#allocation2 + $0x8e8] sm:$0xf]  ;;  %v3044_v30 = vld [vmem:[#allocation2 + $0x8f0] sm:$0xf0] }
0x155d   :  { %v1832_v33 = vpop.f32.mrf.mxu2  ;;  %2332 = vmatpush.bf16.msra.mxu1 %v2878_v0 }
0x155e   :  { %v1833_v35 = vadd.f32 %v1832_v33, %v1818_v15  ;;  %2251 = vmatmul.bf16.vlgmr.msrb.gmra.mxu0 %v2099_v31  ;;  %v2922_v31 = vor.u32 %v3044_v30, %v2921_v18  ;;  %v2917_v33 = vld [vmem:[#allocation2 + $0x8d0] sm:$0xf] }
0x155f   :  { %v2075_v22 = vpop.f32.mrf.mxu3 }
0x1560   :  { %v1847_v11 = vadd.f32 %v1846_v24, %v1833_v35  ;;  %v2076_v38 = vadd.f32 %v2075_v22, %v2042_v12  ;;  %v3043_v35 = vld [vmem:[#allocation2 + $0x8d8] sm:$0xf0] }
0x1561   :  { %v2918_v22 = vor.u32 %v3043_v35, %v2917_v33 }
0x1562   :  { %v3565_v37 = vadd.f32 %v2004_v27, %v1847_v11  ;;  %v2094_v41 = vmax.f32 %v2076_v38, 0.0  ;;  %v2929_v27 = vld [vmem:[#allocation2 + $0x918] sm:$0xf] }
0x1563   :  { %v2930_v6 = vor.u32 %v3046_v5, %v2929_v27  ;;  %v2913_v11 = vld [vmem:[#allocation2 + $0x8b8] sm:$0xf] }
0x1565   :  { %2408 = vmatpush.bf16.msra.mxu2 %v2930_v6  ;;  %v2030_v56 = vpop.f32.mrf.mxu2 }
0x1566   :  { %v2031_v58 = vadd.f32 %v2030_v56, %v3563_v32 }
0x1567   :  { %v2077_v7 = vpop.f32.mrf.mxu3 }
0x1568   :  { %v2078_v39 = vadd.f32 %v2077_v7, %v2042_v12  ;;  %v3042_v12 = vld [vmem:[#allocation2 + $0x8c0] sm:$0xf0]  ;;  %v2909_v7 = vld [vmem:[#allocation2 + $0x8a0] sm:$0xf] }
0x1569   :  { %2409 = vmatpush.bf16.msra.mxu2 %v2926_v10  ;;  %v2914_v38 = vor.u32 %v3042_v12, %v2913_v11 }
0x156a   :  { %v2096_v23 = vmax.f32 %v2078_v39, 0.0  ;;  %v3041_v39 = vld [vmem:[#allocation2 + $0x8a8] sm:$0xf0] }
0x156c   :  { %v2098_v44 = vpack.c.bf16 %v2096_v23, %v2094_v41  ;;  %v2910_v41 = vor.u32 %v3041_v39, %v2909_v7  ;;  %v2018_v23 = vpop.f32.mrf.mxu1 }
0x156d   :  { %2410 = vmatpush.bf16.msra.mxu2 %v2922_v31  ;;  %v2032_v57 = vpop.f32.mrf.mxu2  ;;  %v2019_v8 = vadd.f32 %v2018_v23, %v3565_v37 }
0x156e   :  { %2237 = vmatmul.bf16.vlgmr.msra.gmra.mxu3 %v2098_v44 }
0x156f   :  { %v2033_v62 = vadd.f32 %v2032_v57, %v2019_v8 }
0x1571   :  { %2411 = vmatpush.bf16.msra.mxu2 %v2918_v22 }
0x1575   :  { %2412 = vmatpush.bf16.msra.mxu2 %v2914_v38 }
0x1579   :  { %2413 = vmatpush.bf16.msra.mxu2 %v2910_v41 }
0x15db   :  { %v2252_v14 = vpop.f32.mrf.mxu0 }
0x15e3   :  { %v2254_v26 = vpop.f32.mrf.mxu0 }
0x15f1   :  { %v2238_v15 = vpop.f32.mrf.mxu3 }
0x15f2   :  { %v2239_v19 = vadd.f32 %v2238_v15, %v2132_v17 }
0x15f4   :  { %v2253_v21 = vadd.f32 %v2252_v14, %v2239_v19 }
0x15f6   :  { %v2257_v4 = vmax.f32 %v2253_v21, 0.0 }
0x15f9   :  { %v2240_v20 = vpop.f32.mrf.mxu3 }
0x15fa   :  { %v2241_v24 = vadd.f32 %v2240_v20, %v2132_v17 }
0x15fc   :  { %v2255_v9 = vadd.f32 %v2254_v26, %v2241_v24 }
0x15fe   :  { %v2258_v28 = vmax.f32 %v2255_v9, 0.0 }
0x1600   :  { %v2259_v16 = vpack.c.bf16 %v2258_v28, %v2257_v4 }
0x1602   :  { %2333 = vmatmul.bf16.vlgmr.msra.gmra.mxu1 %v2259_v16 }
0x167f   :  { %v2334_v44 = vpop.f32.mrf.mxu1 }
0x1680   :  { %v2335_v46 = vadd.f32 %v2334_v44, %v2276_v42 }
0x1682   :  { %v2339_v51 = vmax.f32 %v2335_v46, 0.0 }
0x1687   :  { %v2336_v48 = vpop.f32.mrf.mxu1 }
0x1688   :  { %v2337_v50 = vadd.f32 %v2336_v48, %v2276_v42 }
0x168a   :  { %v2340_v53 = vmax.f32 %v2337_v50, 0.0 }
0x168c   :  { %v2341_v55 = vpack.c.bf16 %v2340_v53, %v2339_v51 }
0x168e   :  { %2414 = vmatmul.bf16.vlgmr.msra.gmra.mxu2 %v2341_v55 }
0x1711   :  { %v2415_v36 = vpop.f32.mrf.mxu2 }
0x1712   :  { %v2420_v45 = vadd.f32 %v2415_v36, %v2031_v58 }
0x1714   :  { %v2423_v47 = vadd.f32 %v2422_v59, %v2420_v45 }
0x1716   :  { %v2427_v60 = vrot.slane %v2423_v47, 2  ;;  %v2428_v61 = vrot.slane %v2423_v47, 4  ;;  %v2429_v34 = vrot.slane %v2423_v47, 6  ;;  %2439 = vst [vmem:[%s3596_s3] sm:$0x3] %v2423_v47 }
0x1718   :  { %2440 = vst [vmem:[%s3596_s3 + $0x2] sm:$0x3] %v2427_v60 }
0x1719   :  { %2441 = vst [vmem:[%s3596_s3 + $0x4] sm:$0x3] %v2428_v61  ;;  %v2417_v32 = vpop.f32.mrf.mxu2 }
0x171a   :  { %2442 = vst [vmem:[%s3596_s3 + $0x6] sm:$0x3] %v2429_v34  ;;  %v2421_v37 = vadd.f32 %v2417_v32, %v2033_v62 }
0x171c   :  { %v2424_v40 = vadd.f32 %v2422_v59, %v2421_v37 }
0x171e   :  { %v2430_v43 = vrot.slane %v2424_v40, 2  ;;  %v2431_v63 = vrot.slane %v2424_v40, 4  ;;  %v2432_v13 = vrot.slane %v2424_v40, 6  ;;  %2443 = vst [vmem:[%s3596_s3 + $0x8] sm:$0x3] %v2424_v40 }
0x1720   :  { %2444 = vst [vmem:[%s3596_s3 + $0xa] sm:$0x3] %v2430_v43 }
0x1721   :  { %2445 = vst [vmem:[%s3596_s3 + $0xc] sm:$0x3] %v2431_v63 }
0x1722   :  { %2446 = vst [vmem:[%s3596_s3 + $0xe] sm:$0x3] %v2432_v13 }
0x1723   :  { %2451 = vsyncpa [#allocation3], 1 }
0x1724   :  { %2452 = vsyncpa [#allocation5], 1 }

</bundles_post_ra>
